<compile_context>
chip_gen: v6e
topology: v6e:2x2x1
jax: 0.10.0
libtpu: 0.0.40
codegen_flags: <defaults>
</compile_context>

<pallas_src>
import functools

import jax
import jax.numpy as jnp
from jax.experimental import pallas as pl
from jax.experimental.pallas import tpu as pltpu

# Layer sizes of LinearNetwork.
_DIMS = [28 * 28, 686, 512, 480, 256, 128, 100, 50, 25, 10]
# activation code per layer: 0 = LeakyReLU(0.01), 1 = ReLU, 2 = identity
_ACTS = [0, 0, 0, 0, 0, 1, 1, 1, 2]
_N_LAYERS = len(_ACTS)


def _pad128(n: int) -> int:
    return ((n + 127) // 128) * 128


def _round_up(n: int, m: int) -> int:
    return ((n + m - 1) // m) * m


def mlp_kernel(x_ref, *refs):
    """Forward pass for one batch tile.

    refs = (w1, b1, w2, b2, ..., w9, b9, out_ref).
    Weights are bf16, zero-padded so every hidden feature axis is a multiple
    of 128; biases are f32 (1, pad_out).  Padded lanes stay exactly zero
    through every layer (LeakyReLU(0) == ReLU(0) == 0, padded biases are 0).
    Activations are carried in bf16 between layers; bias-add + activation run
    on the f32 MXU result, then a single cast.
    """
    out_ref = refs[-1]
    param_refs = refs[:-1]

    h = x_ref[...].astype(jnp.bfloat16)  # [TB, 784] bf16
    for li, act in enumerate(_ACTS):
        w = param_refs[2 * li][...]        # bf16 [pad_in, pad_out]
        b = param_refs[2 * li + 1][...]    # f32  [1, pad_out]
        t = jnp.dot(h, w, preferred_element_type=jnp.float32) + b
        if act == 0:
            t = jnp.maximum(t, 0.01 * t)    # LeakyReLU(0.01), slope in (0,1)
        elif act == 1:
            t = jnp.maximum(t, 0.0)         # ReLU
        # act == 2: identity (final layer)
        if li == _N_LAYERS - 1:
            out_ref[...] = t                # f32 output tile
        else:
            h = t.astype(jnp.bfloat16)      # bf16 carry to next matmul


def init_params(key):
    """PyTorch nn.Linear-style init: U(-1/sqrt(fan_in), 1/sqrt(fan_in))."""
    params = []
    for li in range(len(_DIMS) - 1):
        fan_in, fan_out = _DIMS[li], _DIMS[li + 1]
        key, kw, kb = jax.random.split(key, 3)
        bound = 1.0 / jnp.sqrt(jnp.float32(fan_in))
        w = jax.random.uniform(kw, (fan_in, fan_out), jnp.float32, -bound, bound)
        b = jax.random.uniform(kb, (fan_out,), jnp.float32, -bound, bound)
        params.append((w, b))
    return params


def _pad_params(params):
    """Zero-pad hidden feature axes to multiples of 128; weights -> bf16.

    The first weight keeps its 784 input rows (input is passed unpadded with
    a full-extent last dim); every subsequent feature axis is padded to a
    multiple of 128 (lane-dense).
    """
    padded = []
    for li, (w, b) in enumerate(params):
        fi, fo = w.shape
        pfi = fi if li == 0 else _pad128(fi)
        pfo = _pad128(fo)
        wp = (jnp.zeros((pfi, pfo), jnp.float32)
              .at[:fi, :fo].set(w)
              .astype(jnp.bfloat16))
        bp = jnp.zeros((1, pfo), jnp.float32).at[0, :fo].set(b)
        padded.append((wp, bp))
    return padded


@functools.partial(jax.jit, static_argnames=("batch_tile",))
def linear_network_forward(x_nchw, padded_params, *, batch_tile=512):
    """x_nchw: [B, 1, 28, 28] float32 -> [B, 10] float32."""
    B = x_nchw.shape[0]
    in_dim = _DIMS[0]
    out_pad = _pad128(_DIMS[-1])

    x = x_nchw.reshape(B, -1).astype(jnp.float32)     # nn.Flatten(): [B, 784]

    # Batch tiling: cap TB so the grid has >= 2 steps whenever B > 8 (lets the
    # "parallel" batch axis shard across both v7x TensorCores); TB is a
    # multiple of 8 and at most batch_tile (512 keeps the MXU M-dim long and
    # amortizes per-grid-step overhead at large B).
    half = _round_up(max(1, -(-B // 2)), 8)
    TB = max(8, min(batch_tile, half))
    B_pad = _round_up(B, TB)
    if B_pad != B:
        x = jnp.pad(x, ((0, B_pad - B), (0, 0)))
    grid = (B_pad // TB,)

    # BlockSpecs: x/out tile (and pipeline) over batch; weights/biases use a
    # constant index_map so they are DMA'd once and stay VMEM-resident across
    # all grid steps.
    in_specs = [pl.BlockSpec((TB, in_dim), lambda i: (i, 0))]
    for (w, b) in padded_params:
        in_specs.append(pl.BlockSpec(w.shape, lambda i: (0, 0)))
        in_specs.append(pl.BlockSpec(b.shape, lambda i: (0, 0)))
    out_spec = pl.BlockSpec((TB, out_pad), lambda i: (i, 0))

    flat_params = [a for pair in padded_params for a in pair]

    flops = 2 * B_pad * sum(_DIMS[k] * _DIMS[k + 1] for k in range(len(_DIMS) - 1))
    bytes_accessed = (
        B_pad * in_dim * 4                                          # x in
        + sum(w.size * 2 + b.size * 4 for (w, b) in padded_params)  # params
        + B_pad * out_pad * 4                                       # out
    )
    cost = pl.CostEstimate(flops=flops, transcendentals=0,
                           bytes_accessed=bytes_accessed)

    out_p = pl.pallas_call(
        mlp_kernel,
        out_shape=jax.ShapeDtypeStruct((B_pad, out_pad), jnp.float32),
        grid=grid,
        in_specs=in_specs,
        out_specs=out_spec,
        compiler_params=pltpu.CompilerParams(
            dimension_semantics=("parallel",),
            # 48 MiB: above v5e's 16 MiB default scoped VMEM, below v7x's
            # 64 MiB physical; actual usage is ~15 MiB at TB=512.
            vmem_limit_bytes=48 << 20),
        cost_estimate=cost,
    )(x, *flat_params)

    # Slice back to the module's contract ([B, 10] f32).  Minor extra HBM
    # pass; fold into the consumer if the padded (B_pad, 128) layout is OK.
    return out_p[:B, : _DIMS[-1]]


def reference_forward(x_nchw, padded_params):
    """Pure-JAX reference with the same bf16 numerics as the kernel."""
    h = x_nchw.reshape(x_nchw.shape[0], -1).astype(jnp.bfloat16)
    for li, ((w, b), act) in enumerate(zip(padded_params, _ACTS)):
        t = jnp.dot(h, w, preferred_element_type=jnp.float32) + b
        if act == 0:
            t = jnp.maximum(t, 0.01 * t)
        elif act == 1:
            t = jnp.maximum(t, 0.0)
        h = t if li == _N_LAYERS - 1 else t.astype(jnp.bfloat16)
    return h[:, : _DIMS[-1]]


if __name__ == "__main__":
    key = jax.random.PRNGKey(0)
    key, kx = jax.random.split(key)

    B = 64
    x = jax.random.normal(kx, (B, 1, 28, 28), jnp.float32)   # NCHW, MNIST-like

    params = init_params(key)
    padded = _pad_params(params)

    # Default batch_tile=512; B=64 -> TB=32, grid=(2,): exercises the
    # pipelined multi-step batch grid (and 2-TC sharding on v7x).
    out = linear_network_forward(x, padded)
    out = jax.block_until_ready(out)

    ref = reference_forward(x, padded)
    assert out.shape == (B, 10), out.shape
    err = float(jnp.max(jnp.abs(out - ref)))
    assert jnp.allclose(out, ref, atol=2e-2, rtol=2e-2), err

    print("KERNEL_OK")
</pallas_src>

<mosaic_0001>
module attributes {stable_mosaic.version = 11 : i64} {
  func.func @mlp_kernel(%arg0: i32, %arg1: memref<32x784xf32, #tpu.memory_space<vmem>>, %arg2: memref<784x768xbf16, #tpu.memory_space<vmem>>, %arg3: memref<1x768xf32, #tpu.memory_space<vmem>>, %arg4: memref<768x512xbf16, #tpu.memory_space<vmem>>, %arg5: memref<1x512xf32, #tpu.memory_space<vmem>>, %arg6: memref<512x512xbf16, #tpu.memory_space<vmem>>, %arg7: memref<1x512xf32, #tpu.memory_space<vmem>>, %arg8: memref<512x256xbf16, #tpu.memory_space<vmem>>, %arg9: memref<1x256xf32, #tpu.memory_space<vmem>>, %arg10: memref<256x128xbf16, #tpu.memory_space<vmem>>, %arg11: memref<1x128xf32, #tpu.memory_space<vmem>>, %arg12: memref<128x128xbf16, #tpu.memory_space<vmem>>, %arg13: memref<1x128xf32, #tpu.memory_space<vmem>>, %arg14: memref<128x128xbf16, #tpu.memory_space<vmem>>, %arg15: memref<1x128xf32, #tpu.memory_space<vmem>>, %arg16: memref<128x128xbf16, #tpu.memory_space<vmem>>, %arg17: memref<1x128xf32, #tpu.memory_space<vmem>>, %arg18: memref<128x128xbf16, #tpu.memory_space<vmem>>, %arg19: memref<1x128xf32, #tpu.memory_space<vmem>>, %arg20: memref<32x128xf32, #tpu.memory_space<vmem>>) attributes {dimension_semantics = [#tpu.dimension_semantics<parallel>], iteration_bounds = array<i64: 2>, scalar_prefetch = 0 : i64, scratch_operands = 0 : i64, tpu.core_type = #tpu.core_type<tc>, window_params = [{transform_indices = @transform_0, window_bounds = array<i64: 32, 784>}, {pipeline_mode = #tpu.pipeline_mode<synchronous>, transform_indices = @transform_1, window_bounds = array<i64: 784, 768>}, {pipeline_mode = #tpu.pipeline_mode<synchronous>, transform_indices = @transform_2, window_bounds = array<i64: 1, 768>}, {pipeline_mode = #tpu.pipeline_mode<synchronous>, transform_indices = @transform_3, window_bounds = array<i64: 768, 512>}, {pipeline_mode = #tpu.pipeline_mode<synchronous>, transform_indices = @transform_4, window_bounds = array<i64: 1, 512>}, {pipeline_mode = #tpu.pipeline_mode<synchronous>, transform_indices = @transform_5, window_bounds = array<i64: 512, 512>}, {pipeline_mode = #tpu.pipeline_mode<synchronous>, transform_indices = @transform_6, window_bounds = array<i64: 1, 512>}, {pipeline_mode = #tpu.pipeline_mode<synchronous>, transform_indices = @transform_7, window_bounds = array<i64: 512, 256>}, {pipeline_mode = #tpu.pipeline_mode<synchronous>, transform_indices = @transform_8, window_bounds = array<i64: 1, 256>}, {pipeline_mode = #tpu.pipeline_mode<synchronous>, transform_indices = @transform_9, window_bounds = array<i64: 256, 128>}, {pipeline_mode = #tpu.pipeline_mode<synchronous>, transform_indices = @transform_10, window_bounds = array<i64: 1, 128>}, {pipeline_mode = #tpu.pipeline_mode<synchronous>, transform_indices = @transform_11, window_bounds = array<i64: 128, 128>}, {pipeline_mode = #tpu.pipeline_mode<synchronous>, transform_indices = @transform_12, window_bounds = array<i64: 1, 128>}, {pipeline_mode = #tpu.pipeline_mode<synchronous>, transform_indices = @transform_13, window_bounds = array<i64: 128, 128>}, {pipeline_mode = #tpu.pipeline_mode<synchronous>, transform_indices = @transform_14, window_bounds = array<i64: 1, 128>}, {pipeline_mode = #tpu.pipeline_mode<synchronous>, transform_indices = @transform_15, window_bounds = array<i64: 128, 128>}, {pipeline_mode = #tpu.pipeline_mode<synchronous>, transform_indices = @transform_16, window_bounds = array<i64: 1, 128>}, {pipeline_mode = #tpu.pipeline_mode<synchronous>, transform_indices = @transform_17, window_bounds = array<i64: 128, 128>}, {pipeline_mode = #tpu.pipeline_mode<synchronous>, transform_indices = @transform_18, window_bounds = array<i64: 1, 128>}, {transform_indices = @transform_19, window_bounds = array<i64: 32, 128>}]} {
    %c0 = arith.constant 0 : index
    %c0_0 = arith.constant 0 : index
    %0 = vector.load %arg1[%c0, %c0_0] : memref<32x784xf32, #tpu.memory_space<vmem>>, vector<32x784xf32>
    %1 = arith.truncf %0 : vector<32x784xf32> to vector<32x784xbf16>
    %c0_1 = arith.constant 0 : index
    %c0_2 = arith.constant 0 : index
    %2 = vector.load %arg2[%c0_1, %c0_2] : memref<784x768xbf16, #tpu.memory_space<vmem>>, vector<784x768xbf16>
    %c0_3 = arith.constant 0 : index
    %c0_4 = arith.constant 0 : index
    %3 = vector.load %arg3[%c0_3, %c0_4] : memref<1x768xf32, #tpu.memory_space<vmem>>, vector<1x768xf32>
    %cst = arith.constant dense<0.000000e+00> : vector<32x768xf32>
    %4 = tpu.matmul %1, %2, %cst {dimension_numbers = #tpu.dot_dimension_numbers<[1], [0], [0], [1], [0, 0, 1, 1], [], []>} : vector<32x784xbf16>, vector<784x768xbf16>, vector<32x768xf32> -> vector<32x768xf32>
    %5 = vector.broadcast %3 : vector<1x768xf32> to vector<32x768xf32>
    %6 = arith.addf %4, %5 : vector<32x768xf32>
    %cst_5 = arith.constant 0.00999999977 : f32
    %7 = vector.broadcast %cst_5 : f32 to vector<32x768xf32>
    %8 = arith.mulf %7, %6 : vector<32x768xf32>
    %9 = arith.maximumf %6, %8 : vector<32x768xf32>
    %10 = arith.truncf %9 : vector<32x768xf32> to vector<32x768xbf16>
    %c0_6 = arith.constant 0 : index
    %c0_7 = arith.constant 0 : index
    %11 = vector.load %arg4[%c0_6, %c0_7] : memref<768x512xbf16, #tpu.memory_space<vmem>>, vector<768x512xbf16>
    %c0_8 = arith.constant 0 : index
    %c0_9 = arith.constant 0 : index
    %12 = vector.load %arg5[%c0_8, %c0_9] : memref<1x512xf32, #tpu.memory_space<vmem>>, vector<1x512xf32>
    %cst_10 = arith.constant dense<0.000000e+00> : vector<32x512xf32>
    %13 = tpu.matmul %10, %11, %cst_10 {dimension_numbers = #tpu.dot_dimension_numbers<[1], [0], [0], [1], [0, 0, 1, 1], [], []>} : vector<32x768xbf16>, vector<768x512xbf16>, vector<32x512xf32> -> vector<32x512xf32>
    %14 = vector.broadcast %12 : vector<1x512xf32> to vector<32x512xf32>
    %15 = arith.addf %13, %14 : vector<32x512xf32>
    %cst_11 = arith.constant 0.00999999977 : f32
    %16 = vector.broadcast %cst_11 : f32 to vector<32x512xf32>
    %17 = arith.mulf %16, %15 : vector<32x512xf32>
    %18 = arith.maximumf %15, %17 : vector<32x512xf32>
    %19 = arith.truncf %18 : vector<32x512xf32> to vector<32x512xbf16>
    %c0_12 = arith.constant 0 : index
    %c0_13 = arith.constant 0 : index
    %20 = vector.load %arg6[%c0_12, %c0_13] : memref<512x512xbf16, #tpu.memory_space<vmem>>, vector<512x512xbf16>
    %c0_14 = arith.constant 0 : index
    %c0_15 = arith.constant 0 : index
    %21 = vector.load %arg7[%c0_14, %c0_15] : memref<1x512xf32, #tpu.memory_space<vmem>>, vector<1x512xf32>
    %cst_16 = arith.constant dense<0.000000e+00> : vector<32x512xf32>
    %22 = tpu.matmul %19, %20, %cst_16 {dimension_numbers = #tpu.dot_dimension_numbers<[1], [0], [0], [1], [0, 0, 1, 1], [], []>} : vector<32x512xbf16>, vector<512x512xbf16>, vector<32x512xf32> -> vector<32x512xf32>
    %23 = vector.broadcast %21 : vector<1x512xf32> to vector<32x512xf32>
    %24 = arith.addf %22, %23 : vector<32x512xf32>
    %cst_17 = arith.constant 0.00999999977 : f32
    %25 = vector.broadcast %cst_17 : f32 to vector<32x512xf32>
    %26 = arith.mulf %25, %24 : vector<32x512xf32>
    %27 = arith.maximumf %24, %26 : vector<32x512xf32>
    %28 = arith.truncf %27 : vector<32x512xf32> to vector<32x512xbf16>
    %c0_18 = arith.constant 0 : index
    %c0_19 = arith.constant 0 : index
    %29 = vector.load %arg8[%c0_18, %c0_19] : memref<512x256xbf16, #tpu.memory_space<vmem>>, vector<512x256xbf16>
    %c0_20 = arith.constant 0 : index
    %c0_21 = arith.constant 0 : index
    %30 = vector.load %arg9[%c0_20, %c0_21] : memref<1x256xf32, #tpu.memory_space<vmem>>, vector<1x256xf32>
    %cst_22 = arith.constant dense<0.000000e+00> : vector<32x256xf32>
    %31 = tpu.matmul %28, %29, %cst_22 {dimension_numbers = #tpu.dot_dimension_numbers<[1], [0], [0], [1], [0, 0, 1, 1], [], []>} : vector<32x512xbf16>, vector<512x256xbf16>, vector<32x256xf32> -> vector<32x256xf32>
    %32 = vector.broadcast %30 : vector<1x256xf32> to vector<32x256xf32>
    %33 = arith.addf %31, %32 : vector<32x256xf32>
    %cst_23 = arith.constant 0.00999999977 : f32
    %34 = vector.broadcast %cst_23 : f32 to vector<32x256xf32>
    %35 = arith.mulf %34, %33 : vector<32x256xf32>
    %36 = arith.maximumf %33, %35 : vector<32x256xf32>
    %37 = arith.truncf %36 : vector<32x256xf32> to vector<32x256xbf16>
    %c0_24 = arith.constant 0 : index
    %c0_25 = arith.constant 0 : index
    %38 = vector.load %arg10[%c0_24, %c0_25] : memref<256x128xbf16, #tpu.memory_space<vmem>>, vector<256x128xbf16>
    %c0_26 = arith.constant 0 : index
    %c0_27 = arith.constant 0 : index
    %39 = vector.load %arg11[%c0_26, %c0_27] : memref<1x128xf32, #tpu.memory_space<vmem>>, vector<1x128xf32>
    %cst_28 = arith.constant dense<0.000000e+00> : vector<32x128xf32>
    %40 = tpu.matmul %37, %38, %cst_28 {dimension_numbers = #tpu.dot_dimension_numbers<[1], [0], [0], [1], [0, 0, 1, 1], [], []>} : vector<32x256xbf16>, vector<256x128xbf16>, vector<32x128xf32> -> vector<32x128xf32>
    %41 = vector.broadcast %39 : vector<1x128xf32> to vector<32x128xf32>
    %42 = arith.addf %40, %41 : vector<32x128xf32>
    %cst_29 = arith.constant 0.00999999977 : f32
    %43 = vector.broadcast %cst_29 : f32 to vector<32x128xf32>
    %44 = arith.mulf %43, %42 : vector<32x128xf32>
    %45 = arith.maximumf %42, %44 : vector<32x128xf32>
    %46 = arith.truncf %45 : vector<32x128xf32> to vector<32x128xbf16>
    %c0_30 = arith.constant 0 : index
    %c0_31 = arith.constant 0 : index
    %47 = vector.load %arg12[%c0_30, %c0_31] : memref<128x128xbf16, #tpu.memory_space<vmem>>, vector<128x128xbf16>
    %c0_32 = arith.constant 0 : index
    %c0_33 = arith.constant 0 : index
    %48 = vector.load %arg13[%c0_32, %c0_33] : memref<1x128xf32, #tpu.memory_space<vmem>>, vector<1x128xf32>
    %cst_34 = arith.constant dense<0.000000e+00> : vector<32x128xf32>
    %49 = tpu.matmul %46, %47, %cst_34 {dimension_numbers = #tpu.dot_dimension_numbers<[1], [0], [0], [1], [0, 0, 1, 1], [], []>} : vector<32x128xbf16>, vector<128x128xbf16>, vector<32x128xf32> -> vector<32x128xf32>
    %50 = vector.broadcast %48 : vector<1x128xf32> to vector<32x128xf32>
    %51 = arith.addf %49, %50 : vector<32x128xf32>
    %cst_35 = arith.constant 0.000000e+00 : f32
    %52 = vector.broadcast %cst_35 : f32 to vector<32x128xf32>
    %53 = arith.maximumf %51, %52 : vector<32x128xf32>
    %54 = arith.truncf %53 : vector<32x128xf32> to vector<32x128xbf16>
    %c0_36 = arith.constant 0 : index
    %c0_37 = arith.constant 0 : index
    %55 = vector.load %arg14[%c0_36, %c0_37] : memref<128x128xbf16, #tpu.memory_space<vmem>>, vector<128x128xbf16>
    %c0_38 = arith.constant 0 : index
    %c0_39 = arith.constant 0 : index
    %56 = vector.load %arg15[%c0_38, %c0_39] : memref<1x128xf32, #tpu.memory_space<vmem>>, vector<1x128xf32>
    %cst_40 = arith.constant dense<0.000000e+00> : vector<32x128xf32>
    %57 = tpu.matmul %54, %55, %cst_40 {dimension_numbers = #tpu.dot_dimension_numbers<[1], [0], [0], [1], [0, 0, 1, 1], [], []>} : vector<32x128xbf16>, vector<128x128xbf16>, vector<32x128xf32> -> vector<32x128xf32>
    %58 = vector.broadcast %56 : vector<1x128xf32> to vector<32x128xf32>
    %59 = arith.addf %57, %58 : vector<32x128xf32>
    %cst_41 = arith.constant 0.000000e+00 : f32
    %60 = vector.broadcast %cst_41 : f32 to vector<32x128xf32>
    %61 = arith.maximumf %59, %60 : vector<32x128xf32>
    %62 = arith.truncf %61 : vector<32x128xf32> to vector<32x128xbf16>
    %c0_42 = arith.constant 0 : index
    %c0_43 = arith.constant 0 : index
    %63 = vector.load %arg16[%c0_42, %c0_43] : memref<128x128xbf16, #tpu.memory_space<vmem>>, vector<128x128xbf16>
    %c0_44 = arith.constant 0 : index
    %c0_45 = arith.constant 0 : index
    %64 = vector.load %arg17[%c0_44, %c0_45] : memref<1x128xf32, #tpu.memory_space<vmem>>, vector<1x128xf32>
    %cst_46 = arith.constant dense<0.000000e+00> : vector<32x128xf32>
    %65 = tpu.matmul %62, %63, %cst_46 {dimension_numbers = #tpu.dot_dimension_numbers<[1], [0], [0], [1], [0, 0, 1, 1], [], []>} : vector<32x128xbf16>, vector<128x128xbf16>, vector<32x128xf32> -> vector<32x128xf32>
    %66 = vector.broadcast %64 : vector<1x128xf32> to vector<32x128xf32>
    %67 = arith.addf %65, %66 : vector<32x128xf32>
    %cst_47 = arith.constant 0.000000e+00 : f32
    %68 = vector.broadcast %cst_47 : f32 to vector<32x128xf32>
    %69 = arith.maximumf %67, %68 : vector<32x128xf32>
    %70 = arith.truncf %69 : vector<32x128xf32> to vector<32x128xbf16>
    %c0_48 = arith.constant 0 : index
    %c0_49 = arith.constant 0 : index
    %71 = vector.load %arg18[%c0_48, %c0_49] : memref<128x128xbf16, #tpu.memory_space<vmem>>, vector<128x128xbf16>
    %c0_50 = arith.constant 0 : index
    %c0_51 = arith.constant 0 : index
    %72 = vector.load %arg19[%c0_50, %c0_51] : memref<1x128xf32, #tpu.memory_space<vmem>>, vector<1x128xf32>
    %cst_52 = arith.constant dense<0.000000e+00> : vector<32x128xf32>
    %73 = tpu.matmul %70, %71, %cst_52 {dimension_numbers = #tpu.dot_dimension_numbers<[1], [0], [0], [1], [0, 0, 1, 1], [], []>} : vector<32x128xbf16>, vector<128x128xbf16>, vector<32x128xf32> -> vector<32x128xf32>
    %74 = vector.broadcast %72 : vector<1x128xf32> to vector<32x128xf32>
    %75 = arith.addf %73, %74 : vector<32x128xf32>
    %c0_53 = arith.constant 0 : index
    %c0_54 = arith.constant 0 : index
    %76 = vector.load %arg20[%c0_53, %c0_54] : memref<32x128xf32, #tpu.memory_space<vmem>>, vector<32x128xf32>
    tpu.vector_store %arg20[%c0_53, %c0_54], %75 {strides = array<i32>} : memref<32x128xf32, #tpu.memory_space<vmem>>, vector<32x128xf32>,
    return
  }
  func.func @transform_0(%arg0: i32) -> (i32, i32) {
    %c0_i32 = arith.constant 0 : i32
    %c0_i32_0 = arith.constant 0 : i32
    return %arg0, %c0_i32 : i32, i32
  }
  func.func @transform_1(%arg0: i32) -> (i32, i32) {
    %c0_i32 = arith.constant 0 : i32
    %c0_i32_0 = arith.constant 0 : i32
    %c0_i32_1 = arith.constant 0 : i32
    return %c0_i32, %c0_i32_0 : i32, i32
  }
  func.func @transform_2(%arg0: i32) -> (i32, i32) {
    %c0_i32 = arith.constant 0 : i32
    %c0_i32_0 = arith.constant 0 : i32
    %c0_i32_1 = arith.constant 0 : i32
    return %c0_i32, %c0_i32_0 : i32, i32
  }
  func.func @transform_3(%arg0: i32) -> (i32, i32) {
    %c0_i32 = arith.constant 0 : i32
    %c0_i32_0 = arith.constant 0 : i32
    %c0_i32_1 = arith.constant 0 : i32
    return %c0_i32, %c0_i32_0 : i32, i32
  }
  func.func @transform_4(%arg0: i32) -> (i32, i32) {
    %c0_i32 = arith.constant 0 : i32
    %c0_i32_0 = arith.constant 0 : i32
    %c0_i32_1 = arith.constant 0 : i32
    return %c0_i32, %c0_i32_0 : i32, i32
  }
  func.func @transform_5(%arg0: i32) -> (i32, i32) {
    %c0_i32 = arith.constant 0 : i32
    %c0_i32_0 = arith.constant 0 : i32
    %c0_i32_1 = arith.constant 0 : i32
    return %c0_i32, %c0_i32_0 : i32, i32
  }
  func.func @transform_6(%arg0: i32) -> (i32, i32) {
    %c0_i32 = arith.constant 0 : i32
    %c0_i32_0 = arith.constant 0 : i32
    %c0_i32_1 = arith.constant 0 : i32
    return %c0_i32, %c0_i32_0 : i32, i32
  }
  func.func @transform_7(%arg0: i32) -> (i32, i32) {
    %c0_i32 = arith.constant 0 : i32
    %c0_i32_0 = arith.constant 0 : i32
    %c0_i32_1 = arith.constant 0 : i32
    return %c0_i32, %c0_i32_0 : i32, i32
  }
  func.func @transform_8(%arg0: i32) -> (i32, i32) {
    %c0_i32 = arith.constant 0 : i32
    %c0_i32_0 = arith.constant 0 : i32
    %c0_i32_1 = arith.constant 0 : i32
    return %c0_i32, %c0_i32_0 : i32, i32
  }
  func.func @transform_9(%arg0: i32) -> (i32, i32) {
    %c0_i32 = arith.constant 0 : i32
    %c0_i32_0 = arith.constant 0 : i32
    %c0_i32_1 = arith.constant 0 : i32
    return %c0_i32, %c0_i32_0 : i32, i32
  }
  func.func @transform_10(%arg0: i32) -> (i32, i32) {
    %c0_i32 = arith.constant 0 : i32
    %c0_i32_0 = arith.constant 0 : i32
    %c0_i32_1 = arith.constant 0 : i32
    return %c0_i32, %c0_i32_0 : i32, i32
  }
  func.func @transform_11(%arg0: i32) -> (i32, i32) {
    %c0_i32 = arith.constant 0 : i32
    %c0_i32_0 = arith.constant 0 : i32
    %c0_i32_1 = arith.constant 0 : i32
    return %c0_i32, %c0_i32_0 : i32, i32
  }
  func.func @transform_12(%arg0: i32) -> (i32, i32) {
    %c0_i32 = arith.constant 0 : i32
    %c0_i32_0 = arith.constant 0 : i32
    %c0_i32_1 = arith.constant 0 : i32
    return %c0_i32, %c0_i32_0 : i32, i32
  }
  func.func @transform_13(%arg0: i32) -> (i32, i32) {
    %c0_i32 = arith.constant 0 : i32
    %c0_i32_0 = arith.constant 0 : i32
    %c0_i32_1 = arith.constant 0 : i32
    return %c0_i32, %c0_i32_0 : i32, i32
  }
  func.func @transform_14(%arg0: i32) -> (i32, i32) {
    %c0_i32 = arith.constant 0 : i32
    %c0_i32_0 = arith.constant 0 : i32
    %c0_i32_1 = arith.constant 0 : i32
    return %c0_i32, %c0_i32_0 : i32, i32
  }
  func.func @transform_15(%arg0: i32) -> (i32, i32) {
    %c0_i32 = arith.constant 0 : i32
    %c0_i32_0 = arith.constant 0 : i32
    %c0_i32_1 = arith.constant 0 : i32
    return %c0_i32, %c0_i32_0 : i32, i32
  }
  func.func @transform_16(%arg0: i32) -> (i32, i32) {
    %c0_i32 = arith.constant 0 : i32
    %c0_i32_0 = arith.constant 0 : i32
    %c0_i32_1 = arith.constant 0 : i32
    return %c0_i32, %c0_i32_0 : i32, i32
  }
  func.func @transform_17(%arg0: i32) -> (i32, i32) {
    %c0_i32 = arith.constant 0 : i32
    %c0_i32_0 = arith.constant 0 : i32
    %c0_i32_1 = arith.constant 0 : i32
    return %c0_i32, %c0_i32_0 : i32, i32
  }
  func.func @transform_18(%arg0: i32) -> (i32, i32) {
    %c0_i32 = arith.constant 0 : i32
    %c0_i32_0 = arith.constant 0 : i32
    %c0_i32_1 = arith.constant 0 : i32
    return %c0_i32, %c0_i32_0 : i32, i32
  }
  func.func @transform_19(%arg0: i32) -> (i32, i32) {
    %c0_i32 = arith.constant 0 : i32
    %c0_i32_0 = arith.constant 0 : i32
    return %arg0, %c0_i32 : i32, i32
  }
}

</mosaic_0001>

<bundles_post_ra>
// kernel: linear_network_forward.1
= control target key start
LH: loop header
LB: loop body
LE: loop exit
PB: predicated region body
PF: predicated region fallthrough
CT: control target
= control target key end

     0   :  { %s10810_s0 = inlined_call_operand.vmem [shape: f32[64,784], index: 0, kind: input, shape index: {}]   ;;  %s10811_s1 = inlined_call_operand.hbm [shape: bf16[784,768], index: 1, kind: input, shape index: {}]   ;;  %s10812_s2 = inlined_call_operand.hbm [shape: f32[1,768], index: 2, kind: input, shape index: {}]   ;;  %s10813_s3 = inlined_call_operand.hbm [shape: bf16[768,512], index: 3, kind: input, shape index: {}]   ;;  %s10814_s4 = inlined_call_operand.hbm [shape: f32[1,512], index: 4, kind: input, shape index: {}]   ;;  %s10815_s5 = inlined_call_operand.hbm [shape: bf16[512,512], index: 5, kind: input, shape index: {}]   ;;  %s10816_s6 = inlined_call_operand.hbm [shape: f32[1,512], index: 6, kind: input, shape index: {}]   ;;  %s10817_s7 = inlined_call_operand.hbm [shape: bf16[512,256], index: 7, kind: input, shape index: {}]   ;;  %s10818_s8 = inlined_call_operand.hbm [shape: f32[1,256], index: 8, kind: input, shape index: {}]   ;;  %s10819_s9 = inlined_call_operand.hbm [shape: bf16[256,128], index: 9, kind: input, shape index: {}]   ;;  %s10820_s10 = inlined_call_operand.hbm [shape: f32[1,128], index: 10, kind: input, shape index: {}]   ;;  %s10821_s11 = inlined_call_operand.hbm [shape: bf16[128,128], index: 11, kind: input, shape index: {}]   ;;  %s10822_s12 = inlined_call_operand.hbm [shape: f32[1,128], index: 12, kind: input, shape index: {}]   ;;  %s10823_s13 = inlined_call_operand.hbm [shape: bf16[128,128], index: 13, kind: input, shape index: {}]   ;;  %s10824_s14 = inlined_call_operand.hbm [shape: f32[1,128], index: 14, kind: input, shape index: {}]   ;;  %s10825_s15 = inlined_call_operand.hbm [shape: bf16[128,128], index: 15, kind: input, shape index: {}]   ;;  %s10826_s16 = inlined_call_operand.hbm [shape: f32[1,128], index: 16, kind: input, shape index: {}]   ;;  %s10827_s17 = inlined_call_operand.hbm [shape: bf16[128,128], index: 17, kind: input, shape index: {}]   ;;  %s10828_s18 = inlined_call_operand.hbm [shape: f32[1,128], index: 18, kind: input, shape index: {}]   ;;  %s10829_s19 = inlined_call_operand.vmem [shape: f32[64,128], index: 19, kind: output, shape index: {}]  }
   0x1   :  { %10834 = sst [smem:[#allocation40_spill]] %s10810_s0 }
   0x2   :  { %10835 = sst [smem:[#allocation41_spill]] %s10811_s1 }
   0x3   :  { %10836 = sst [smem:[#allocation42_spill]] %s10812_s2 }
   0x4   :  { %10837 = sst [smem:[#allocation43_spill]] %s10813_s3 }
   0x5   :  { %10838 = sst [smem:[#allocation44_spill]] %s10814_s4 }
   0x6   :  { %10839 = sst [smem:[#allocation45_spill]] %s10816_s6 }
   0x7   :  { %24 = vsyncpa [#allocation3], 0 }
   0x8   :  { %25 = vsyncpa [#allocation5], 0 }
   0x9   :  { %26 = vsyncpa [#allocation8], 0 }
   0xa   :  { %27 = vsyncpa [#allocation11], 0 }
   0xb   :  { %28 = vsyncpa [#allocation14], 0 }
   0xc   :  { %29 = vsyncpa [#allocation17], 0 }
   0xd   :  { %30 = vsyncpa [#allocation20], 0 }
   0xe   :  { %31 = vsyncpa [#allocation23], 0 }
   0xf   :  { %32 = vsyncpa [#allocation26], 0 }
  0x10   :  { %33 = vsyncpa [#allocation29], 0  ;;  %s10257_s0 = smov 0  }
  0x11 LB: > { %s10130_s30 = smov [#allocation4]   ;;  %s10833_s21 = sadd.s32 4294967295, %s10128_s0   ;;  %s10128_s0 = sphi %s10257_s0, %s39_s0  }
  0x12   : > { %s500_s20 = sshll.u32 %s10130_s30, 4  ;;  %p7419_p0 = scmp.ge.s32.totalorder %s10128_s0, 1  ;;  %s501_s20 = int_to_ptr.vmem [resolvable:$true] %s500_s20 }
  0x13   : > { %p474_p1 = scmp.lt.s32.totalorder %s10128_s0, 3  ;;  %p10267_p2 = scmp.eq.s32.totalorder %s10833_s21, 0 }
  0x14   : > { %s10131_s2 = smov [#allocation7]   ;;  %s10132_s24 = smov [#allocation10]  }
  0x15   : > { %s10840_s1 = scalar_select %p10267_p2, 1, 0 }
  0x16   : > { %p10271_p3 = pnand %p7419_p0, %p474_p1  ;;  %s524_s23 = sshll.u32 %s10131_s2, 4  ;;  %s525_s23 = int_to_ptr.vmem [resolvable:$true] %s524_s23 }
  0x17   : > { %s548_s25 = sshll.u32 %s10132_s24, 4  ;;  %s10133_s26 = smov [#allocation13]   ;;  %s10283_s25 = int_to_ptr.vmem [resolvable:$true] %s548_s25 }
  0x18   : > { %s10841_s22 = scalar_select %p10271_p3, 1, 0 }
  0x19   : > { %p8422_p4 = pneg %p10271_p3  ;;  %s572_s27 = sshll.u32 %s10133_s26, 4  ;;  %s10285_s27 = int_to_ptr.vmem [resolvable:$true] %s572_s27 }
  0x1a   : > { %s9625_s29 = scalar_lea.vmem %s501_s20, 96  ;;  %p9633_p10 = scmp.lt.s32.totalorder %s501_s20, %s501_s20 }
  0x1b   : > { %p10279_p5 = pnand %p10267_p2, %p8422_p4  ;;  %p9626_p7 = scmp.ne.s32.totalorder %s501_s20, %s9625_s29 }
  0x1c   : > { %p9634_p11 = scmp.lt.s32.totalorder %s9625_s29, %s9625_s29 }
  0x1d   : > { %p10289_p6 = pneg %p10279_p5 }
  0x1e   : > { %p9635_p12 = por %p9634_p11, %p9633_p10 }
  0x1f   : > { %p9628_p8 = pnand %p9626_p7, %p10289_p6 }
  0x21   : > { %p9629_p9 = pneg %p9628_p8 }
  0x23   : > { %p9636_p13 = pnand %p9635_p12, %p9629_p9 }
  0x25   : > { %9639 = shalt.err (!%p9636_p13)
}
  0x26   : > { %s10844_s24 = sld [smem:[#allocation42_spill]]  ;;  %s9651_s26 = scalar_lea.vmem %s525_s23, 64 }
  0x27   : > { %p9652_p0 = scmp.ne.s32.totalorder %s525_s23, %s9651_s26  ;;  %p9659_p2 = scmp.lt.s32.totalorder %s525_s23, %s525_s23 }
  0x28   : > { %p9660_p7 = scmp.lt.s32.totalorder %s9651_s26, %s9651_s26 }
  0x29   : > { %p9654_p1 = pnand %p9652_p0, %p10289_p6 }
  0x2a   : > { %p9661_p8 = por %p9660_p7, %p9659_p2 }
  0x2b   : > { %p9655_p4 = pneg %p9654_p1 }
  0x2c   : > { %8428 = dma.hbm_to_vmem [thread:$0]  (!%p10279_p5), %s10844_s24, 96, %s501_s20, [#allocation5]  }
  0x2d   : > { %p9662_p3 = pnand %p9661_p8, %p9655_p4 }
  0x2f   : > { %9665 = shalt.err (!%p9662_p3)
}
  0x30   : > { %s10845_s4 = sld [smem:[#allocation44_spill]]  ;;  %s9677_s20 = scalar_lea.vmem %s10283_s25, 64 }
  0x31   : > { %p9678_p9 = scmp.ne.s32.totalorder %s10283_s25, %s9677_s20  ;;  %p9685_p12 = scmp.lt.s32.totalorder %s10283_s25, %s10283_s25 }
  0x32   : > { %p9686_p2 = scmp.lt.s32.totalorder %s9677_s20, %s9677_s20 }
  0x33   : > { %p9680_p10 = pnand %p9678_p9, %p10289_p6 }
  0x34   : > { %p9687_p13 = por %p9686_p2, %p9685_p12 }
  0x35   : > { %p9681_p11 = pneg %p9680_p10 }
  0x36   : > { %8434 = dma.hbm_to_vmem [thread:$0]  (!%p10279_p5), %s10845_s4, 64, %s525_s23, [#allocation8]  }
  0x37   : > { %p9688_p3 = pnand %p9687_p13, %p9681_p11 }
  0x39   : > { %9691 = shalt.err (!%p9688_p3)
}
  0x3a   : > { %s10846_s6 = sld [smem:[#allocation45_spill]]  ;;  %s9703_s23 = scalar_lea.vmem %s10285_s27, 32 }
  0x3b   : > { %p9704_p0 = scmp.ne.s32.totalorder %s10285_s27, %s9703_s23  ;;  %p9711_p7 = scmp.lt.s32.totalorder %s10285_s27, %s10285_s27 }
  0x3c   : > { %p9712_p8 = scmp.lt.s32.totalorder %s9703_s23, %s9703_s23 }
  0x3d   : > { %p9706_p1 = pnand %p9704_p0, %p10289_p6 }
  0x3e   : > { %p9713_p9 = por %p9712_p8, %p9711_p7 }
  0x3f   : > { %p9707_p4 = pneg %p9706_p1 }
  0x40   : > { %8440 = dma.hbm_to_vmem [thread:$0]  (!%p10279_p5), %s10846_s6, 64, %s10283_s25, [#allocation11]  }
  0x41   : > { %p9714_p10 = pnand %p9713_p9, %p9707_p4 }
  0x43   : > { %9717 = shalt.err (!%p9714_p10)
}
  0x44   : > { %8446 = dma.hbm_to_vmem [thread:$0]  (!%p10279_p5), %s10818_s8, 32, %s10285_s27, [#allocation14]  }
  0x45   : > { %s10134_s25 = smov [#allocation16]   ;;  %s10135_s29 = smov [#allocation19]  }
  0x46   : > { %s596_s26 = sshll.u32 %s10134_s25, 4  ;;  %s620_s20 = sshll.u32 %s10135_s29, 4  ;;  %s597_s26 = int_to_ptr.vmem [resolvable:$true] %s596_s26  ;;  %s621_s20 = int_to_ptr.vmem [resolvable:$true] %s620_s20 }
  0x47   : > { %s9729_s21 = scalar_lea.vmem %s597_s26, 16  ;;  %s9736_s30 = scalar_lea.vmem %s597_s26, 32 }
  0x48   : > { %p9730_p11 = scmp.ne.s32.totalorder %s597_s26, %s9729_s21  ;;  %p9737_p13 = scmp.lt.s32.totalorder %s597_s26, %s597_s26 }
  0x49   : > { %p9738_p3 = scmp.lt.s32.totalorder %s9736_s30, %s9729_s21 }
  0x4a   : > { %p9732_p12 = pnand %p9730_p11, %p10289_p6 }
  0x4b   : > { %p9739_p0 = por %p9738_p3, %p9737_p13 }
  0x4c   : > { %p9733_p2 = pneg %p9732_p12 }
  0x4e   : > { %p9740_p1 = pnand %p9739_p0, %p9733_p2 }
  0x50   : > { %9743 = shalt.err (!%p9740_p1)
}
  0x51   : > { %8452 = dma.hbm_to_vmem [thread:$0]  (!%p10279_p5), %s10820_s10, 16, %s597_s26, [#allocation17]  }
  0x52   : > { %s9755_s2 = scalar_lea.vmem %s621_s20, 16  ;;  %s9762_s24 = scalar_lea.vmem %s621_s20, 32 }
  0x53   : > { %p9756_p4 = scmp.ne.s32.totalorder %s621_s20, %s9755_s2  ;;  %p9763_p9 = scmp.lt.s32.totalorder %s621_s20, %s621_s20 }
  0x54   : > { %p9764_p10 = scmp.lt.s32.totalorder %s9762_s24, %s9755_s2 }
  0x55   : > { %p9758_p7 = pnand %p9756_p4, %p10289_p6 }
  0x56   : > { %p9765_p11 = por %p9764_p10, %p9763_p9 }
  0x57   : > { %p9759_p8 = pneg %p9758_p7 }
  0x59   : > { %p9766_p12 = pnand %p9765_p11, %p9759_p8 }
  0x5b   : > { %9769 = shalt.err (!%p9766_p12)
}
  0x5c   : > { %8458 = dma.hbm_to_vmem [thread:$0]  (!%p10279_p5), %s10822_s12, 16, %s621_s20, [#allocation20]  }
  0x5d   : > { %s10136_s26 = smov [#allocation22]   ;;  %s10137_s30 = smov [#allocation25]  }
  0x5e   : > { %s644_s21 = sshll.u32 %s10136_s26, 4  ;;  %s668_s23 = sshll.u32 %s10137_s30, 4  ;;  %s645_s21 = int_to_ptr.vmem [resolvable:$true] %s644_s21  ;;  %s669_s23 = int_to_ptr.vmem [resolvable:$true] %s668_s23 }
  0x5f   : > { %s9781_s27 = scalar_lea.vmem %s645_s21, 16  ;;  %s9788_s2 = scalar_lea.vmem %s645_s21, 32 }
  0x60   : > { %p9782_p2 = scmp.ne.s32.totalorder %s645_s21, %s9781_s27  ;;  %p9789_p0 = scmp.lt.s32.totalorder %s645_s21, %s645_s21 }
  0x61   : > { %p9790_p1 = scmp.lt.s32.totalorder %s9788_s2, %s9781_s27 }
  0x62   : > { %p9784_p13 = pnand %p9782_p2, %p10289_p6 }
  0x63   : > { %p9791_p4 = por %p9790_p1, %p9789_p0 }
  0x64   : > { %p9785_p3 = pneg %p9784_p13 }
  0x66   : > { %p9792_p7 = pnand %p9791_p4, %p9785_p3 }
  0x68   : > { %9795 = shalt.err (!%p9792_p7)
}
  0x69   : > { %8464 = dma.hbm_to_vmem [thread:$0]  (!%p10279_p5), %s10824_s14, 16, %s645_s21, [#allocation23]  }
  0x6a   : > { %s9807_s25 = scalar_lea.vmem %s669_s23, 16  ;;  %s9814_s29 = scalar_lea.vmem %s669_s23, 32 }
  0x6b   : > { %p9808_p8 = scmp.ne.s32.totalorder %s669_s23, %s9807_s25  ;;  %p9815_p11 = scmp.lt.s32.totalorder %s669_s23, %s669_s23 }
  0x6c   : > { %p9816_p12 = scmp.lt.s32.totalorder %s9814_s29, %s9807_s25 }
  0x6d   : > { %p9810_p9 = pnand %p9808_p8, %p10289_p6 }
  0x6e   : > { %p9817_p2 = por %p9816_p12, %p9815_p11 }
  0x6f   : > { %p9811_p10 = pneg %p9810_p9 }
  0x71   : > { %p9818_p13 = pnand %p9817_p2, %p9811_p10 }
  0x73   : > { %9821 = shalt.err (!%p9818_p13)
}
  0x74   : > { %8470 = dma.hbm_to_vmem [thread:$0]  (!%p10279_p5), %s10826_s16, 16, %s669_s23, [#allocation26]  }
  0x75   : > { %s10138_s21 = smov [#allocation2]  }
  0x76   : > { %s486_s27 = sshll.u32 %s10138_s21, 4  ;;  %s487_s27 = int_to_ptr.vmem [resolvable:$true] %s486_s27 }
  0x77   : > { %s9833_s2 = scalar_lea.vmem %s487_s27, 37632  ;;  %p9841_p4 = scmp.lt.s32.totalorder %s487_s27, %s487_s27 }
  0x78   : > { %p9834_p3 = scmp.ne.s32.totalorder %s487_s27, %s9833_s2  ;;  %p9842_p7 = scmp.lt.s32.totalorder %s9833_s2, %s9833_s2 }
  0x7a   : > { %p9836_p0 = pnand %p9834_p3, %p10289_p6  ;;  %p9843_p8 = por %p9842_p7, %p9841_p4 }
  0x7c   : > { %p9837_p1 = pneg %p9836_p0 }
  0x7e   : > { %p9844_p9 = pnand %p9843_p8, %p9837_p1 }
  0x80   : > { %9847 = shalt.err (!%p9844_p9)
}
  0x81   : > { %s10139_s24 = smov 384   ;;  %s10140_s20 = smov 24  }
  0x82   : > { %s10847_s29 = sld [smem:[#allocation41_spill]]  ;;  %s10141_s26 = smov [#allocation6]  }
  0x83   : > { %s510_s30 = sshll.u32 %s10141_s26, 4  ;;  %s511_s30 = int_to_ptr.vmem [resolvable:$true] %s510_s30 }
  0x84   : > { %s9859_s21 = scalar_lea.vmem %s511_s30, 24576  ;;  %p9867_p2 = scmp.lt.s32.totalorder %s511_s30, %s511_s30 }
  0x85   : > { %p9860_p10 = scmp.ne.s32.totalorder %s511_s30, %s9859_s21  ;;  %p9868_p13 = scmp.lt.s32.totalorder %s9859_s21, %s9859_s21 }
  0x87   : > { %p9862_p11 = pnand %p9860_p10, %p10289_p6  ;;  %p9869_p3 = por %p9868_p13, %p9867_p2 }
  0x88   : > { %8425 = dma.hbm_to_vmem [thread:$0]  (!%p10279_p5), %s10847_s29, 37632, %s487_s27, [#allocation3], %s10139_s24, %s10139_s24, %s10140_s20  }
  0x89   : > { %p9863_p12 = pneg %p9862_p11 }
  0x8b   : > { %p9870_p0 = pnand %p9869_p3, %p9863_p12 }
  0x8d   : > { %9873 = shalt.err (!%p9870_p0)
}
  0x8e   : > { %s10142_s2 = smov 256   ;;  %s10143_s4 = smov 16  }
  0x8f   : > { %s10848_s24 = sld [smem:[#allocation43_spill]]  ;;  %s10144_s20 = smov [#allocation9]  }
  0x90   : > { %s534_s23 = sshll.u32 %s10144_s20, 4  ;;  %s10145_s29 = smov [#allocation12]   ;;  %s535_s23 = int_to_ptr.vmem [resolvable:$true] %s534_s23 }
  0x91   : > { %s558_s26 = sshll.u32 %s10145_s29, 4  ;;  %s9885_s6 = scalar_lea.vmem %s535_s23, 16384  ;;  %s559_s26 = int_to_ptr.vmem [resolvable:$true] %s558_s26 }
  0x92   : > { %p9886_p1 = scmp.ne.s32.totalorder %s535_s23, %s9885_s6  ;;  %p9893_p8 = scmp.lt.s32.totalorder %s535_s23, %s535_s23 }
  0x93   : > { %p9894_p9 = scmp.lt.s32.totalorder %s9885_s6, %s9885_s6 }
  0x94   : > { %p9888_p4 = pnand %p9886_p1, %p10289_p6 }
  0x95   : > { %8431 = dma.hbm_to_vmem [thread:$0]  (!%p10279_p5), %s10848_s24, 24576, %s511_s30, [#allocation5], %s10142_s2, %s10142_s2, %s10143_s4  }
  0x96   : > { %p9889_p7 = pneg %p9888_p4  ;;  %p9895_p10 = por %p9894_p9, %p9893_p8 }
  0x98   : > { %p9896_p11 = pnand %p9895_p10, %p9889_p7 }
  0x9a   : > { %9899 = shalt.err (!%p9896_p11)
}
  0x9b   : > { %8437 = dma.hbm_to_vmem [thread:$0]  (!%p10279_p5), %s10815_s5, 16384, %s535_s23, [#allocation8], %s10142_s2, %s10142_s2, %s10143_s4  }
  0x9c   : > { %s9911_s30 = scalar_lea.vmem %s559_s26, 8192  ;;  %p9919_p3 = scmp.lt.s32.totalorder %s559_s26, %s559_s26 }
  0x9d   : > { %p9912_p12 = scmp.ne.s32.totalorder %s559_s26, %s9911_s30  ;;  %p9920_p0 = scmp.lt.s32.totalorder %s9911_s30, %s9911_s30 }
  0x9f   : > { %p9914_p2 = pnand %p9912_p12, %p10289_p6  ;;  %p9921_p1 = por %p9920_p0, %p9919_p3 }
  0xa1   : > { %p9915_p13 = pneg %p9914_p2 }
  0xa3   : > { %p9922_p4 = pnand %p9921_p1, %p9915_p13 }
  0xa5   : > { %9925 = shalt.err (!%p9922_p4)
}
  0xa6   : > { %s10146_s6 = smov 128   ;;  %s10147_s27 = smov 8  }
  0xa7   : > { %8443 = dma.hbm_to_vmem [thread:$0]  (!%p10279_p5), %s10817_s7, 8192, %s559_s26, [#allocation11], %s10146_s6, %s10146_s6, %s10147_s27  }
  0xa8   : > { %s10148_s4 = smov [#allocation15]  }
  0xa9   : > { %s582_s2 = sshll.u32 %s10148_s4, 4  ;;  %s583_s2 = int_to_ptr.vmem [resolvable:$true] %s582_s2 }
  0xaa   : > { %s9937_s23 = scalar_lea.vmem %s583_s2, 2048  ;;  %p9945_p10 = scmp.lt.s32.totalorder %s583_s2, %s583_s2 }
  0xab   : > { %p9938_p7 = scmp.ne.s32.totalorder %s583_s2, %s9937_s23  ;;  %p9946_p11 = scmp.lt.s32.totalorder %s9937_s23, %s9937_s23 }
  0xad   : > { %p9940_p8 = pnand %p9938_p7, %p10289_p6  ;;  %p9947_p12 = por %p9946_p11, %p9945_p10 }
  0xaf   : > { %p9941_p9 = pneg %p9940_p8 }
  0xb1   : > { %p9948_p2 = pnand %p9947_p12, %p9941_p9 }
  0xb3   : > { %9951 = shalt.err (!%p9948_p2)
}
  0xb4   : > { %s10149_s29 = smov 64   ;;  %s10150_s21 = smov 4  }
  0xb5   : > { %8449 = dma.hbm_to_vmem [thread:$0]  (!%p10279_p5), %s10819_s9, 2048, %s583_s2, [#allocation14], %s10149_s29, %s10149_s29, %s10150_s21  }
  0xb6   : > { %s10151_s30 = smov [#allocation18]   ;;  %s10152_s27 = smov [#allocation21]  }
  0xb7   : > { %s606_s6 = sshll.u32 %s10151_s30, 4  ;;  %s630_s24 = sshll.u32 %s10152_s27, 4  ;;  %s607_s6 = int_to_ptr.vmem [resolvable:$true] %s606_s6  ;;  %s631_s24 = int_to_ptr.vmem [resolvable:$true] %s630_s24 }
  0xb8   : > { %s9963_s20 = scalar_lea.vmem %s607_s6, 1024  ;;  %p9971_p1 = scmp.lt.s32.totalorder %s607_s6, %s607_s6 }
  0xb9   : > { %p9964_p13 = scmp.ne.s32.totalorder %s607_s6, %s9963_s20  ;;  %p9972_p4 = scmp.lt.s32.totalorder %s9963_s20, %s9963_s20 }
  0xbb   : > { %p9966_p3 = pnand %p9964_p13, %p10289_p6  ;;  %p9973_p7 = por %p9972_p4, %p9971_p1 }
  0xbd   : > { %p9967_p0 = pneg %p9966_p3 }
  0xbf   : > { %p9974_p8 = pnand %p9973_p7, %p9967_p0 }
  0xc1   : > { %9977 = shalt.err (!%p9974_p8)
}
  0xc2   : > { %8455 = dma.hbm_to_vmem [thread:$0]  (!%p10279_p5), %s10821_s11, 1024, %s607_s6, [#allocation17], %s10149_s29, %s10149_s29, %s10150_s21  }
  0xc3   : > { %s9989_s23 = scalar_lea.vmem %s631_s24, 1024  ;;  %p9997_p12 = scmp.lt.s32.totalorder %s631_s24, %s631_s24 }
  0xc4   : > { %p9990_p9 = scmp.ne.s32.totalorder %s631_s24, %s9989_s23  ;;  %p9998_p2 = scmp.lt.s32.totalorder %s9989_s23, %s9989_s23 }
  0xc6   : > { %p9992_p10 = pnand %p9990_p9, %p10289_p6  ;;  %p9999_p13 = por %p9998_p2, %p9997_p12 }
  0xc8   : > { %p9993_p11 = pneg %p9992_p10 }
  0xca   : > { %p10000_p3 = pnand %p9999_p13, %p9993_p11 }
  0xcc   : > { %10003 = shalt.err (!%p10000_p3)
}
  0xcd   : > { %8461 = dma.hbm_to_vmem [thread:$0]  (!%p10279_p5), %s10823_s13, 1024, %s631_s24, [#allocation20], %s10149_s29, %s10149_s29, %s10150_s21  }
  0xce   : > { %s10153_s30 = smov [#allocation24]   ;;  %s10154_s27 = smov [#allocation27]  }
  0xcf   : > { %s654_s6 = sshll.u32 %s10153_s30, 4  ;;  %s678_s20 = sshll.u32 %s10154_s27, 4  ;;  %s655_s6 = int_to_ptr.vmem [resolvable:$true] %s654_s6  ;;  %s679_s20 = int_to_ptr.vmem [resolvable:$true] %s678_s20 }
  0xd0   : > { %s10015_s4 = scalar_lea.vmem %s655_s6, 1024  ;;  %p10023_p7 = scmp.lt.s32.totalorder %s655_s6, %s655_s6 }
  0xd1   : > { %p10016_p0 = scmp.ne.s32.totalorder %s655_s6, %s10015_s4  ;;  %p10024_p8 = scmp.lt.s32.totalorder %s10015_s4, %s10015_s4 }
  0xd3   : > { %p10018_p1 = pnand %p10016_p0, %p10289_p6  ;;  %p10025_p9 = por %p10024_p8, %p10023_p7 }
  0xd5   : > { %p10019_p4 = pneg %p10018_p1 }
  0xd7   : > { %p10026_p10 = pnand %p10025_p9, %p10019_p4 }
  0xd9   : > { %10029 = shalt.err (!%p10026_p10)
}
  0xda   : > { %8467 = dma.hbm_to_vmem [thread:$0]  (!%p10279_p5), %s10825_s15, 1024, %s655_s6, [#allocation23], %s10149_s29, %s10149_s29, %s10150_s21  }
  0xdb   : > { %s10041_s23 = scalar_lea.vmem %s679_s20, 1024  ;;  %p10049_p13 = scmp.lt.s32.totalorder %s679_s20, %s679_s20 }
  0xdc   : > { %p10042_p11 = scmp.ne.s32.totalorder %s679_s20, %s10041_s23  ;;  %p10050_p3 = scmp.lt.s32.totalorder %s10041_s23, %s10041_s23 }
  0xde   : > { %p10044_p12 = pnand %p10042_p11, %p10289_p6  ;;  %p10051_p0 = por %p10050_p3, %p10049_p13 }
  0xe0   : > { %p10045_p2 = pneg %p10044_p12 }
  0xe2   : > { %p10052_p1 = pnand %p10051_p0, %p10045_p2 }
  0xe4   : > { %10055 = shalt.err (!%p10052_p1)
}
  0xe5   : > { %8473 = dma.hbm_to_vmem [thread:$0]  (!%p10279_p5), %s10827_s17, 1024, %s679_s20, [#allocation26], %s10149_s29, %s10149_s29, %s10150_s21  }
  0xe6   : > { %s10155_s30 = smov [#allocation28]  }
  0xe7   : > { %s692_s6 = sshll.u32 %s10155_s30, 4  ;;  %s693_s6 = int_to_ptr.vmem [resolvable:$true] %s692_s6 }
  0xe8   : > { %s10067_s27 = scalar_lea.vmem %s693_s6, 16  ;;  %s10074_s4 = scalar_lea.vmem %s693_s6, 32 }
  0xe9   : > { %p10068_p4 = scmp.ne.s32.totalorder %s693_s6, %s10067_s27  ;;  %p10075_p9 = scmp.lt.s32.totalorder %s693_s6, %s693_s6 }
  0xea   : > { %p10076_p10 = scmp.lt.s32.totalorder %s10074_s4, %s10067_s27 }
  0xeb   : > { %p10070_p7 = pnand %p10068_p4, %p10289_p6 }
  0xec   : > { %p10077_p11 = por %p10076_p10, %p10075_p9 }
  0xed   : > { %p10071_p8 = pneg %p10070_p7 }
  0xef   : > { %p10078_p12 = pnand %p10077_p11, %p10071_p8 }
  0xf1   : > { %10081 = shalt.err (!%p10078_p12)
}
  0xf2   : > { %8476 = dma.hbm_to_vmem [thread:$0]  (!%p10279_p5), %s10828_s18, 16, %s693_s6, [#allocation29]  }
  0xf3   : > { %p10849_p2 = scmp.ne.s32.totalorder %s10841_s22, 0 }
  0xf4   : > { %p10850_p13 = scmp.ne.s32.totalorder (!%p10849_p2), %s10840_s1, 0 }
  0xf5   : > { %715 = sbr.rel (%p10849_p2) target bundleno = 2607 (0xa2f), region = 96 }
  0xfa   : > { %10087 = dma.done.wait (%p10850_p13), [#allocation3], 37632  }
  0xfb   : > { %10089 = vsyncadd (%p10850_p13), [#allocation3], 4294929664 }
  0xfc   : > { %10091 = dma.done.wait (%p10850_p13), [#allocation5], 24672  }
  0xfd   : > { %10093 = vsyncadd (%p10850_p13), [#allocation5], 4294942624 }
  0xfe   : > { %10095 = dma.done.wait (%p10850_p13), [#allocation8], 16448  }
  0xff   : > { %10097 = vsyncadd (%p10850_p13), [#allocation8], 4294950848 }
 0x100   : > { %10099 = dma.done.wait (%p10850_p13), [#allocation11], 8256  }
 0x101   : > { %10101 = vsyncadd (%p10850_p13), [#allocation11], 4294959040 }
 0x102   : > { %10103 = dma.done.wait (%p10850_p13), [#allocation14], 2080  }
 0x103   : > { %10105 = vsyncadd (%p10850_p13), [#allocation14], 4294965216 }
 0x104   : > { %10107 = dma.done.wait (%p10850_p13), [#allocation17], 1040  }
 0x105   : > { %10109 = vsyncadd (%p10850_p13), [#allocation17], 4294966256 }
 0x106   : > { %10111 = dma.done.wait (%p10850_p13), [#allocation20], 1040  }
 0x107   : > { %10113 = vsyncadd (%p10850_p13), [#allocation20], 4294966256 }
 0x108   : > { %10115 = dma.done.wait (%p10850_p13), [#allocation23], 1040  }
 0x109   : > { %10117 = vsyncadd (%p10850_p13), [#allocation23], 4294966256 }
 0x10a   : > { %10119 = dma.done.wait (%p10850_p13), [#allocation26], 1040  }
 0x10b   : > { %10121 = vsyncadd (%p10850_p13), [#allocation26], 4294966256 }
 0x10c   : > { %10123 = dma.done.wait (%p10850_p13), [#allocation29], 16  }
 0x10d   : > { %10125 = vsyncadd (%p10850_p13), [#allocation29], 4294967280  ;;  %v8548_v0 = vld [vmem:[#allocation2 + $0x154] ss:$24 sps:$4 sm:$0xff]   ;;  %v8552_v2 = vld [vmem:[#allocation2 + $0x150] ss:$24 sps:$4 sm:$0xff]  }
 0x10e   : > { %v8550_v1 = vld [vmem:[#allocation2 + $0x454] ss:$24 sps:$4 sm:$0xff]   ;;  %2699 = vmatprep.subr.bf16.mxu0 %v8548_v0  ;;  %v8553_v3 = vld [vmem:[#allocation2 + $0x450] ss:$24 sps:$4 sm:$0xff]   ;;  %v8554_v4 = vld [vmem:[#allocation2 + $0x124] ss:$24 sps:$4 sm:$0xff]  }
 0x10f   : > { %2752 = vmatprep.subr.bf16.mxu1 %v8550_v1  ;;  %2700 = vmatpush1.bf16.msra.mxu0 %v8552_v2  ;;  %v8556_v5 = vld [vmem:[#allocation2 + $0x424] ss:$24 sps:$4 sm:$0xff]   ;;  %v8558_v6 = vld [vmem:[#allocation2 + $0x120] ss:$24 sps:$4 sm:$0xff]   ;;  %v8560_v8 = vld [vmem:[#allocation2 + $0xf4] ss:$24 sps:$4 sm:$0xff]  }
 0x110   : > { %2753 = vmatpush1.bf16.msra.mxu1 %v8553_v3  ;;  %2701 = vmatprep.subr.bf16.mxu0 %v8554_v4  ;;  %v8559_v7 = vld [vmem:[#allocation2 + $0x420] ss:$24 sps:$4 sm:$0xff]   ;;  %v8562_v9 = vld [vmem:[#allocation2 + $0x3f4] ss:$24 sps:$4 sm:$0xff]   ;;  %v8564_v10 = vld [vmem:[#allocation2 + $0xf0] ss:$24 sps:$4 sm:$0xff]  }
 0x111   : > { %2754 = vmatprep.subr.bf16.mxu1 %v8556_v5  ;;  %v8565_v11 = vld [vmem:[#allocation2 + $0x3f0] ss:$24 sps:$4 sm:$0xff]   ;;  %v8566_v12 = vld [vmem:[#allocation2 + $0xc4] ss:$24 sps:$4 sm:$0xff]   ;;  %v8570_v14 = vld [vmem:[#allocation2 + $0xc0] ss:$24 sps:$4 sm:$0xff]  }
 0x112   : > { %v8568_v13 = vld [vmem:[#allocation2 + $0x3c4] ss:$24 sps:$4 sm:$0xff]   ;;  %v8571_v15 = vld [vmem:[#allocation2 + $0x3c0] ss:$24 sps:$4 sm:$0xff]   ;;  %v8572_v16 = vld [vmem:[#allocation2 + $0x94] ss:$24 sps:$4 sm:$0xff]  }
 0x113   : > { %2702 = vmatpush1.bf16.msra.mxu0 %v8558_v6  ;;  %v8574_v17 = vld [vmem:[#allocation2 + $0x394] ss:$24 sps:$4 sm:$0xff]   ;;  %v8576_v18 = vld [vmem:[#allocation2 + $0x90] ss:$24 sps:$4 sm:$0xff]   ;;  %v8578_v20 = vld [vmem:[#allocation2 + $0x64] ss:$24 sps:$4 sm:$0xff]  }
 0x114   : > { %2755 = vmatpush1.bf16.msra.mxu1 %v8559_v7  ;;  %2703 = vmatprep.subr.bf16.mxu0 %v8560_v8  ;;  %v8577_v19 = vld [vmem:[#allocation2 + $0x390] ss:$24 sps:$4 sm:$0xff]   ;;  %v8580_v21 = vld [vmem:[#allocation2 + $0x364] ss:$24 sps:$4 sm:$0xff]   ;;  %v8582_v22 = vld [vmem:[#allocation2 + $0x60] ss:$24 sps:$4 sm:$0xff]  }
 0x115   : > { %2756 = vmatprep.subr.bf16.mxu1 %v8562_v9  ;;  %v8583_v23 = vld [vmem:[#allocation2 + $0x360] ss:$24 sps:$4 sm:$0xff]   ;;  %v8584_v24 = vld [vmem:[#allocation2 + $0x34] ss:$24 sps:$4 sm:$0xff]   ;;  %v8588_v26 = vld [vmem:[#allocation2 + $0x30] ss:$24 sps:$4 sm:$0xff]  }
 0x116   : > { %v8586_v25 = vld [vmem:[#allocation2 + $0x334] ss:$24 sps:$4 sm:$0xff]   ;;  %v8589_v27 = vld [vmem:[#allocation2 + $0x330] ss:$24 sps:$4 sm:$0xff]   ;;  %v8590_v28 = vld [vmem:[#allocation2 + $0x4] ss:$24 sps:$4 sm:$0xff]  }
 0x117   : > { %2704 = vmatpush1.bf16.msra.mxu0 %v8564_v10  ;;  %s10851_s1 = sadd.s32 4294967295, %s10128_s0   ;;  %v8592_v29 = vld [vmem:[#allocation2 + $0x304] ss:$24 sps:$4 sm:$0xff]   ;;  %v8594_v30 = vld [vmem:[#allocation2] ss:$24 sps:$4 sm:$0xff]   ;;  %s10852_s21 = sld [smem:[#allocation40_spill]] }
 0x118   : > { %2757 = vmatpush1.bf16.msra.mxu1 %v8565_v11  ;;  %2705 = vmatprep.subr.bf16.mxu0 %v8566_v12  ;;  %s7458_s22 = sshll.u32 %s10851_s1, 2  ;;  %v8595_v31 = vld [vmem:[#allocation2 + $0x300] ss:$24 sps:$4 sm:$0xff]   ;;  %v8596_v32 = vld [vmem:[#allocation2 + $0x2d4] ss:$24 sps:$4 sm:$0xff]   ;;  %vm2692_vm0 = vcmask 130048  }
 0x119   : > { %2758 = vmatprep.subr.bf16.mxu1 %v8568_v13  ;;  %p841_p5 = scmp.lt.s32.totalorder %s7458_s22, 7  ;;  %v8598_v33 = vld [vmem:[#allocation2 + $0x5d4] ss:$24 sps:$4 sm:$0xff]   ;;  %v8600_v34 = vld [vmem:[#allocation2 + $0x2d0] ss:$24 sps:$4 sm:$0xff]  }
 0x11a   : > { %v8601_v35 = vld [vmem:[#allocation2 + $0x5d0] ss:$24 sps:$4 sm:$0xff]   ;;  %v8602_v36 = vld [vmem:[#allocation2 + $0x2a4] ss:$24 sps:$4 sm:$0xff]   ;;  %v8606_v38 = vld [vmem:[#allocation2 + $0x2a0] ss:$24 sps:$4 sm:$0xff]  }
 0x11b   : > { %2706 = vmatpush1.bf16.msra.mxu0 %v8570_v14  ;;  %s10854_s22 = smov (!%p841_p5, %s7458_s22), 7  ;;  %v8604_v37 = vld [vmem:[#allocation2 + $0x5a4] ss:$24 sps:$4 sm:$0xff]   ;;  %v8607_v39 = vld [vmem:[#allocation2 + $0x5a0] ss:$24 sps:$4 sm:$0xff]  }
 0x11c   : > { %2759 = vmatpush1.bf16.msra.mxu1 %v8571_v15  ;;  %2707 = vmatprep.subr.bf16.mxu0 %v8572_v16  ;;  %s8349_s3 = smul.u32 56, %s10854_s22  ;;  %v8608_v40 = vld [vmem:[#allocation2 + $0x274] ss:$24 sps:$4 sm:$0xff]   ;;  %v8612_v42 = vld [vmem:[#allocation2 + $0x270] ss:$24 sps:$4 sm:$0xff]   ;;  %s7461_s23 = sshll.u32 %s10854_s22, 3 }
 0x11d   : > { %2760 = vmatprep.subr.bf16.mxu1 %v8574_v17  ;;  %v8610_v41 = vld [vmem:[#allocation2 + $0x574] ss:$24 sps:$4 sm:$0xff]   ;;  %v8613_v43 = vld [vmem:[#allocation2 + $0x570] ss:$24 sps:$4 sm:$0xff]   ;;  %v8614_v44 = vld [vmem:[#allocation2 + $0x244] ss:$24 sps:$4 sm:$0xff]   ;;  %s851_s30 = scalar_lea.vmem %s10829_s19, %s7461_s23 }
 0x11e   : > { %s10494_s20 = scalar_lea.vmem %s10852_s21, %s8349_s3  ;;  %v8616_v45 = vld [vmem:[#allocation2 + $0x544] ss:$24 sps:$4 sm:$0xff]   ;;  %v8618_v50 = vld [vmem:[#allocation2 + $0x240] ss:$24 sps:$4 sm:$0xff]   ;;  %v8620_v52 = vld [vmem:[#allocation2 + $0x214] ss:$24 sps:$4 sm:$0xff]  }
 0x11f   : > { %2708 = vmatpush1.bf16.msra.mxu0 %v8576_v18  ;;  %v855_v46 = vld [vmem:[%s10494_s20 + $0x8] sm:$0xff]  ;;  %v862_v47 = vld [vmem:[%s10494_s20 + $0x40] sm:$0xff]  ;;  %v857_v48 = vld [vmem:[%s10494_s20 + $0x18] sm:$0xff] }
 0x120   : > { %2761 = vmatpush1.bf16.msra.mxu1 %v8577_v19  ;;  %2709 = vmatprep.subr.bf16.mxu0 %v8578_v20  ;;  %v864_v49 = vld [vmem:[%s10494_s20 + $0x50] sm:$0xff]  ;;  %v8619_v51 = vld [vmem:[#allocation2 + $0x540] ss:$24 sps:$4 sm:$0xff]   ;;  %v10500_v53 = vpack.c.bf16 %v862_v47, %v855_v46  ;;  %v8626_v58 = vld [vmem:[#allocation2 + $0x1e4] ss:$24 sps:$4 sm:$0xff]  }
 0x121   : > { %2762 = vmatprep.subr.bf16.mxu1 %v8580_v21  ;;  %v10502_v54 = vpack.c.bf16 %v864_v49, %v857_v48  ;;  %v8622_v55 = vld [vmem:[#allocation2 + $0x514] ss:$24 sps:$4 sm:$0xff]   ;;  %v8624_v56 = vld [vmem:[#allocation2 + $0x210] ss:$24 sps:$4 sm:$0xff]   ;;  %v8628_v59 = vld [vmem:[#allocation2 + $0x4e4] ss:$24 sps:$4 sm:$0xff]  }
 0x122   : > { %2731 = vmatprep.mubr.bf16.mxu0 %v10500_v53  ;;  %v8625_v57 = vld [vmem:[#allocation2 + $0x510] ss:$24 sps:$4 sm:$0xff]   ;;  %v8630_v60 = vld [vmem:[#allocation2 + $0x1e0] ss:$24 sps:$4 sm:$0xff]   ;;  %v8632_v62 = vld [vmem:[#allocation2 + $0x1b4] ss:$24 sps:$4 sm:$0xff]  }
 0x123   : > { %2710 = vmatpush1.bf16.msra.mxu0 %v8582_v22  ;;  %2784 = vmatprep.mubr.bf16.mxu1 %v10502_v54  ;;  %v8631_v61 = vld [vmem:[#allocation2 + $0x4e0] ss:$24 sps:$4 sm:$0xff]   ;;  %v8634_v63 = vld [vmem:[#allocation2 + $0x4b4] ss:$24 sps:$4 sm:$0xff]   ;;  %v8636_v0 = vld [vmem:[#allocation2 + $0x1b0] ss:$24 sps:$4 sm:$0xff]  }
 0x124   : > { %2763 = vmatpush1.bf16.msra.mxu1 %v8583_v23  ;;  %2711 = vmatprep.subr.bf16.mxu0 %v8584_v24  ;;  %v8637_v1 = vld [vmem:[#allocation2 + $0x4b0] ss:$24 sps:$4 sm:$0xff]   ;;  %v8638_v2 = vld [vmem:[#allocation2 + $0x184] ss:$24 sps:$4 sm:$0xff]   ;;  %v8642_v4 = vld [vmem:[#allocation2 + $0x180] ss:$24 sps:$4 sm:$0xff]  }
 0x125   : > { %2764 = vmatprep.subr.bf16.mxu1 %v8586_v25  ;;  %v8640_v3 = vld [vmem:[#allocation2 + $0x484] ss:$24 sps:$4 sm:$0xff]   ;;  %v8643_v5 = vld [vmem:[#allocation2 + $0x480] ss:$24 sps:$4 sm:$0xff]   ;;  %v856_v8 = vld [vmem:[%s10494_s20 + $0x10] sm:$0xff] }
 0x126   : > { %v854_v6 = vld [vmem:[%s10494_s20] sm:$0xff]  ;;  %v861_v7 = vld [vmem:[%s10494_s20 + $0x38] sm:$0xff]  ;;  %v863_v9 = vld [vmem:[%s10494_s20 + $0x48] sm:$0xff] }
 0x127   : > { %2712 = vmatpush1.bf16.msra.mxu0 %v8588_v26  ;;  %v8646_v10 = vld [vmem:[#allocation2 + $0x754] ss:$24 sps:$4 sm:$0xff]   ;;  %v878_v12 = vld [vmem:[%s10494_s20 + $0xc0] sm:$0xff]  ;;  %v10512_v14 = vpack.c.bf16 %v861_v7, %v854_v6  ;;  %v10514_v15 = vpack.c.bf16 %v863_v9, %v856_v8  ;;  %v8644_v16 = vld [vmem:[#allocation2 + $0x750] ss:$24 sps:$4 sm:$0xff]  }
 0x128   : > { %2765 = vmatpush1.bf16.msra.mxu1 %v8589_v27  ;;  %2713 = vmatprep.subr.bf16.mxu0 %v8590_v28  ;;  %v871_v11 = vld [vmem:[%s10494_s20 + $0x88] sm:$0xff]  ;;  %v8655_v13 = vld [vmem:[#allocation2 + $0x904] ss:$24 sps:$4 sm:$0xff]   ;;  %v8653_v19 = vld [vmem:[#allocation2 + $0x900] ss:$24 sps:$4 sm:$0xff]  }
 0x129   : > { %2766 = vmatprep.subr.bf16.mxu1 %v8592_v29  ;;  %v10516_v17 = vpack.c.bf16 %v878_v12, %v871_v11  ;;  %v8649_v18 = vld [vmem:[#allocation2 + $0x724] ss:$24 sps:$4 sm:$0xff]   ;;  %v8647_v21 = vld [vmem:[#allocation2 + $0x720] ss:$24 sps:$4 sm:$0xff]   ;;  %v8652_v24 = vld [vmem:[#allocation2 + $0x6f4] ss:$24 sps:$4 sm:$0xff]  }
 0x12a   : > { %v8661_v20 = vld [vmem:[#allocation2 + $0x15c] ss:$24 sps:$4 sm:$0xff]   ;;  %v870_v22 = vld [vmem:[%s10494_s20 + $0x80] sm:$0xff]  ;;  %v8650_v26 = vld [vmem:[#allocation2 + $0x6f0] ss:$24 sps:$4 sm:$0xff]   ;;  %v10156_v29 = vmov 0  }
 0x12b   : > { %2714 = vmatpush1.bf16.msra.mxu0 %v8594_v30  ;;  %v877_v23 = vld [vmem:[%s10494_s20 + $0xb8] sm:$0xff]  ;;  %v860_v30 = vld [vmem:[%s10494_s20 + $0x30] sm:$0xff]  ;;  %v859_v49 = vld [vmem:[%s10494_s20 + $0x28] sm:$0xff] }
 0x12c   : > { %2767 = vmatpush1.bf16.msra.mxu1 %v8595_v31  ;;  %2715 = vmatprep.subr.bf16.mxu0 %v8596_v32  ;;  %v10523_v25 = vpack.c.bf16 %v877_v23, %v870_v22  ;;  %v8658_v27 = vld [vmem:[#allocation2 + $0x6c4] ss:$24 sps:$4 sm:$0xff]   ;;  %v8656_v28 = vld [vmem:[#allocation2 + $0x6c0] ss:$24 sps:$4 sm:$0xff]   ;;  %v867_v31 = vld [vmem:[%s10494_s20 + $0x68] sm:$0xff] }
 0x12d   : > { %2768 = vmatprep.subr.bf16.mxu1 %v8598_v33  ;;  %v8664_v32 = vld [vmem:[#allocation2 + $0x694] ss:$24 sps:$4 sm:$0xff]   ;;  %v869_v33 = vld [vmem:[%s10494_s20 + $0x78] sm:$0xff]  ;;  %v8698_v9 = vld [vmem:[#allocation2 + $0x870] ss:$24 sps:$4 sm:$0xff]  }
 0x12e   : > { %v8673_v46 = vld [vmem:[#allocation2 + $0xfc] ss:$24 sps:$4 sm:$0xff]   ;;  %v8671_v48 = vld [vmem:[#allocation2 + $0xf8] ss:$24 sps:$4 sm:$0xff]   ;;  %v8701_v12 = vld [vmem:[#allocation2 + $0x8] ss:$24 sps:$4 sm:$0xff]  }
 0x12f   : > { %2716 = vmatpush2.bf16.msra.mxu0 %v8600_v34  ;;  %v876_v34 = vld [vmem:[%s10494_s20 + $0xb0] sm:$0xff]  ;;  %v8706_v11 = vld [vmem:[#allocation2 + $0x844] ss:$24 sps:$4 sm:$0xff]   ;;  %v8713_v23 = vld [vmem:[#allocation2 + $0x2a8] ss:$24 sps:$4 sm:$0xff]  }
 0x130   : > { %2769 = vmatpush2.bf16.msra.mxu1 %v8601_v35  ;;  %2717 = vmatprep.subr.bf16.mxu0 %v8602_v36  ;;  %v868_v35 = vld [vmem:[%s10494_s20 + $0x70] sm:$0xff]  ;;  %v10532_v36 = vpack.c.bf16 %v867_v31, %v860_v30  ;;  %v8718_v22 = vld [vmem:[#allocation2 + $0x7e4] ss:$24 sps:$4 sm:$0xff]  }
 0x131   : > { %2770 = vmatprep.subr.bf16.mxu1 %v8604_v37  ;;  %v10534_v37 = vpack.c.bf16 %v876_v34, %v869_v33  ;;  %v8676_v47 = vld [vmem:[#allocation2 + $0x634] ss:$24 sps:$4 sm:$0xff]   ;;  %v8695_v8 = vld [vmem:[#allocation2 + $0x38] ss:$24 sps:$4 sm:$0xff]   ;;  %v8725_v33 = vld [vmem:[#allocation2 + $0x248] ss:$24 sps:$4 sm:$0xff]  }
 0x132   : > { %v8697_v6 = vld [vmem:[#allocation2 + $0x3c] ss:$24 sps:$4 sm:$0xff]   ;;  %v8722_v30 = vld [vmem:[#allocation2 + $0x7b0] ss:$24 sps:$4 sm:$0xff]   ;;  %v8727_v31 = vld [vmem:[#allocation2 + $0x24c] ss:$24 sps:$4 sm:$0xff]  }
 0x133   : > { %2718 = vmatpush2.bf16.msra.mxu0 %v8606_v38  ;;  %v875_v38 = vld [vmem:[%s10494_s20 + $0xa8] sm:$0xff]  ;;  %v8728_v34 = vld [vmem:[#allocation2 + $0x780] ss:$24 sps:$4 sm:$0xff]  }
 0x134   : > { %2771 = vmatpush2.bf16.msra.mxu1 %v8607_v39  ;;  %2719 = vmatprep.subr.bf16.mxu0 %v8608_v40  ;;  %v8659_v39 = vld [vmem:[#allocation2 + $0x158] ss:$24 sps:$4 sm:$0xff]   ;;  %v8700_v7 = vld [vmem:[#allocation2 + $0x874] ss:$24 sps:$4 sm:$0xff]  }
 0x135   : > { %2772 = vmatprep.subr.bf16.mxu1 %v8610_v41  ;;  %v8662_v40 = vld [vmem:[#allocation2 + $0x690] ss:$24 sps:$4 sm:$0xff]   ;;  %v10537_v41 = vpack.c.bf16 %v875_v38, %v868_v35  ;;  %v8733_v35 = vld [vmem:[#allocation2 + $0x21c] ss:$24 sps:$4 sm:$0xff]   ;;  %v858_v38 = vld [vmem:[%s10494_s20 + $0x20] sm:$0xff] }
 0x137   : > { %2720 = vmatpush2.bf16.msra.mxu0 %v8612_v42  ;;  %v8667_v42 = vld [vmem:[#allocation2 + $0x12c] ss:$24 sps:$4 sm:$0xff]  }
 0x138   : > { %2773 = vmatpush2.bf16.msra.mxu1 %v8613_v43  ;;  %2721 = vmatprep.subr.bf16.mxu0 %v8614_v44  ;;  %v8670_v43 = vld [vmem:[#allocation2 + $0x664] ss:$24 sps:$4 sm:$0xff]   ;;  %v8665_v44 = vld [vmem:[#allocation2 + $0x128] ss:$24 sps:$4 sm:$0xff]  }
 0x139   : > { %2774 = vmatprep.subr.bf16.mxu1 %v8616_v45  ;;  %v8668_v45 = vld [vmem:[#allocation2 + $0x660] ss:$24 sps:$4 sm:$0xff]  }
 0x13b   : > { %2722 = vmatpush2.bf16.msra.mxu0 %v8618_v50  ;;  %v866_v50 = vld [vmem:[%s10494_s20 + $0x60] sm:$0xff] }
 0x13c   : > { %2775 = vmatpush2.bf16.msra.mxu1 %v8619_v51  ;;  %2723 = vmatprep.subr.bf16.mxu0 %v8620_v52  ;;  %v8674_v51 = vld [vmem:[#allocation2 + $0x630] ss:$24 sps:$4 sm:$0xff]   ;;  %v10546_v52 = vpack.c.bf16 %v866_v50, %v859_v49 }
 0x13d   : > { %2776 = vmatprep.subr.bf16.mxu1 %v8622_v55  ;;  %v8679_v55 = vld [vmem:[#allocation2 + $0xcc] ss:$24 sps:$4 sm:$0xff]   ;;  %v8737_v49 = vld [vmem:[#allocation2 + $0x1e8] ss:$24 sps:$4 sm:$0xff]  }
 0x13e   : > { %v8740_v50 = vld [vmem:[#allocation2 + $0x428] ss:$24 sps:$4 sm:$0xff]  }
 0x13f   : > { %2724 = vmatpush2.bf16.msra.mxu0 %v8624_v56  ;;  %v8682_v56 = vld [vmem:[#allocation2 + $0x604] ss:$24 sps:$4 sm:$0xff]  }
 0x140   : > { %2777 = vmatpush2.bf16.msra.mxu1 %v8625_v57  ;;  %2725 = vmatprep.subr.bf16.mxu0 %v8626_v58  ;;  %v8677_v57 = vld [vmem:[#allocation2 + $0xc8] ss:$24 sps:$4 sm:$0xff]  }
 0x141   : > { %2778 = vmatprep.subr.bf16.mxu1 %v8628_v59  ;;  %v8680_v58 = vld [vmem:[#allocation2 + $0x600] ss:$24 sps:$4 sm:$0xff]   ;;  %v8685_v59 = vld [vmem:[#allocation2 + $0x9c] ss:$24 sps:$4 sm:$0xff]  }
 0x143   : > { %2726 = vmatpush2.bf16.msra.mxu0 %v8630_v60  ;;  %v8688_v60 = vld [vmem:[#allocation2 + $0x8d4] ss:$24 sps:$4 sm:$0xff]  }
 0x144   : > { %2779 = vmatpush2.bf16.msra.mxu1 %v8631_v61  ;;  %2727 = vmatprep.subr.bf16.mxu0 %v8632_v62  ;;  %v8683_v61 = vld [vmem:[#allocation2 + $0x98] ss:$24 sps:$4 sm:$0xff]  }
 0x145   : > { %2780 = vmatprep.subr.bf16.mxu1 %v8634_v63  ;;  %v8686_v62 = vld [vmem:[#allocation2 + $0x8d0] ss:$24 sps:$4 sm:$0xff]   ;;  %v8691_v63 = vld [vmem:[#allocation2 + $0x6c] ss:$24 sps:$4 sm:$0xff]  }
 0x147   : > { %2728 = vmatpush2.bf16.msra.mxu0 %v8636_v0  ;;  %v8694_v0 = vld [vmem:[#allocation2 + $0x8a4] ss:$24 sps:$4 sm:$0xff]  }
 0x148   : > { %2781 = vmatpush2.bf16.msra.mxu1 %v8637_v1  ;;  %2729 = vmatprep.subr.bf16.mxu0 %v8638_v2  ;;  %v874_v1 = vld [vmem:[%s10494_s20 + $0xa0] sm:$0xff]  ;;  %v881_v2 = vld [vmem:[%s10494_s20 + $0xd8] sm:$0xff] }
 0x149   : > { %2782 = vmatprep.subr.bf16.mxu1 %v8640_v3  ;;  %v10551_v3 = vpack.c.bf16 %v881_v2, %v874_v1  ;;  %v8752_v1 = vld [vmem:[#allocation2 + $0x3c8] ss:$24 sps:$4 sm:$0xff]   ;;  %v8757_v2 = vld [vmem:[#allocation2 + $0x75c] ss:$24 sps:$4 sm:$0xff]  }
 0x14b   : > { %2730 = vmatpush2.bf16.msra.mxu0 %v8642_v4  ;;  %v8689_v4 = vld [vmem:[#allocation2 + $0x68] ss:$24 sps:$4 sm:$0xff]  }
 0x14c   : > { %2783 = vmatpush2.bf16.msra.mxu1 %v8643_v5  ;;  %2805 = vmatprep.subr.bf16.mxu0 %v8646_v10  ;;  %v8692_v5 = vld [vmem:[#allocation2 + $0x8a0] ss:$24 sps:$4 sm:$0xff]   ;;  %v8703_v10 = vld [vmem:[#allocation2 + $0xc] ss:$24 sps:$4 sm:$0xff]  }
 0x14d   : > { %2872 = vmatprep.subr.bf16.mxu1 %v8655_v13  ;;  %v8704_v13 = vld [vmem:[#allocation2 + $0x840] ss:$24 sps:$4 sm:$0xff]  }
 0x14e   : > { %2732 = vmatmul.mubr.bf16.vlgmr.msra.gmra.mxu0 %v10512_v14 }
 0x14f   : > { %2785 = vmatmul.mubr.bf16.vlgmr.msra.gmra.mxu1 %v10514_v15  ;;  %2806 = vmatpush1.bf16.msra.mxu0 %v8644_v16  ;;  %v8709_v16 = vld [vmem:[#allocation2 + $0x2dc] ss:$24 sps:$4 sm:$0xff]  }
 0x150   : > { %2794 = vmatprep.mubr.bf16.mxu1 %v10516_v17  ;;  %2807 = vmatprep.subr.bf16.mxu0 %v8649_v18  ;;  %v8712_v18 = vld [vmem:[#allocation2 + $0x814] ss:$24 sps:$4 sm:$0xff]  }
 0x151   : > { %2873 = vmatpush1.bf16.msra.mxu1 %v8653_v19  ;;  %2741 = vmatprep.mubr.bf16.mxu0 %v10534_v37  ;;  %v8707_v19 = vld [vmem:[#allocation2 + $0x2d8] ss:$24 sps:$4 sm:$0xff]  }
 0x152   : > { %2911 = vmatprep.subr.bf16.mxu1 %v8661_v20  ;;  %v8710_v20 = vld [vmem:[#allocation2 + $0x810] ss:$24 sps:$4 sm:$0xff]  }
 0x153   : > { %2808 = vmatpush1.bf16.msra.mxu0 %v8647_v21  ;;  %v8715_v21 = vld [vmem:[#allocation2 + $0x2ac] ss:$24 sps:$4 sm:$0xff]  }
 0x154   : > { %2809 = vmatprep.subr.bf16.mxu0 %v8652_v24  ;;  %v8716_v24 = vld [vmem:[#allocation2 + $0x7e0] ss:$24 sps:$4 sm:$0xff]  }
 0x156   : > { %2742 = vmatmul.mubr.bf16.gmra.mxu0 %v10537_v41 }
 0x157   : > { %2795 = vmatmul.mubr.bf16.gmra.mxu1 %v10523_v25  ;;  %2810 = vmatpush1.bf16.msra.mxu0 %v8650_v26  ;;  %v8721_v26 = vld [vmem:[#allocation2 + $0x27c] ss:$24 sps:$4 sm:$0xff]  }
 0x158   : > { %2890 = vmatprep.mubr.bf16.mxu1 %v10156_v29  ;;  %2811 = vmatprep.subr.bf16.mxu0 %v8658_v27  ;;  %v8724_v27 = vld [vmem:[#allocation2 + $0x7b4] ss:$24 sps:$4 sm:$0xff]  }
 0x159   : > { %2837 = vmatprep.mubr.bf16.mxu0 %v10546_v52 }
 0x15b   : > { %2812 = vmatpush1.bf16.msra.mxu0 %v8656_v28  ;;  %v8719_v28 = vld [vmem:[#allocation2 + $0x278] ss:$24 sps:$4 sm:$0xff]  }
 0x15c   : > { %2813 = vmatprep.subr.bf16.mxu0 %v8664_v32  ;;  %v8730_v32 = vld [vmem:[#allocation2 + $0x784] ss:$24 sps:$4 sm:$0xff]  }
 0x15f   : > { %7756 = vmatmul.mubr.msk.bf16.vlgmr.msra.gmra.mxu1 %vm2692_vm0, %v10532_v36  ;;  %2814 = vmatpush1.bf16.msra.mxu0 %v8662_v40  ;;  %v8736_v40 = vld [vmem:[#allocation2 + $0x45c] ss:$24 sps:$4 sm:$0xff]  }
 0x160   : > { %2912 = vmatpush1.bf16.msra.mxu1 %v8659_v39  ;;  %2815 = vmatprep.subr.bf16.mxu0 %v8670_v43  ;;  %v865_v39 = vld [vmem:[%s10494_s20 + $0x58] sm:$0xff] }
 0x161   : > { %2913 = vmatprep.subr.bf16.mxu1 %v8667_v42  ;;  %2900 = vmatprep.mubr.bf16.mxu1 %v10156_v29  ;;  %v8731_v42 = vld [vmem:[#allocation2 + $0x218] ss:$24 sps:$4 sm:$0xff]  }
 0x162   : > { %v8734_v43 = vld [vmem:[#allocation2 + $0x458] ss:$24 sps:$4 sm:$0xff]  }
 0x163   : > { %2816 = vmatpush1.bf16.msra.mxu0 %v8668_v45  ;;  %v873_v45 = vld [vmem:[%s10494_s20 + $0x98] sm:$0xff] }
 0x164   : > { %2914 = vmatpush1.bf16.msra.mxu1 %v8665_v44  ;;  %2817 = vmatprep.subr.bf16.mxu0 %v8676_v47  ;;  %v10558_v44 = vpack.c.bf16 %v865_v39, %v858_v38  ;;  %v8739_v47 = vld [vmem:[#allocation2 + $0x1ec] ss:$24 sps:$4 sm:$0xff]  }
 0x165   : > { %2915 = vmatprep.subr.bf16.mxu1 %v8673_v46  ;;  %v880_v46 = vld [vmem:[%s10494_s20 + $0xd0] sm:$0xff]  ;;  %v8799_v38 = vld [vmem:[#allocation2 + $0x60c] ss:$24 sps:$4 sm:$0xff]  }
 0x166   : > { %v8802_v39 = vld [vmem:[#allocation2 + $0x54c] ss:$24 sps:$4 sm:$0xff]  }
 0x167   : > { %2818 = vmatpush1.bf16.msra.mxu0 %v8674_v51  ;;  %7757 = vmatmul.mubr.msk.bf16.gmra.mxu1 %vm2692_vm0, %v10551_v3  ;;  %v10562_v51 = vpack.c.bf16 %v880_v46, %v873_v45  ;;  %v8808_v45 = vld [vmem:[#allocation2 + $0x51c] ss:$24 sps:$4 sm:$0xff]   ;;  %v8803_v46 = vld [vmem:[#allocation2 + $0x8d8] ss:$24 sps:$4 sm:$0xff]  }
 0x168   : > { %2916 = vmatpush1.bf16.msra.mxu1 %v8671_v48  ;;  %2819 = vmatprep.subr.bf16.mxu0 %v8682_v56  ;;  %v8742_v48 = vld [vmem:[#allocation2 + $0x42c] ss:$24 sps:$4 sm:$0xff]   ;;  %v872_v56 = vld [vmem:[%s10494_s20 + $0x90] sm:$0xff] }
 0x169   : > { %2917 = vmatprep.subr.bf16.mxu1 %v8679_v55  ;;  %2943 = vmatprep.mubr.bf16.mxu1 %v10500_v53  ;;  %v8745_v55 = vld [vmem:[#allocation2 + $0x1bc] ss:$24 sps:$4 sm:$0xff]  }
 0x16b   : > { %2820 = vmatpush1.bf16.msra.mxu0 %v8680_v58  ;;  %v8748_v58 = vld [vmem:[#allocation2 + $0x3fc] ss:$24 sps:$4 sm:$0xff]  }
 0x16c   : > { %2918 = vmatpush1.bf16.msra.mxu1 %v8677_v57  ;;  %2821 = vmatprep.subr.bf16.mxu0 %v8688_v60  ;;  %v879_v57 = vld [vmem:[%s10494_s20 + $0xc8] sm:$0xff] }
 0x16d   : > { %2919 = vmatprep.subr.bf16.mxu1 %v8685_v59  ;;  %v8743_v59 = vld [vmem:[#allocation2 + $0x1b8] ss:$24 sps:$4 sm:$0xff]   ;;  %v10568_v60 = vpack.c.bf16 %v879_v57, %v872_v56  ;;  %v8817_v56 = vld [vmem:[#allocation2 + $0x87c] ss:$24 sps:$4 sm:$0xff]  }
 0x16e   : > { %v8820_v57 = vld [vmem:[#allocation2 + $0x4bc] ss:$24 sps:$4 sm:$0xff]  }
 0x16f   : > { %2822 = vmatpush2.bf16.msra.mxu0 %v8686_v62  ;;  %v8751_v62 = vld [vmem:[#allocation2 + $0x18c] ss:$24 sps:$4 sm:$0xff]  }
 0x170   : > { %2920 = vmatpush1.bf16.msra.mxu1 %v8683_v61  ;;  %2823 = vmatprep.subr.bf16.mxu0 %v8694_v0  ;;  %v8746_v61 = vld [vmem:[#allocation2 + $0x3f8] ss:$24 sps:$4 sm:$0xff]   ;;  %v8749_v0 = vld [vmem:[#allocation2 + $0x188] ss:$24 sps:$4 sm:$0xff]  }
 0x171   : > { %2921 = vmatprep.subr.bf16.mxu1 %v8691_v63  ;;  %v8754_v63 = vld [vmem:[#allocation2 + $0x3cc] ss:$24 sps:$4 sm:$0xff]  }
 0x173   : > { %2824 = vmatpush2.bf16.msra.mxu0 %v8692_v5  ;;  %v8755_v5 = vld [vmem:[#allocation2 + $0x758] ss:$24 sps:$4 sm:$0xff]  }
 0x174   : > { %2922 = vmatpush1.bf16.msra.mxu1 %v8689_v4  ;;  %2825 = vmatprep.subr.bf16.mxu0 %v8700_v7  ;;  %v8760_v4 = vld [vmem:[#allocation2 + $0x39c] ss:$24 sps:$4 sm:$0xff]   ;;  %v8763_v7 = vld [vmem:[#allocation2 + $0x72c] ss:$24 sps:$4 sm:$0xff]  }
 0x175   : > { %2923 = vmatprep.subr.bf16.mxu1 %v8697_v6  ;;  %v8758_v6 = vld [vmem:[#allocation2 + $0x398] ss:$24 sps:$4 sm:$0xff]  }
 0x177   : > { %2826 = vmatpush2.bf16.msra.mxu0 %v8698_v9  ;;  %v8761_v9 = vld [vmem:[#allocation2 + $0x728] ss:$24 sps:$4 sm:$0xff]  }
 0x178   : > { %2924 = vmatpush1.bf16.msra.mxu1 %v8695_v8  ;;  %2827 = vmatprep.subr.bf16.mxu0 %v8706_v11  ;;  %v8766_v8 = vld [vmem:[#allocation2 + $0x36c] ss:$24 sps:$4 sm:$0xff]   ;;  %v8769_v11 = vld [vmem:[#allocation2 + $0x6fc] ss:$24 sps:$4 sm:$0xff]  }
 0x179   : > { %2925 = vmatprep.subr.bf16.mxu1 %v8703_v10  ;;  %v8764_v10 = vld [vmem:[#allocation2 + $0x368] ss:$24 sps:$4 sm:$0xff]  }
 0x17b   : > { %2828 = vmatpush2.bf16.msra.mxu0 %v8704_v13  ;;  %v8767_v13 = vld [vmem:[#allocation2 + $0x6f8] ss:$24 sps:$4 sm:$0xff]  }
 0x17c   : > { %2926 = vmatpush1.bf16.msra.mxu1 %v8701_v12  ;;  %2829 = vmatprep.subr.bf16.mxu0 %v8712_v18  ;;  %v8772_v12 = vld [vmem:[#allocation2 + $0x33c] ss:$24 sps:$4 sm:$0xff]   ;;  %v8775_v18 = vld [vmem:[#allocation2 + $0x6cc] ss:$24 sps:$4 sm:$0xff]  }
 0x17d   : > { %2927 = vmatprep.subr.bf16.mxu1 %v8709_v16  ;;  %v8770_v16 = vld [vmem:[#allocation2 + $0x338] ss:$24 sps:$4 sm:$0xff]  }
 0x17f   : > { %2830 = vmatpush2.bf16.msra.mxu0 %v8710_v20  ;;  %v8773_v20 = vld [vmem:[#allocation2 + $0x6c8] ss:$24 sps:$4 sm:$0xff]  }
 0x180   : > { %2928 = vmatpush2.bf16.msra.mxu1 %v8707_v19  ;;  %2831 = vmatprep.subr.bf16.mxu0 %v8718_v22  ;;  %v8778_v19 = vld [vmem:[#allocation2 + $0x30c] ss:$24 sps:$4 sm:$0xff]   ;;  %v8781_v22 = vld [vmem:[#allocation2 + $0x69c] ss:$24 sps:$4 sm:$0xff]  }
 0x181   : > { %2929 = vmatprep.subr.bf16.mxu1 %v8715_v21  ;;  %v8776_v21 = vld [vmem:[#allocation2 + $0x308] ss:$24 sps:$4 sm:$0xff]  }
 0x183   : > { %2832 = vmatpush2.bf16.msra.mxu0 %v8716_v24  ;;  %v8779_v24 = vld [vmem:[#allocation2 + $0x698] ss:$24 sps:$4 sm:$0xff]  }
 0x184   : > { %2930 = vmatpush2.bf16.msra.mxu1 %v8713_v23  ;;  %2833 = vmatprep.subr.bf16.mxu0 %v8724_v27  ;;  %v8784_v23 = vld [vmem:[#allocation2 + $0x5dc] ss:$24 sps:$4 sm:$0xff]   ;;  %v8787_v27 = vld [vmem:[#allocation2 + $0x66c] ss:$24 sps:$4 sm:$0xff]  }
 0x185   : > { %2931 = vmatprep.subr.bf16.mxu1 %v8721_v26  ;;  %v8782_v26 = vld [vmem:[#allocation2 + $0x5d8] ss:$24 sps:$4 sm:$0xff]  }
 0x187   : > { %2834 = vmatpush2.bf16.msra.mxu0 %v8722_v30  ;;  %v8785_v30 = vld [vmem:[#allocation2 + $0x668] ss:$24 sps:$4 sm:$0xff]  }
 0x188   : > { %2932 = vmatpush2.bf16.msra.mxu1 %v8719_v28  ;;  %2835 = vmatprep.subr.bf16.mxu0 %v8730_v32  ;;  %v8790_v28 = vld [vmem:[#allocation2 + $0x5ac] ss:$24 sps:$4 sm:$0xff]   ;;  %v8793_v32 = vld [vmem:[#allocation2 + $0x63c] ss:$24 sps:$4 sm:$0xff]  }
 0x189   : > { %2933 = vmatprep.subr.bf16.mxu1 %v8727_v31  ;;  %v8788_v31 = vld [vmem:[#allocation2 + $0x5a8] ss:$24 sps:$4 sm:$0xff]  }
 0x18b   : > { %2836 = vmatpush2.bf16.msra.mxu0 %v8728_v34  ;;  %v8791_v34 = vld [vmem:[#allocation2 + $0x638] ss:$24 sps:$4 sm:$0xff]  }
 0x18c   : > { %2934 = vmatpush2.bf16.msra.mxu1 %v8725_v33  ;;  %2964 = vmatprep.subr.bf16.mxu0 %v8736_v40  ;;  %v8796_v33 = vld [vmem:[#allocation2 + $0x57c] ss:$24 sps:$4 sm:$0xff]   ;;  %v8797_v40 = vld [vmem:[#allocation2 + $0x608] ss:$24 sps:$4 sm:$0xff]  }
 0x18d   : > { %2935 = vmatprep.subr.bf16.mxu1 %v8733_v35  ;;  %v8794_v35 = vld [vmem:[#allocation2 + $0x578] ss:$24 sps:$4 sm:$0xff]  }
 0x18e   : > { %2838 = vmatmul.mubr.bf16.vlgmr.msra.gmra.mxu0 %v10558_v44 }
 0x18f   : > { %2965 = vmatpush1.bf16.msra.mxu0 %v8734_v43  ;;  %2847 = vmatprep.mubr.bf16.mxu0 %v10562_v51  ;;  %v8805_v43 = vld [vmem:[#allocation2 + $0x8dc] ss:$24 sps:$4 sm:$0xff]  }
 0x190   : > { %2936 = vmatpush2.bf16.msra.mxu1 %v8731_v42  ;;  %2966 = vmatprep.subr.bf16.mxu0 %v8742_v48  ;;  %v8800_v42 = vld [vmem:[#allocation2 + $0x548] ss:$24 sps:$4 sm:$0xff]   ;;  %v8811_v48 = vld [vmem:[#allocation2 + $0x8ac] ss:$24 sps:$4 sm:$0xff]  }
 0x191   : > { %2937 = vmatprep.subr.bf16.mxu1 %v8739_v47  ;;  %v8806_v47 = vld [vmem:[#allocation2 + $0x518] ss:$24 sps:$4 sm:$0xff]  }
 0x193   : > { %2967 = vmatpush1.bf16.msra.mxu0 %v8740_v50  ;;  %v8809_v50 = vld [vmem:[#allocation2 + $0x8a8] ss:$24 sps:$4 sm:$0xff]  }
 0x194   : > { %2938 = vmatpush2.bf16.msra.mxu1 %v8737_v49  ;;  %2968 = vmatprep.subr.bf16.mxu0 %v8748_v58  ;;  %v8814_v49 = vld [vmem:[#allocation2 + $0x4ec] ss:$24 sps:$4 sm:$0xff]   ;;  %v8815_v58 = vld [vmem:[#allocation2 + $0x878] ss:$24 sps:$4 sm:$0xff]  }
 0x195   : > { %2939 = vmatprep.subr.bf16.mxu1 %v8745_v55  ;;  %v8812_v55 = vld [vmem:[#allocation2 + $0x4e8] ss:$24 sps:$4 sm:$0xff]  }
 0x196   : > { %2848 = vmatmul.mubr.bf16.gmra.mxu0 %v10568_v60 }
 0x197   : > { %2969 = vmatpush1.bf16.msra.mxu0 %v8746_v61  ;;  %2996 = vmatprep.mubr.bf16.mxu0 %v10502_v54  ;;  %v8823_v61 = vld [vmem:[#allocation2 + $0x84c] ss:$24 sps:$4 sm:$0xff]  }
 0x198   : > { %2940 = vmatpush2.bf16.msra.mxu1 %v8743_v59  ;;  %2970 = vmatprep.subr.bf16.mxu0 %v8754_v63  ;;  %v8818_v59 = vld [vmem:[#allocation2 + $0x4b8] ss:$24 sps:$4 sm:$0xff]   ;;  %v8821_v63 = vld [vmem:[#allocation2 + $0x848] ss:$24 sps:$4 sm:$0xff]  }
 0x199   : > { %2941 = vmatprep.subr.bf16.mxu1 %v8751_v62  ;;  %v8826_v62 = vld [vmem:[#allocation2 + $0x48c] ss:$24 sps:$4 sm:$0xff]  }
 0x19b   : > { %2971 = vmatpush1.bf16.msra.mxu0 %v8752_v1  ;;  %v8829_v1 = vld [vmem:[#allocation2 + $0x81c] ss:$24 sps:$4 sm:$0xff]  }
 0x19c   : > { %2942 = vmatpush2.bf16.msra.mxu1 %v8749_v0  ;;  %2972 = vmatprep.subr.bf16.mxu0 %v8760_v4  ;;  %v8824_v0 = vld [vmem:[#allocation2 + $0x488] ss:$24 sps:$4 sm:$0xff]   ;;  %v8827_v4 = vld [vmem:[#allocation2 + $0x818] ss:$24 sps:$4 sm:$0xff]  }
 0x19d   : > { %3017 = vmatprep.subr.bf16.mxu1 %v8757_v2  ;;  %v8832_v2 = vld [vmem:[#allocation2 + $0x90c] ss:$24 sps:$4 sm:$0xff]  }
 0x19f   : > { %2944 = vmatmul.mubr.bf16.vlgmr.msra.gmra.mxu1 %v10512_v14  ;;  %2973 = vmatpush1.bf16.msra.mxu0 %v8758_v6  ;;  %v8835_v6 = vld [vmem:[#allocation2 + $0x7ec] ss:$24 sps:$4 sm:$0xff]  }
 0x1a0   : > { %3018 = vmatpush1.bf16.msra.mxu1 %v8755_v5  ;;  %2974 = vmatprep.subr.bf16.mxu0 %v8766_v8  ;;  %v8830_v5 = vld [vmem:[#allocation2 + $0x908] ss:$24 sps:$4 sm:$0xff]  }
 0x1a1   : > { %3019 = vmatprep.subr.bf16.mxu1 %v8763_v7  ;;  %2953 = vmatprep.mubr.bf16.mxu1 %v10534_v37  ;;  %v8844_v7 = vld [vmem:[#allocation2 + $0x164] ss:$24 sps:$4 sm:$0xff]   ;;  %v8833_v8 = vld [vmem:[#allocation2 + $0x7e8] ss:$24 sps:$4 sm:$0xff]  }
 0x1a3   : > { %2975 = vmatpush1.bf16.msra.mxu0 %v8764_v10  ;;  %v8836_v10 = vld [vmem:[#allocation2 + $0x7b8] ss:$24 sps:$4 sm:$0xff]  }
 0x1a4   : > { %3020 = vmatpush1.bf16.msra.mxu1 %v8761_v9  ;;  %2976 = vmatprep.subr.bf16.mxu0 %v8772_v12  ;;  %v8838_v9 = vld [vmem:[#allocation2 + $0x7bc] ss:$24 sps:$4 sm:$0xff]   ;;  %v8839_v12 = vld [vmem:[#allocation2 + $0x788] ss:$24 sps:$4 sm:$0xff]  }
 0x1a5   : > { %3021 = vmatprep.subr.bf16.mxu1 %v8769_v11  ;;  %v8841_v11 = vld [vmem:[#allocation2 + $0x78c] ss:$24 sps:$4 sm:$0xff]  }
 0x1a7   : > { %2954 = vmatmul.mubr.bf16.gmra.mxu1 %v10537_v41  ;;  %2977 = vmatpush1.bf16.msra.mxu0 %v8770_v16  ;;  %v8842_v16 = vld [vmem:[#allocation2 + $0x160] ss:$24 sps:$4 sm:$0xff]  }
 0x1a8   : > { %3022 = vmatpush1.bf16.msra.mxu1 %v8767_v13  ;;  %2978 = vmatprep.subr.bf16.mxu0 %v8778_v19  ;;  %v8847_v13 = vld [vmem:[#allocation2 + $0x464] ss:$24 sps:$4 sm:$0xff]   ;;  %v8850_v19 = vld [vmem:[#allocation2 + $0x134] ss:$24 sps:$4 sm:$0xff]  }
 0x1a9   : > { %3023 = vmatprep.subr.bf16.mxu1 %v8775_v18  ;;  %3049 = vmatprep.mubr.bf16.mxu1 %v10546_v52  ;;  %v8845_v18 = vld [vmem:[#allocation2 + $0x460] ss:$24 sps:$4 sm:$0xff]  }
 0x1ab   : > { %2979 = vmatpush1.bf16.msra.mxu0 %v8776_v21  ;;  %v8848_v21 = vld [vmem:[#allocation2 + $0x130] ss:$24 sps:$4 sm:$0xff]  }
 0x1ac   : > { %3024 = vmatpush1.bf16.msra.mxu1 %v8773_v20  ;;  %2980 = vmatprep.subr.bf16.mxu0 %v8784_v23  ;;  %v8853_v20 = vld [vmem:[#allocation2 + $0x434] ss:$24 sps:$4 sm:$0xff]   ;;  %v8856_v23 = vld [vmem:[#allocation2 + $0x104] ss:$24 sps:$4 sm:$0xff]  }
 0x1ad   : > { %3025 = vmatprep.subr.bf16.mxu1 %v8781_v22  ;;  %v8851_v22 = vld [vmem:[#allocation2 + $0x430] ss:$24 sps:$4 sm:$0xff]  }
 0x1af   : > { %2981 = vmatpush2.bf16.msra.mxu0 %v8782_v26  ;;  %v8854_v26 = vld [vmem:[#allocation2 + $0x100] ss:$24 sps:$4 sm:$0xff]  }
 0x1b0   : > { %3026 = vmatpush1.bf16.msra.mxu1 %v8779_v24  ;;  %2982 = vmatprep.subr.bf16.mxu0 %v8790_v28  ;;  %v8859_v24 = vld [vmem:[#allocation2 + $0x404] ss:$24 sps:$4 sm:$0xff]   ;;  %v8862_v28 = vld [vmem:[#allocation2 + $0xd4] ss:$24 sps:$4 sm:$0xff]  }
 0x1b1   : > { %3027 = vmatprep.subr.bf16.mxu1 %v8787_v27  ;;  %v8857_v27 = vld [vmem:[#allocation2 + $0x400] ss:$24 sps:$4 sm:$0xff]  }
 0x1b3   : > { %2983 = vmatpush2.bf16.msra.mxu0 %v8788_v31  ;;  %v8860_v31 = vld [vmem:[#allocation2 + $0xd0] ss:$24 sps:$4 sm:$0xff]  }
 0x1b4   : > { %3028 = vmatpush1.bf16.msra.mxu1 %v8785_v30  ;;  %2984 = vmatprep.subr.bf16.mxu0 %v8796_v33  ;;  %v8865_v30 = vld [vmem:[#allocation2 + $0x3d4] ss:$24 sps:$4 sm:$0xff]   ;;  %v8868_v33 = vld [vmem:[#allocation2 + $0xa4] ss:$24 sps:$4 sm:$0xff]  }
 0x1b5   : > { %3029 = vmatprep.subr.bf16.mxu1 %v8793_v32  ;;  %v8863_v32 = vld [vmem:[#allocation2 + $0x3d0] ss:$24 sps:$4 sm:$0xff]  }
 0x1b7   : > { %2985 = vmatpush2.bf16.msra.mxu0 %v8794_v35  ;;  %v8866_v35 = vld [vmem:[#allocation2 + $0xa0] ss:$24 sps:$4 sm:$0xff]  }
 0x1b8   : > { %3030 = vmatpush1.bf16.msra.mxu1 %v8791_v34  ;;  %2986 = vmatprep.subr.bf16.mxu0 %v8802_v39  ;;  %v8871_v34 = vld [vmem:[#allocation2 + $0x3a4] ss:$24 sps:$4 sm:$0xff]   ;;  %v8874_v39 = vld [vmem:[#allocation2 + $0x74] ss:$24 sps:$4 sm:$0xff]  }
 0x1b9   : > { %3031 = vmatprep.subr.bf16.mxu1 %v8799_v38  ;;  %v8869_v38 = vld [vmem:[#allocation2 + $0x3a0] ss:$24 sps:$4 sm:$0xff]  }
 0x1bb   : > { %2987 = vmatpush2.bf16.msra.mxu0 %v8800_v42  ;;  %v8872_v42 = vld [vmem:[#allocation2 + $0x70] ss:$24 sps:$4 sm:$0xff]  }
 0x1bc   : > { %3032 = vmatpush1.bf16.msra.mxu1 %v8797_v40  ;;  %2988 = vmatprep.subr.bf16.mxu0 %v8808_v45  ;;  %v8877_v40 = vld [vmem:[#allocation2 + $0x374] ss:$24 sps:$4 sm:$0xff]   ;;  %v8880_v45 = vld [vmem:[#allocation2 + $0x44] ss:$24 sps:$4 sm:$0xff]  }
 0x1bd   : > { %3033 = vmatprep.subr.bf16.mxu1 %v8805_v43  ;;  %v8875_v43 = vld [vmem:[#allocation2 + $0x370] ss:$24 sps:$4 sm:$0xff]  }
 0x1bf   : > { %2989 = vmatpush2.bf16.msra.mxu0 %v8806_v47  ;;  %v8878_v47 = vld [vmem:[#allocation2 + $0x40] ss:$24 sps:$4 sm:$0xff]  }
 0x1c0   : > { %3034 = vmatpush2.bf16.msra.mxu1 %v8803_v46  ;;  %2990 = vmatprep.subr.bf16.mxu0 %v8814_v49  ;;  %v8883_v46 = vld [vmem:[#allocation2 + $0x344] ss:$24 sps:$4 sm:$0xff]   ;;  %v8884_v49 = vld [vmem:[#allocation2 + $0x10] ss:$24 sps:$4 sm:$0xff]  }
 0x1c1   : > { %3035 = vmatprep.subr.bf16.mxu1 %v8811_v48  ;;  %v8886_v48 = vld [vmem:[#allocation2 + $0x14] ss:$24 sps:$4 sm:$0xff]  }
 0x1c3   : > { %2991 = vmatpush2.bf16.msra.mxu0 %v8812_v55  ;;  %v8892_v55 = vld [vmem:[#allocation2 + $0x2e4] ss:$24 sps:$4 sm:$0xff]  }
 0x1c4   : > { %3036 = vmatpush2.bf16.msra.mxu1 %v8809_v50  ;;  %2992 = vmatprep.subr.bf16.mxu0 %v8820_v57  ;;  %v8887_v50 = vld [vmem:[#allocation2 + $0x310] ss:$24 sps:$4 sm:$0xff]   ;;  %v8890_v57 = vld [vmem:[#allocation2 + $0x2e0] ss:$24 sps:$4 sm:$0xff]  }
 0x1c5   : > { %3037 = vmatprep.subr.bf16.mxu1 %v8817_v56  ;;  %v8895_v56 = vld [vmem:[#allocation2 + $0x5e4] ss:$24 sps:$4 sm:$0xff]  }
 0x1c7   : > { %2993 = vmatpush2.bf16.msra.mxu0 %v8818_v59  ;;  %v8898_v59 = vld [vmem:[#allocation2 + $0x2b4] ss:$24 sps:$4 sm:$0xff]  }
 0x1c8   : > { %3038 = vmatpush2.bf16.msra.mxu1 %v8815_v58  ;;  %2994 = vmatprep.subr.bf16.mxu0 %v8826_v62  ;;  %v8893_v58 = vld [vmem:[#allocation2 + $0x5e0] ss:$24 sps:$4 sm:$0xff]   ;;  %v8896_v62 = vld [vmem:[#allocation2 + $0x2b0] ss:$24 sps:$4 sm:$0xff]  }
 0x1c9   : > { %3039 = vmatprep.subr.bf16.mxu1 %v8823_v61  ;;  %v8901_v61 = vld [vmem:[#allocation2 + $0x5b4] ss:$24 sps:$4 sm:$0xff]  }
 0x1cb   : > { %2995 = vmatpush2.bf16.msra.mxu0 %v8824_v0  ;;  %v8904_v0 = vld [vmem:[#allocation2 + $0x284] ss:$24 sps:$4 sm:$0xff]  }
 0x1cc   : > { %3040 = vmatpush2.bf16.msra.mxu1 %v8821_v63  ;;  %3084 = vmatprep.subr.bf16.mxu0 %v8832_v2  ;;  %v8899_v63 = vld [vmem:[#allocation2 + $0x5b0] ss:$24 sps:$4 sm:$0xff]   ;;  %v8902_v2 = vld [vmem:[#allocation2 + $0x280] ss:$24 sps:$4 sm:$0xff]  }
 0x1cd   : > { %3041 = vmatprep.subr.bf16.mxu1 %v8829_v1  ;;  %v8907_v1 = vld [vmem:[#allocation2 + $0x584] ss:$24 sps:$4 sm:$0xff]  }
 0x1ce   : > { %2997 = vmatmul.mubr.bf16.vlgmr.msra.gmra.mxu0 %v10514_v15 }
 0x1cf   : > { %3085 = vmatpush1.bf16.msra.mxu0 %v8830_v5  ;;  %3006 = vmatprep.mubr.bf16.mxu0 %v10516_v17  ;;  %v8910_v5 = vld [vmem:[#allocation2 + $0x254] ss:$24 sps:$4 sm:$0xff]  }
 0x1d0   : > { %3042 = vmatpush2.bf16.msra.mxu1 %v8827_v4  ;;  %3123 = vmatprep.subr.bf16.mxu0 %v8844_v7  ;;  %v8905_v4 = vld [vmem:[#allocation2 + $0x580] ss:$24 sps:$4 sm:$0xff]   ;;  %v8908_v7 = vld [vmem:[#allocation2 + $0x250] ss:$24 sps:$4 sm:$0xff]  }
 0x1d1   : > { %3043 = vmatprep.subr.bf16.mxu1 %v8835_v6  ;;  %v8913_v6 = vld [vmem:[#allocation2 + $0x554] ss:$24 sps:$4 sm:$0xff]  }
 0x1d4   : > { %3044 = vmatpush2.bf16.msra.mxu1 %v8833_v8  ;;  %v8911_v8 = vld [vmem:[#allocation2 + $0x550] ss:$24 sps:$4 sm:$0xff]  }
 0x1d5   : > { %3045 = vmatprep.subr.bf16.mxu1 %v8838_v9  ;;  %v8916_v9 = vld [vmem:[#allocation2 + $0x224] ss:$24 sps:$4 sm:$0xff]  }
 0x1d6   : > { %3007 = vmatmul.mubr.bf16.gmra.mxu0 %v10523_v25 }
 0x1d7   : > { %3102 = vmatprep.mubr.bf16.mxu0 %v10156_v29 }
 0x1d8   : > { %3046 = vmatpush2.bf16.msra.mxu1 %v8836_v10  ;;  %v8919_v10 = vld [vmem:[#allocation2 + $0x524] ss:$24 sps:$4 sm:$0xff]  }
 0x1d9   : > { %3047 = vmatprep.subr.bf16.mxu1 %v8841_v11  ;;  %v8914_v11 = vld [vmem:[#allocation2 + $0x220] ss:$24 sps:$4 sm:$0xff]  }
 0x1dc   : > { %3048 = vmatpush2.bf16.msra.mxu1 %v8839_v12  ;;  %v8917_v12 = vld [vmem:[#allocation2 + $0x520] ss:$24 sps:$4 sm:$0xff]  }
 0x1dd   : > { %3176 = vmatprep.subr.bf16.mxu1 %v8847_v13  ;;  %v8922_v13 = vld [vmem:[#allocation2 + $0x1f4] ss:$24 sps:$4 sm:$0xff]  }
 0x1de   : > { %7758 = vmatmul.mubr.msk.bf16.vlgmr.msra.gmra.mxu0 %vm2692_vm0, %v10532_v36 }
 0x1df   : > { %3050 = vmatmul.mubr.bf16.vlgmr.msra.gmra.mxu1 %v10558_v44  ;;  %3124 = vmatpush1.bf16.msra.mxu0 %v8842_v16  ;;  %v8925_v16 = vld [vmem:[#allocation2 + $0x4f4] ss:$24 sps:$4 sm:$0xff]  }
 0x1e0   : > { %3177 = vmatpush1.bf16.msra.mxu1 %v8845_v18  ;;  %3125 = vmatprep.subr.bf16.mxu0 %v8850_v19  ;;  %v8920_v18 = vld [vmem:[#allocation2 + $0x1f0] ss:$24 sps:$4 sm:$0xff]  }
 0x1e1   : > { %3178 = vmatprep.subr.bf16.mxu1 %v8853_v20  ;;  %3059 = vmatprep.mubr.bf16.mxu1 %v10562_v51  ;;  %v8923_v19 = vld [vmem:[#allocation2 + $0x4f0] ss:$24 sps:$4 sm:$0xff]   ;;  %v8928_v20 = vld [vmem:[#allocation2 + $0x1c4] ss:$24 sps:$4 sm:$0xff]  }
 0x1e2   : > { %3112 = vmatprep.mubr.bf16.mxu0 %v10156_v29 }
 0x1e3   : > { %3126 = vmatpush1.bf16.msra.mxu0 %v8848_v21  ;;  %v8931_v21 = vld [vmem:[#allocation2 + $0x4c4] ss:$24 sps:$4 sm:$0xff]  }
 0x1e4   : > { %3179 = vmatpush1.bf16.msra.mxu1 %v8851_v22  ;;  %3127 = vmatprep.subr.bf16.mxu0 %v8856_v23  ;;  %v8926_v22 = vld [vmem:[#allocation2 + $0x1c0] ss:$24 sps:$4 sm:$0xff]  }
 0x1e5   : > { %3180 = vmatprep.subr.bf16.mxu1 %v8859_v24  ;;  %v8929_v23 = vld [vmem:[#allocation2 + $0x4c0] ss:$24 sps:$4 sm:$0xff]   ;;  %v8934_v24 = vld [vmem:[#allocation2 + $0x194] ss:$24 sps:$4 sm:$0xff]  }
 0x1e6   : > { %7759 = vmatmul.mubr.msk.bf16.gmra.mxu0 %vm2692_vm0, %v10551_v3 }
 0x1e7   : > { %3060 = vmatmul.mubr.bf16.gmra.mxu1 %v10568_v60  ;;  %3128 = vmatpush1.bf16.msra.mxu0 %v8854_v26  ;;  %v8937_v26 = vld [vmem:[#allocation2 + $0x494] ss:$24 sps:$4 sm:$0xff]  }
 0x1e8   : > { %3181 = vmatpush1.bf16.msra.mxu1 %v8857_v27  ;;  %3129 = vmatprep.subr.bf16.mxu0 %v8862_v28  ;;  %v8932_v27 = vld [vmem:[#allocation2 + $0x190] ss:$24 sps:$4 sm:$0xff]  }
 0x1e9   : > { %3182 = vmatprep.subr.bf16.mxu1 %v8865_v30  ;;  %3155 = vmatprep.mubr.bf16.mxu0 %v10500_v53  ;;  %v8881_v53 = vld [vmem:[#allocation2 + $0x340] ss:$24 sps:$4 sm:$0xff]   ;;  %v8935_v28 = vld [vmem:[#allocation2 + $0x490] ss:$24 sps:$4 sm:$0xff]   ;;  %v8940_v30 = vld [vmem:[#allocation2 + $0x764] ss:$24 sps:$4 sm:$0xff]  }
 0x1ea   : > { %3208 = vmatprep.mubr.bf16.mxu1 %v10502_v54  ;;  %v8889_v54 = vld [vmem:[#allocation2 + $0x314] ss:$24 sps:$4 sm:$0xff]  }
 0x1eb   : > { %3130 = vmatpush1.bf16.msra.mxu0 %v8860_v31  ;;  %v8949_v31 = vld [vmem:[#allocation2 + $0x914] ss:$24 sps:$4 sm:$0xff]  }
 0x1ec   : > { %3183 = vmatpush1.bf16.msra.mxu1 %v8863_v32  ;;  %3131 = vmatprep.subr.bf16.mxu0 %v8868_v33  ;;  %v8938_v32 = vld [vmem:[#allocation2 + $0x760] ss:$24 sps:$4 sm:$0xff]   ;;  %v8943_v33 = vld [vmem:[#allocation2 + $0x734] ss:$24 sps:$4 sm:$0xff]  }
 0x1ed   : > { %3184 = vmatprep.subr.bf16.mxu1 %v8871_v34  ;;  %v8947_v34 = vld [vmem:[#allocation2 + $0x910] ss:$24 sps:$4 sm:$0xff]  }
 0x1ef   : > { %3132 = vmatpush1.bf16.msra.mxu0 %v8866_v35  ;;  %v8955_v35 = vld [vmem:[#allocation6 + $0xe4] ss:$16 sps:$4 sm:$0xff]  }
 0x1f0   : > { %3185 = vmatpush1.bf16.msra.mxu1 %v8869_v38  ;;  %3133 = vmatprep.subr.bf16.mxu0 %v8874_v39  ;;  %v8941_v38 = vld [vmem:[#allocation2 + $0x730] ss:$24 sps:$4 sm:$0xff]   ;;  %v8946_v39 = vld [vmem:[#allocation2 + $0x704] ss:$24 sps:$4 sm:$0xff]  }
 0x1f1   : > { %3186 = vmatprep.subr.bf16.mxu1 %v8877_v40  ;;  %v8944_v40 = vld [vmem:[#allocation2 + $0x700] ss:$24 sps:$4 sm:$0xff]  }
 0x1f3   : > { %3134 = vmatpush1.bf16.msra.mxu0 %v8872_v42  ;;  %v8952_v42 = vld [vmem:[#allocation2 + $0x6d4] ss:$24 sps:$4 sm:$0xff]  }
 0x1f4   : > { %3187 = vmatpush1.bf16.msra.mxu1 %v8875_v43  ;;  %3135 = vmatprep.subr.bf16.mxu0 %v8880_v45 }
 0x1f5   : > { %3188 = vmatprep.subr.bf16.mxu1 %v8883_v46  ;;  %v8961_v46 = vld [vmem:[#allocation6 + $0xc4] ss:$16 sps:$4 sm:$0xff]  }
 0x1f7   : > { %3136 = vmatpush1.bf16.msra.mxu0 %v8878_v47  ;;  %v8964_v47 = vld [vmem:[#allocation2 + $0x674] ss:$24 sps:$4 sm:$0xff]  }
 0x1f8   : > { %3189 = vmatpush1.bf16.msra.mxu1 %v8881_v53  ;;  %3137 = vmatprep.subr.bf16.mxu0 %v8886_v48  ;;  %v8959_v53 = vld [vmem:[#allocation6 + $0xc0] ss:$16 sps:$4 sm:$0xff]  }
 0x1f9   : > { %3190 = vmatprep.subr.bf16.mxu1 %v8889_v54  ;;  %v8970_v54 = vld [vmem:[#allocation2 + $0x644] ss:$24 sps:$4 sm:$0xff]  }
 0x1fb   : > { %3138 = vmatpush1.bf16.msra.mxu0 %v8884_v49  ;;  %v8968_v49 = vld [vmem:[#allocation2 + $0x640] ss:$24 sps:$4 sm:$0xff]  }
 0x1fc   : > { %3191 = vmatpush1.bf16.msra.mxu1 %v8887_v50  ;;  %3139 = vmatprep.subr.bf16.mxu0 %v8892_v55 }
 0x1fd   : > { %3192 = vmatprep.subr.bf16.mxu1 %v8895_v56  ;;  %v8973_v56 = vld [vmem:[#allocation6 + $0x84] ss:$16 sps:$4 sm:$0xff]  }
 0x1ff   : > { %3140 = vmatpush2.bf16.msra.mxu0 %v8890_v57  ;;  %v8976_v57 = vld [vmem:[#allocation2 + $0x614] ss:$24 sps:$4 sm:$0xff]  }
 0x200   : > { %3193 = vmatpush2.bf16.msra.mxu1 %v8893_v58  ;;  %3141 = vmatprep.subr.bf16.mxu0 %v8898_v59  ;;  %v8971_v58 = vld [vmem:[#allocation6 + $0x80] ss:$16 sps:$4 sm:$0xff]  }
 0x201   : > { %3194 = vmatprep.subr.bf16.mxu1 %v8901_v61  ;;  %v8974_v59 = vld [vmem:[#allocation2 + $0x610] ss:$24 sps:$4 sm:$0xff]  }
 0x203   : > { %3142 = vmatpush2.bf16.msra.mxu0 %v8896_v62  ;;  %v8979_v62 = vld [vmem:[#allocation6 + $0x64] ss:$16 sps:$4 sm:$0xff]  }
 0x204   : > { %3195 = vmatpush2.bf16.msra.mxu1 %v8899_v63  ;;  %3143 = vmatprep.subr.bf16.mxu0 %v8904_v0  ;;  %v8977_v0 = vld [vmem:[#allocation6 + $0x60] ss:$16 sps:$4 sm:$0xff]  }
 0x205   : > { %3196 = vmatprep.subr.bf16.mxu1 %v8907_v1  ;;  %v8980_v1 = vld [vmem:[#allocation2 + $0x8e0] ss:$24 sps:$4 sm:$0xff]  }
 0x207   : > { %3144 = vmatpush2.bf16.msra.mxu0 %v8902_v2 }
 0x208   : > { %3197 = vmatpush2.bf16.msra.mxu1 %v8905_v4  ;;  %3145 = vmatprep.subr.bf16.mxu0 %v8910_v5  ;;  %v8985_v4 = vld [vmem:[#allocation6 + $0x44] ss:$16 sps:$4 sm:$0xff]  }
 0x209   : > { %3198 = vmatprep.subr.bf16.mxu1 %v8913_v6  ;;  %v8988_v5 = vld [vmem:[#allocation2 + $0x8b4] ss:$24 sps:$4 sm:$0xff]   ;;  %v1192_v6 = vlaneseq }
 0x20b   : > { %3146 = vmatpush2.bf16.msra.mxu0 %v8908_v7 }
 0x20c   : > { %3199 = vmatpush2.bf16.msra.mxu1 %v8911_v8  ;;  %3147 = vmatprep.subr.bf16.mxu0 %v8916_v9  ;;  %v8986_v8 = vld [vmem:[#allocation2 + $0x8b0] ss:$24 sps:$4 sm:$0xff]  }
 0x20d   : > { %3200 = vmatprep.subr.bf16.mxu1 %v8919_v10  ;;  %v8991_v10 = vld [vmem:[#allocation6 + $0x24] ss:$16 sps:$4 sm:$0xff]  }
 0x20e   : > { %v10607_v50 = vpop.f32.mrf.mxu0 }
 0x20f   : > { %3148 = vmatpush2.bf16.msra.mxu0 %v8914_v11  ;;  %v10594_v43 = vpop.f32.mrf.mxu1  ;;  %v8994_v11 = vld [vmem:[#allocation2 + $0x884] ss:$24 sps:$4 sm:$0xff]  }
 0x210   : > { %3201 = vmatpush2.bf16.msra.mxu1 %v8917_v12  ;;  %3149 = vmatprep.subr.bf16.mxu0 %v8922_v13  ;;  %v2735_v61 = vpop.f32.mrf.mxu0  ;;  %v10621_v12 = vshrl.u32 %v1192_v6, 7  ;;  %v9019_v6 = vld [vmem:[#allocation6 + $0x180] ss:$16 sps:$4 sm:$0xff]  }
 0x211   : > { %3202 = vmatprep.subr.bf16.mxu1 %v8925_v16  ;;  %v10600_v45 = vpop.f32.mrf.mxu1 }
 0x212   : > { %v10617_v2 = vpop.f32.mrf.mxu0 }
 0x213   : > { %3150 = vmatpush2.bf16.msra.mxu0 %v8920_v18  ;;  %v10602_v48 = vpop.f32.mrf.mxu1  ;;  %v8989_v18 = vld [vmem:[#allocation6 + $0x20] ss:$16 sps:$4 sm:$0xff]  }
 0x214   : > { %3203 = vmatpush2.bf16.msra.mxu1 %v8923_v19  ;;  %3151 = vmatprep.subr.bf16.mxu0 %v8928_v20  ;;  %v2739_v9 = vpop.f32.mrf.mxu0  ;;  %v8992_v19 = vld [vmem:[#allocation2 + $0x880] ss:$24 sps:$4 sm:$0xff]   ;;  %v10627_v20 = vld [vmem:[#allocation4] sm:$0x3f] }
 0x215   : > { %3204 = vmatprep.subr.bf16.mxu1 %v8931_v21  ;;  %v10609_v55 = vpop.f32.mrf.mxu1  ;;  %v8997_v21 = vld [vmem:[#allocation6 + $0x4] ss:$16 sps:$4 sm:$0xff]  }
 0x216   : > { %v10623_v13 = vpop.f32.mrf.mxu0 }
 0x217   : > { %3152 = vmatpush2.bf16.msra.mxu0 %v8926_v22  ;;  %v9000_v22 = vld [vmem:[#allocation2 + $0x854] ss:$24 sps:$4 sm:$0xff]  }
 0x218   : > { %3205 = vmatpush2.bf16.msra.mxu1 %v8929_v23  ;;  %3153 = vmatprep.subr.bf16.mxu0 %v8934_v24  ;;  %v10630_v23 = vsub.s32 1, %v10621_v12  ;;  %v10632_v24 = vpop.f32.mrf.mxu0 }
 0x219   : > { %3206 = vmatprep.subr.bf16.mxu1 %v8937_v26 }
 0x21b   : > { %3154 = vmatpush2.bf16.msra.mxu0 %v8932_v27  ;;  %v8995_v27 = vld [vmem:[#allocation6] ss:$16 sps:$4 sm:$0xff]  }
 0x21c   : > { %3207 = vmatpush2.bf16.msra.mxu1 %v8935_v28  ;;  %3229 = vmatprep.subr.bf16.mxu0 %v8940_v30  ;;  %v8998_v28 = vld [vmem:[#allocation2 + $0x850] ss:$24 sps:$4 sm:$0xff]  }
 0x21d   : > { %3296 = vmatprep.subr.bf16.mxu1 %v8949_v31  ;;  %v9003_v30 = vld [vmem:[#allocation6 + $0x1e4] ss:$16 sps:$4 sm:$0xff]  }
 0x21e   : > { %3156 = vmatmul.mubr.bf16.vlgmr.msra.gmra.mxu0 %v10512_v14  ;;  %v8950_v14 = vld [vmem:[#allocation2 + $0x6d0] ss:$24 sps:$4 sm:$0xff]   ;;  %v9006_v31 = vld [vmem:[#allocation2 + $0x824] ss:$24 sps:$4 sm:$0xff]  }
 0x21f   : > { %3209 = vmatmul.mubr.bf16.vlgmr.msra.gmra.mxu1 %v10514_v15  ;;  %3230 = vmatpush1.bf16.msra.mxu0 %v8938_v32  ;;  %v8958_v15 = vld [vmem:[#allocation2 + $0x6a4] ss:$24 sps:$4 sm:$0xff]   ;;  %v10638_v32 = vrot.slane %v10627_v20, %v10630_v23 }
 0x220   : > { %3218 = vmatprep.mubr.bf16.mxu1 %v10516_v17  ;;  %3231 = vmatprep.subr.bf16.mxu0 %v8943_v33  ;;  %v8953_v17 = vld [vmem:[#allocation6 + $0xe0] ss:$16 sps:$4 sm:$0xff]   ;;  %v10640_v33 = vpop.f32.mrf.mxu0 }
 0x221   : > { %3297 = vmatpush1.bf16.msra.mxu1 %v8947_v34  ;;  %3165 = vmatprep.mubr.bf16.mxu0 %v10534_v37  ;;  %v8956_v37 = vld [vmem:[#allocation2 + $0x6a0] ss:$24 sps:$4 sm:$0xff]  }
 0x222   : > { %4569 = vmatprep.subr.bf16.mxu1 %v8955_v35  ;;  %v9001_v35 = vld [vmem:[#allocation6 + $0x1e0] ss:$16 sps:$4 sm:$0xff]  }
 0x223   : > { %3232 = vmatpush1.bf16.msra.mxu0 %v8941_v38  ;;  %v9004_v38 = vld [vmem:[#allocation2 + $0x820] ss:$24 sps:$4 sm:$0xff]  }
 0x224   : > { %3233 = vmatprep.subr.bf16.mxu0 %v8946_v39  ;;  %v9009_v39 = vld [vmem:[#allocation6 + $0x1c4] ss:$16 sps:$4 sm:$0xff]  }
 0x226   : > { %3166 = vmatmul.mubr.bf16.gmra.mxu0 %v10537_v41  ;;  %v8967_v41 = vld [vmem:[#allocation6 + $0xa4] ss:$16 sps:$4 sm:$0xff]  }
 0x227   : > { %3219 = vmatmul.mubr.bf16.gmra.mxu1 %v10523_v25  ;;  %3234 = vmatpush1.bf16.msra.mxu0 %v8944_v40  ;;  %v8962_v25 = vld [vmem:[#allocation2 + $0x670] ss:$24 sps:$4 sm:$0xff]   ;;  %v9012_v40 = vld [vmem:[#allocation2 + $0x7f4] ss:$24 sps:$4 sm:$0xff]  }
 0x228   : > { %3314 = vmatprep.mubr.bf16.mxu1 %v10156_v29  ;;  %3235 = vmatprep.subr.bf16.mxu0 %v8952_v42  ;;  %v2736_v42 = vadd.f32 %v2735_v61, %v10638_v32 }
 0x229   : > { %3261 = vmatprep.mubr.bf16.mxu0 %v10546_v52  ;;  %v8965_v52 = vld [vmem:[#allocation6 + $0xa0] ss:$16 sps:$4 sm:$0xff]  }
 0x22b   : > { %3236 = vmatpush1.bf16.msra.mxu0 %v8950_v14  ;;  %v2749_v14 = vpop.f32.mrf.mxu0 }
 0x22c   : > { %3237 = vmatprep.subr.bf16.mxu0 %v8958_v15 }
 0x22f   : > { %7760 = vmatmul.mubr.msk.bf16.vlgmr.msra.gmra.mxu1 %vm2692_vm0, %v10532_v36  ;;  %3238 = vmatpush1.bf16.msra.mxu0 %v8956_v37  ;;  %v10611_v36 = vpop.f32.mrf.mxu1  ;;  %v9010_v37 = vld [vmem:[#allocation2 + $0x7f0] ss:$24 sps:$4 sm:$0xff]  }
 0x230   : > { %4570 = vmatpush1.bf16.msra.mxu1 %v8953_v17  ;;  %3239 = vmatprep.subr.bf16.mxu0 %v8964_v47  ;;  %v9007_v17 = vld [vmem:[#allocation6 + $0x1c0] ss:$16 sps:$4 sm:$0xff]   ;;  %v9015_v47 = vld [vmem:[#allocation6 + $0x1a4] ss:$16 sps:$4 sm:$0xff]  }
 0x231   : > { %4571 = vmatprep.subr.bf16.mxu1 %v8961_v46  ;;  %3324 = vmatprep.mubr.bf16.mxu1 %v10156_v29  ;;  %v8982_v29 = vld [vmem:[#allocation2 + $0x8e4] ss:$24 sps:$4 sm:$0xff]   ;;  %v10615_v63 = vpop.f32.mrf.mxu1 }
 0x233   : > { %3240 = vmatpush1.bf16.msra.mxu0 %v8962_v25  ;;  %v10619_v7 = vpop.f32.mrf.mxu1  ;;  %v2789_v25 = vadd.f32 %v10600_v45, %v2736_v42 }
 0x234   : > { %4572 = vmatpush1.bf16.msra.mxu1 %v8959_v53  ;;  %3241 = vmatprep.subr.bf16.mxu0 %v8970_v54  ;;  %v9018_v53 = vld [vmem:[#allocation2 + $0x7c4] ss:$24 sps:$4 sm:$0xff]   ;;  %v10650_v54 = vsub.s32 0, %v10621_v12 }
 0x235   : > { %4573 = vmatprep.subr.bf16.mxu1 %v8967_v41  ;;  %v10625_v16 = vpop.f32.mrf.mxu1  ;;  %v2740_v41 = vadd.f32 %v2739_v9, %v10638_v32 }
 0x237   : > { %7761 = vmatmul.mubr.msk.bf16.gmra.mxu1 %vm2692_vm0, %v10551_v3  ;;  %3242 = vmatpush1.bf16.msra.mxu0 %v8968_v49  ;;  %v8983_v3 = vld [vmem:[#allocation6 + $0x40] ss:$16 sps:$4 sm:$0xff]   ;;  %v10634_v26 = vpop.f32.mrf.mxu1  ;;  %v2793_v45 = vadd.f32 %v10609_v55, %v2740_v41  ;;  %v2750_v55 = vadd.f32 %v2749_v14, %v10638_v32  ;;  %v9033_v41 = vld [vmem:[#allocation6 + $0x124] ss:$16 sps:$4 sm:$0xff]  }
 0x238   : > { %4574 = vmatpush1.bf16.msra.mxu1 %v8965_v52  ;;  %3243 = vmatprep.subr.bf16.mxu0 %v8976_v57  ;;  %v9013_v57 = vld [vmem:[#allocation6 + $0x1a0] ss:$16 sps:$4 sm:$0xff]  }
 0x239   : > { %4575 = vmatprep.subr.bf16.mxu1 %v8973_v56  ;;  %v2894_v34 = vpop.f32.mrf.mxu1 }
 0x23b   : > { %3244 = vmatpush1.bf16.msra.mxu0 %v8974_v59  ;;  %v10643_v15 = vpop.f32.mrf.mxu1 }
 0x23c   : > { %4576 = vmatpush1.bf16.msra.mxu1 %v8971_v58  ;;  %3245 = vmatprep.subr.bf16.mxu0 %v8982_v29  ;;  %v9016_v58 = vld [vmem:[#allocation2 + $0x7c0] ss:$24 sps:$4 sm:$0xff]   ;;  %v9024_v29 = vld [vmem:[#allocation2 + $0x794] ss:$24 sps:$4 sm:$0xff]  }
 0x23d   : > { %4577 = vmatprep.subr.bf16.mxu1 %v8979_v62  ;;  %v2898_v49 = vpop.f32.mrf.mxu1  ;;  %v9021_v62 = vld [vmem:[#allocation6 + $0x184] ss:$16 sps:$4 sm:$0xff]  }
 0x23f   : > { %3246 = vmatpush2.bf16.msra.mxu0 %v8980_v1  ;;  %v10652_v61 = vpop.f32.mrf.mxu1  ;;  %v1195_v1 = vrot.slane %v10627_v20, %v10650_v54 }
 0x240   : > { %4578 = vmatpush1.bf16.msra.mxu1 %v8977_v0  ;;  %3247 = vmatprep.subr.bf16.mxu0 %v8988_v5 }
 0x241   : > { %4579 = vmatprep.subr.bf16.mxu1 %v8985_v4 }
 0x243   : > { %3248 = vmatpush2.bf16.msra.mxu0 %v8986_v8  ;;  %v2738_v8 = vadd.f32 %v10617_v2, %v1195_v1 }
 0x244   : > { %4580 = vmatpush1.bf16.msra.mxu1 %v8983_v3  ;;  %3249 = vmatprep.subr.bf16.mxu0 %v8994_v11  ;;  %v9022_v3 = vld [vmem:[#allocation2 + $0x790] ss:$24 sps:$4 sm:$0xff]  }
 0x245   : > { %4581 = vmatprep.subr.bf16.mxu1 %v8991_v10  ;;  %v2904_v10 = vpop.f32.mrf.mxu1  ;;  %v9027_v11 = vld [vmem:[#allocation6 + $0x164] ss:$16 sps:$4 sm:$0xff]  }
 0x247   : > { %3250 = vmatpush2.bf16.msra.mxu0 %v8992_v19 }
 0x248   : > { %4582 = vmatpush1.bf16.msra.mxu1 %v8989_v18  ;;  %3251 = vmatprep.subr.bf16.mxu0 %v9000_v22  ;;  %v9039_v18 = vld [vmem:[#allocation6 + $0x2e4] ss:$16 sps:$4 sm:$0xff]   ;;  %v2734_v22 = vadd.f32 %v10607_v50, %v1195_v1  ;;  %v9037_v50 = vld [vmem:[#allocation6 + $0x2e0] ss:$16 sps:$4 sm:$0xff]  }
 0x249   : > { %4583 = vmatprep.subr.bf16.mxu1 %v8997_v21 }
 0x24a   : > { %v2787_v14 = vadd.f32 %v10594_v43, %v2734_v22  ;;  %v9133_v22 = vld [vmem:[#allocation6 + $0x4e0] ss:$16 sps:$4 sm:$0xff]  }
 0x24b   : > { %3252 = vmatpush2.bf16.msra.mxu0 %v8998_v28  ;;  %v2746_v28 = vadd.f32 %v10632_v24, %v10638_v32 }
 0x24c   : > { %4584 = vmatpush1.bf16.msra.mxu1 %v8995_v27  ;;  %3253 = vmatprep.subr.bf16.mxu0 %v9006_v31  ;;  %v2791_v31 = vadd.f32 %v10602_v48, %v2738_v8  ;;  %v9051_v8 = vld [vmem:[#allocation6 + $0x264] ss:$16 sps:$4 sm:$0xff]  }
 0x24d   : > { %4585 = vmatprep.subr.bf16.mxu1 %v9003_v30  ;;  %v9025_v30 = vld [vmem:[#allocation6 + $0x160] ss:$16 sps:$4 sm:$0xff]   ;;  %v2799_v24 = vadd.f32 %v10615_v63, %v2746_v28  ;;  %v2744_v63 = vadd.f32 %v10623_v13, %v1195_v1 }
 0x24e   : > { %v10645_v46 = vpop.f32.mrf.mxu0 }
 0x24f   : > { %3254 = vmatpush2.bf16.msra.mxu0 %v9004_v38  ;;  %v9030_v38 = vld [vmem:[#allocation6 + $0x144] ss:$16 sps:$4 sm:$0xff]   ;;  %v2797_v13 = vadd.f32 %v10611_v36, %v2744_v63  ;;  %v9046_v36 = vld [vmem:[#allocation6 + $0x280] ss:$16 sps:$4 sm:$0xff]  }
 0x250   : > { %4586 = vmatpush2.bf16.msra.mxu1 %v9001_v35  ;;  %v2841_v52 = vpop.f32.mrf.mxu0  ;;  %3255 = vmatprep.subr.bf16.mxu0 %v9012_v40  ;;  %v2906_v35 = vpop.f32.mrf.mxu1  ;;  %v9165_v63 = vld [vmem:[#allocation6 + $0x444] ss:$16 sps:$4 sm:$0xff]  }
 0x251   : > { %4587 = vmatprep.subr.bf16.mxu1 %v9009_v39  ;;  %v2842_v56 = vadd.f32 %v2841_v52, %v2789_v25  ;;  %v2803_v39 = vadd.f32 %v10625_v16, %v2750_v55  ;;  %v2840_v16 = vadd.f32 %v10645_v46, %v2787_v14  ;;  %v9028_v25 = vld [vmem:[#allocation6 + $0x140] ss:$16 sps:$4 sm:$0xff]   ;;  %v9042_v52 = vld [vmem:[#allocation6 + $0x2c4] ss:$16 sps:$4 sm:$0xff]  }
 0x252   : > { %v2843_v59 = vpop.f32.mrf.mxu0  ;;  %v9031_v46 = vld [vmem:[#allocation6 + $0x120] ss:$16 sps:$4 sm:$0xff]  }
 0x253   : > { %v2895_v0 = vadd.f32 %v2894_v34, %v2842_v56  ;;  %3256 = vmatpush2.bf16.msra.mxu0 %v9010_v37  ;;  %v9058_v14 = vld [vmem:[#allocation6 + $0x200] ss:$16 sps:$4 sm:$0xff]  }
 0x254   : > { %4588 = vmatpush2.bf16.msra.mxu1 %v9007_v17  ;;  %v2845_v4 = vpop.f32.mrf.mxu0  ;;  %3257 = vmatprep.subr.bf16.mxu0 %v9018_v53  ;;  %v2844_v17 = vadd.f32 %v2843_v59, %v2791_v31  ;;  %v2908_v53 = vpop.f32.mrf.mxu1  ;;  %v9045_v59 = vld [vmem:[#allocation6 + $0x2a4] ss:$16 sps:$4 sm:$0xff]  }
 0x255   : > { %4589 = vmatprep.subr.bf16.mxu1 %v9015_v47  ;;  %v2846_v5 = vadd.f32 %v2845_v4, %v2793_v45  ;;  %v3336_v19 = vmul.f32 0.01, %v2895_v0  ;;  %v2748_v47 = vadd.f32 %v10640_v33, %v1195_v1  ;;  %v9034_v4 = vld [vmem:[#allocation6 + $0x100] ss:$16 sps:$4 sm:$0xff]   ;;  %v9141_v31 = vld [vmem:[#allocation6 + $0x4c4] ss:$16 sps:$4 sm:$0xff]  }
 0x256   : > { %v10658_v9 = vpop.f32.mrf.mxu0  ;;  %v2897_v56 = vadd.f32 %v10643_v15, %v2844_v17  ;;  %v9151_v17 = vld [vmem:[#allocation6 + $0x480] ss:$16 sps:$4 sm:$0xff]  }
 0x257   : > { %v2899_v21 = vadd.f32 %v2898_v49, %v2846_v5  ;;  %3258 = vmatpush2.bf16.msra.mxu0 %v9016_v58  ;;  %v3360_v40 = vmax.f32 %v2895_v0, %v3336_v19  ;;  %v9040_v49 = vld [vmem:[#allocation6 + $0x2c0] ss:$16 sps:$4 sm:$0xff]   ;;  %v9036_v58 = vld [vmem:[#allocation6 + $0x104] ss:$16 sps:$4 sm:$0xff]   ;;  %v2850_v1 = vadd.f32 %v10658_v9, %v2797_v13 }
 0x258   : > { %4590 = vmatpush2.bf16.msra.mxu1 %v9013_v57  ;;  %v2851_v27 = vpop.f32.mrf.mxu0  ;;  %3259 = vmatprep.subr.bf16.mxu0 %v9024_v29  ;;  %v2893_v57 = vadd.f32 %v10634_v26, %v2840_v16  ;;  %v9043_v29 = vld [vmem:[#allocation6 + $0x2a0] ss:$16 sps:$4 sm:$0xff]   ;;  %v3341_v45 = vmul.f32 0.01, %v2897_v56  ;;  %v9054_v19 = vld [vmem:[#allocation6 + $0x244] ss:$16 sps:$4 sm:$0xff]  }
 0x259   : > { %4591 = vmatprep.subr.bf16.mxu1 %v9021_v62  ;;  %v3342_v2 = vmul.f32 0.01, %v2899_v21  ;;  %v2852_v43 = vadd.f32 %v2851_v27, %v2799_v24  ;;  %v9049_v9 = vld [vmem:[#allocation6 + $0x260] ss:$16 sps:$4 sm:$0xff]   ;;  %v9135_v27 = vld [vmem:[#allocation6 + $0x4e4] ss:$16 sps:$4 sm:$0xff]  }
 0x25a   : > { %v2853_v34 = vpop.f32.mrf.mxu0  ;;  %v3365_v5 = vmax.f32 %v2897_v56, %v3341_v45  ;;  %v9063_v24 = vld [vmem:[#allocation6 + $0x3e4] ss:$16 sps:$4 sm:$0xff]  }
 0x25b   : > { %v3366_v42 = vmax.f32 %v2899_v21, %v3342_v2  ;;  %3260 = vmatpush2.bf16.msra.mxu0 %v9022_v3  ;;  %v2905_v62 = vadd.f32 %v2904_v10, %v2852_v43  ;;  %v9052_v2 = vld [vmem:[#allocation6 + $0x240] ss:$16 sps:$4 sm:$0xff]   ;;  %v9159_v16 = vld [vmem:[#allocation6 + $0x464] ss:$16 sps:$4 sm:$0xff]  }
 0x25c   : > { %4592 = vmatpush2.bf16.msra.mxu1 %v9019_v6  ;;  %v2855_v37 = vpop.f32.mrf.mxu0  ;;  %4622 = vmatprep.subr.bf16.mxu0 %v9039_v18  ;;  %v9064_v43 = vld [vmem:[#allocation6 + $0x3c0] ss:$16 sps:$4 sm:$0xff]   ;;  %v9069_v56 = vld [vmem:[#allocation6 + $0x3a4] ss:$16 sps:$4 sm:$0xff]  }
 0x25d   : > { %4593 = vmatprep.subr.bf16.mxu1 %v9027_v11  ;;  %v2856_v32 = vadd.f32 %v2855_v37, %v2803_v39  ;;  %v10668_v48 = vpack.c.bf16 %v3366_v42, %v3360_v40  ;;  %v3348_v26 = vmul.f32 0.01, %v2905_v62  ;;  %v2903_v11 = vadd.f32 %v10652_v61, %v2850_v1  ;;  %v9060_v40 = vld [vmem:[#allocation6 + $0x204] ss:$16 sps:$4 sm:$0xff]   ;;  %v9145_v42 = vld [vmem:[#allocation6 + $0x4a0] ss:$16 sps:$4 sm:$0xff]  }
 0x25e   : > { %3262 = vmatmul.mubr.bf16.vlgmr.msra.gmra.mxu0 %v10558_v44  ;;  %v2801_v44 = vadd.f32 %v10619_v7, %v2748_v47  ;;  %v9048_v7 = vld [vmem:[#allocation6 + $0x284] ss:$16 sps:$4 sm:$0xff]   ;;  %v9157_v47 = vld [vmem:[#allocation6 + $0x460] ss:$16 sps:$4 sm:$0xff]  }
 0x25f   : > { %4601 = vmatprep.mubr.bf16.mxu1 %v10668_v48  ;;  %3271 = vmatprep.mubr.bf16.mxu0 %v10562_v51  ;;  %v2909_v33 = vadd.f32 %v2908_v53, %v2856_v32  ;;  %v3335_v51 = vmul.f32 0.01, %v2893_v57  ;;  %v3372_v18 = vmax.f32 %v2905_v62, %v3348_v26  ;;  %v3347_v28 = vmul.f32 0.01, %v2903_v11  ;;  %v9153_v37 = vld [vmem:[#allocation6 + $0x484] ss:$16 sps:$4 sm:$0xff]  }
 0x260   : > { %4594 = vmatpush2.bf16.msra.mxu1 %v9025_v30  ;;  %4623 = vmatpush1.bf16.msra.mxu0 %v9037_v50  ;;  %v2854_v15 = vadd.f32 %v2853_v34, %v2801_v44  ;;  %v9139_v30 = vld [vmem:[#allocation6 + $0x4c0] ss:$16 sps:$4 sm:$0xff]   ;;  %v9147_v50 = vld [vmem:[#allocation6 + $0x4a4] ss:$16 sps:$4 sm:$0xff]  }
 0x261   : > { %4595 = vmatprep.subr.bf16.mxu1 %v9030_v38  ;;  %4624 = vmatprep.subr.bf16.mxu0 %v9042_v52  ;;  %v3354_v0 = vmul.f32 0.01, %v2909_v33  ;;  %v3359_v10 = vmax.f32 %v2893_v57, %v3335_v51  ;;  %v3371_v34 = vmax.f32 %v2903_v11, %v3347_v28  ;;  %v9055_v38 = vld [vmem:[#allocation6 + $0x220] ss:$16 sps:$4 sm:$0xff]   ;;  %v9066_v53 = vld [vmem:[#allocation6 + $0x3c4] ss:$16 sps:$4 sm:$0xff]  }
 0x262   : > { %v2907_v6 = vadd.f32 %v2906_v35, %v2854_v15  ;;  %v9057_v35 = vld [vmem:[#allocation6 + $0x224] ss:$16 sps:$4 sm:$0xff]   ;;  %v9061_v32 = vld [vmem:[#allocation6 + $0x3e0] ss:$16 sps:$4 sm:$0xff]   ;;  %v10698_v52 = vsub.s32 3, %v10621_v12 }
 0x263   : > { %v3378_v3 = vmax.f32 %v2909_v33, %v3354_v0  ;;  %v9169_v44 = vld [vmem:[#allocation6 + $0x420] ss:$16 sps:$4 sm:$0xff]   ;;  %v9171_v57 = vld [vmem:[#allocation6 + $0x424] ss:$16 sps:$4 sm:$0xff]  }
 0x264   : > { %4596 = vmatpush2.bf16.msra.mxu1 %v9028_v25  ;;  %4625 = vmatpush1.bf16.msra.mxu0 %v9040_v49  ;;  %v3353_v55 = vmul.f32 0.01, %v2907_v6  ;;  %v10693_v25 = vsub.s32 2, %v10621_v12  ;;  %v9163_v49 = vld [vmem:[#allocation6 + $0x440] ss:$16 sps:$4 sm:$0xff]  }
 0x265   : > { %4597 = vmatprep.subr.bf16.mxu1 %v9033_v41  ;;  %4626 = vmatprep.subr.bf16.mxu0 %v9045_v59  ;;  %v10685_v21 = vpack.c.bf16 %v3378_v3, %v3372_v18  ;;  %v10695_v41 = vpop.f32.mrf.mxu1  ;;  %v9070_v62 = vld [vmem:[#allocation6 + $0x380] ss:$16 sps:$4 sm:$0xff]   ;;  %v9177_v13 = vld [vmem:[#allocation6 + $0x404] ss:$16 sps:$4 sm:$0xff]  }
 0x266   : > { %3272 = vmatmul.mubr.bf16.gmra.mxu0 %v10568_v60  ;;  %v10683_v60 = vpack.c.bf16 %v3365_v5, %v3359_v10  ;;  %v3377_v61 = vmax.f32 %v2907_v6, %v3353_v55  ;;  %v9075_v45 = vld [vmem:[#allocation6 + $0x364] ss:$16 sps:$4 sm:$0xff]   ;;  %v9073_v0 = vld [vmem:[#allocation6 + $0x360] ss:$16 sps:$4 sm:$0xff]  }
 0x267   : > { %v10700_v33 = vpop.f32.mrf.mxu1  ;;  %v9181_v51 = vld [vmem:[#allocation6 + $0x5e0] ss:$16 sps:$4 sm:$0xff]   ;;  %v9183_v1 = vld [vmem:[#allocation6 + $0x5e4] ss:$16 sps:$4 sm:$0xff]  }
 0x268   : > { %4598 = vmatpush2.bf16.msra.mxu1 %v9031_v46  ;;  %4627 = vmatpush1.bf16.msra.mxu0 %v9043_v29  ;;  %v10689_v39 = vpack.c.bf16 %v3377_v61, %v3371_v34  ;;  %v9067_v46 = vld [vmem:[#allocation6 + $0x3a0] ss:$16 sps:$4 sm:$0xff]   ;;  %v9081_v11 = vld [vmem:[#allocation6 + $0x324] ss:$16 sps:$4 sm:$0xff]  }
 0x269   : > { %4599 = vmatprep.subr.bf16.mxu1 %v9036_v58  ;;  %4628 = vmatprep.subr.bf16.mxu0 %v9048_v7  ;;  %v9072_v58 = vld [vmem:[#allocation6 + $0x384] ss:$16 sps:$4 sm:$0xff]   ;;  %v2949_v59 = vpop.f32.mrf.mxu1  ;;  %v9175_v29 = vld [vmem:[#allocation6 + $0x400] ss:$16 sps:$4 sm:$0xff]  }
 0x26a   : > { %v9076_v6 = vld [vmem:[#allocation6 + $0x340] ss:$16 sps:$4 sm:$0xff]   ;;  %v9084_v61 = vld [vmem:[#allocation6 + $0x304] ss:$16 sps:$4 sm:$0xff]  }
 0x26b   : > { %v10702_v15 = vpop.f32.mrf.mxu1  ;;  %v9187_v3 = vld [vmem:[#allocation6 + $0x5c0] ss:$16 sps:$4 sm:$0xff]  }
 0x26c   : > { %4600 = vmatpush2.bf16.msra.mxu1 %v9034_v4  ;;  %4629 = vmatpush1.bf16.msra.mxu0 %v9046_v36  ;;  %v9078_v4 = vld [vmem:[#allocation6 + $0x344] ss:$16 sps:$4 sm:$0xff]   ;;  %v9193_v55 = vld [vmem:[#allocation6 + $0x5a0] ss:$16 sps:$4 sm:$0xff]  }
 0x26d   : > { %4630 = vmatprep.subr.bf16.mxu0 %v9051_v8  ;;  %4675 = vmatprep.subr.bf16.mxu1 %v9135_v27  ;;  %v2955_v26 = vpop.f32.mrf.mxu1  ;;  %v9189_v36 = vld [vmem:[#allocation6 + $0x5c4] ss:$16 sps:$4 sm:$0xff]   ;;  %v9199_v34 = vld [vmem:[#allocation6 + $0x580] ss:$16 sps:$4 sm:$0xff]  }
 0x26f   : > { %4602 = vmatmul.mubr.bf16.vlgmr.msra.gmra.mxu1 %v10683_v60  ;;  %v2957_v10 = vpop.f32.mrf.mxu1 }
 0x270   : > { %4611 = vmatprep.mubr.bf16.mxu1 %v10685_v21  ;;  %4676 = vmatpush1.bf16.msra.mxu1 %v9133_v22  ;;  %v1203_v22 = vrot.slane %v10627_v20, %v10693_v25 }
 0x271   : > { %4631 = vmatpush1.bf16.msra.mxu0 %v9049_v9  ;;  %4677 = vmatprep.subr.bf16.mxu1 %v9141_v31  ;;  %v9079_v9 = vld [vmem:[#allocation6 + $0x320] ss:$16 sps:$4 sm:$0xff]   ;;  %v2959_v28 = vpop.f32.mrf.mxu1 }
 0x272   : > { %4632 = vmatprep.subr.bf16.mxu0 %v9054_v19  ;;  %v9195_v19 = vld [vmem:[#allocation6 + $0x5a4] ss:$16 sps:$4 sm:$0xff]   ;;  %v9082_v31 = vld [vmem:[#allocation6 + $0x300] ss:$16 sps:$4 sm:$0xff]  }
 0x274   : > { %4678 = vmatpush1.bf16.msra.mxu1 %v9139_v30 }
 0x275   : > { %4633 = vmatpush1.bf16.msra.mxu0 %v9052_v2  ;;  %4679 = vmatprep.subr.bf16.mxu1 %v9147_v50  ;;  %v1207_v2 = vrot.slane %v10627_v20, %v10698_v52  ;;  %v9087_v50 = vld [vmem:[#allocation6 + $0xec] ss:$16 sps:$4 sm:$0xff]  }
 0x276   : > { %4634 = vmatprep.subr.bf16.mxu0 %v9057_v35  ;;  %v9201_v35 = vld [vmem:[#allocation6 + $0x584] ss:$16 sps:$4 sm:$0xff]  }
 0x277   : > { %4612 = vmatmul.mubr.bf16.gmra.mxu1 %v10689_v39 }
 0x278   : > { %4680 = vmatpush1.bf16.msra.mxu1 %v9145_v42 }
 0x279   : > { %4635 = vmatpush1.bf16.msra.mxu0 %v9055_v38  ;;  %4681 = vmatprep.subr.bf16.mxu1 %v9153_v37  ;;  %v2946_v38 = vadd.f32 %v10695_v41, %v1203_v22  ;;  %v2950_v37 = vadd.f32 %v2949_v59, %v1203_v22  ;;  %v9213_v59 = vld [vmem:[#allocation6 + $0x544] ss:$16 sps:$4 sm:$0xff]  }
 0x27a   : > { %4636 = vmatprep.subr.bf16.mxu0 %v9060_v40  ;;  %v2961_v40 = vpop.f32.mrf.mxu1 }
 0x27c   : > { %4682 = vmatpush1.bf16.msra.mxu1 %v9151_v17 }
 0x27d   : > { %4637 = vmatpush1.bf16.msra.mxu0 %v9058_v14  ;;  %4683 = vmatprep.subr.bf16.mxu1 %v9159_v16  ;;  %v2948_v14 = vadd.f32 %v10700_v33, %v1207_v2  ;;  %v2956_v33 = vadd.f32 %v2955_v26, %v1203_v22 }
 0x27e   : > { %4638 = vmatprep.subr.bf16.mxu0 %v9063_v24 }
 0x280   : > { %4684 = vmatpush1.bf16.msra.mxu1 %v9157_v47  ;;  %v9207_v47 = vld [vmem:[#allocation6 + $0x564] ss:$16 sps:$4 sm:$0xff]  }
 0x281   : > { %4639 = vmatpush2.bf16.msra.mxu0 %v9061_v32  ;;  %4685 = vmatprep.subr.bf16.mxu1 %v9165_v63  ;;  %v2952_v63 = vadd.f32 %v10702_v15, %v1207_v2 }
 0x282   : > { %4640 = vmatprep.subr.bf16.mxu0 %v9066_v53  ;;  %v9205_v53 = vld [vmem:[#allocation6 + $0x560] ss:$16 sps:$4 sm:$0xff]  }
 0x284   : > { %4686 = vmatpush1.bf16.msra.mxu1 %v9163_v49 }
 0x285   : > { %4641 = vmatpush2.bf16.msra.mxu0 %v9064_v43  ;;  %4687 = vmatprep.subr.bf16.mxu1 %v9171_v57 }
 0x286   : > { %4642 = vmatprep.subr.bf16.mxu0 %v9069_v56 }
 0x288   : > { %4688 = vmatpush1.bf16.msra.mxu1 %v9169_v44  ;;  %v2958_v44 = vadd.f32 %v2957_v10, %v1207_v2 }
 0x289   : > { %4643 = vmatpush2.bf16.msra.mxu0 %v9067_v46  ;;  %4689 = vmatprep.subr.bf16.mxu1 %v9177_v13 }
 0x28a   : > { %4644 = vmatprep.subr.bf16.mxu0 %v9072_v58 }
 0x28c   : > { %4690 = vmatpush1.bf16.msra.mxu1 %v9175_v29 }
 0x28d   : > { %4645 = vmatpush2.bf16.msra.mxu0 %v9070_v62  ;;  %4691 = vmatprep.subr.bf16.mxu1 %v9183_v1 }
 0x28e   : > { %v2998_v7 = vpop.f32.mrf.mxu0  ;;  %4646 = vmatprep.subr.bf16.mxu0 %v9075_v45  ;;  %v9211_v45 = vld [vmem:[#allocation6 + $0x540] ss:$16 sps:$4 sm:$0xff]  }
 0x28f   : > { %v2999_v20 = vadd.f32 %v2998_v7, %v2946_v38  ;;  %v9225_v38 = vld [vmem:[#allocation6 + $0x504] ss:$16 sps:$4 sm:$0xff]  }
 0x290   : > { %v3000_v5 = vpop.f32.mrf.mxu0  ;;  %4692 = vmatpush2.bf16.msra.mxu1 %v9181_v51 }
 0x291   : > { %4647 = vmatpush2.bf16.msra.mxu0 %v9073_v0  ;;  %4693 = vmatprep.subr.bf16.mxu1 %v9189_v36  ;;  %v3001_v16 = vadd.f32 %v3000_v5, %v2948_v14 }
 0x292   : > { %v3002_v8 = vpop.f32.mrf.mxu0  ;;  %4648 = vmatprep.subr.bf16.mxu0 %v9078_v4  ;;  %v2960_v4 = vadd.f32 %v2959_v28, %v1203_v22 }
 0x293   : > { %v3003_v56 = vadd.f32 %v3002_v8, %v2950_v37  ;;  %v9219_v8 = vld [vmem:[#allocation6 + $0x524] ss:$16 sps:$4 sm:$0xff]  }
 0x294   : > { %v3004_v18 = vpop.f32.mrf.mxu0  ;;  %4694 = vmatpush2.bf16.msra.mxu1 %v9187_v3 }
 0x295   : > { %4649 = vmatpush2.bf16.msra.mxu0 %v9076_v6  ;;  %4695 = vmatprep.subr.bf16.mxu1 %v9195_v19  ;;  %v3005_v62 = vadd.f32 %v3004_v18, %v2952_v63  ;;  %v2962_v6 = vadd.f32 %v2961_v40, %v1207_v2 }
 0x296   : > { %v3008_v27 = vpop.f32.mrf.mxu0  ;;  %4650 = vmatprep.subr.bf16.mxu0 %v9081_v11 }
 0x297   : > { %v3009_v7 = vadd.f32 %v3008_v27, %v2956_v33 }
 0x298   : > { %v3010_v30 = vpop.f32.mrf.mxu0  ;;  %4696 = vmatpush2.bf16.msra.mxu1 %v9193_v55  ;;  %v9217_v55 = vld [vmem:[#allocation6 + $0x520] ss:$16 sps:$4 sm:$0xff]  }
 0x299   : > { %4651 = vmatpush2.bf16.msra.mxu0 %v9079_v9  ;;  %4697 = vmatprep.subr.bf16.mxu1 %v9201_v35  ;;  %v3011_v26 = vadd.f32 %v3010_v30, %v2958_v44 }
 0x29a   : > { %v3012_v42 = vpop.f32.mrf.mxu0  ;;  %4652 = vmatprep.subr.bf16.mxu0 %v9084_v61 }
 0x29c   : > { %v3014_v17 = vpop.f32.mrf.mxu0  ;;  %4698 = vmatpush2.bf16.msra.mxu1 %v9199_v34  ;;  %v3013_v34 = vadd.f32 %v3012_v42, %v2960_v4  ;;  %v9094_v4 = vld [vmem:[#allocation6 + $0x88] ss:$16 sps:$4 sm:$0xff]  }
 0x29d   : > { %4653 = vmatpush2.bf16.msra.mxu0 %v9082_v31  ;;  %4699 = vmatprep.subr.bf16.mxu1 %v9207_v47  ;;  %v3015_v40 = vadd.f32 %v3014_v17, %v2962_v6  ;;  %v9231_v17 = vld [vmem:[#allocation6 + $0x2ec] ss:$16 sps:$4 sm:$0xff]   ;;  %v9100_v6 = vld [vmem:[#allocation6 + $0x48] ss:$16 sps:$4 sm:$0xff]  }
 0x29e   : > { %v3104_v32 = vpop.f32.mrf.mxu0  ;;  %4728 = vmatprep.subr.bf16.mxu0 %v9087_v50 }
 0x29f   : > { %v3051_v24 = vpop.f32.mrf.mxu1 }
 0x2a0   : > { %v3052_v43 = vadd.f32 %v3051_v24, %v2999_v20  ;;  %v3106_v49 = vpop.f32.mrf.mxu0  ;;  %4700 = vmatpush2.bf16.msra.mxu1 %v9205_v53  ;;  %v9223_v20 = vld [vmem:[#allocation6 + $0x500] ss:$16 sps:$4 sm:$0xff]   ;;  %v9085_v53 = vld [vmem:[#allocation6 + $0xe8] ss:$16 sps:$4 sm:$0xff]  }
 0x2a1   : > { %v3053_v41 = vpop.f32.mrf.mxu1  ;;  %4701 = vmatprep.subr.bf16.mxu1 %v9213_v59 }
 0x2a2   : > { %v3054_v46 = vadd.f32 %v3053_v41, %v3001_v16  ;;  %v3108_v58 = vpop.f32.mrf.mxu0  ;;  %v3105_v0 = vadd.f32 %v3104_v32, %v3052_v43  ;;  %v9090_v43 = vld [vmem:[#allocation6 + $0xcc] ss:$16 sps:$4 sm:$0xff]  }
 0x2a3   : > { %v3055_v57 = vpop.f32.mrf.mxu1 }
 0x2a4   : > { %v3107_v29 = vadd.f32 %v3106_v49, %v3054_v46  ;;  %v3056_v13 = vadd.f32 %v3055_v57, %v3003_v56  ;;  %v3110_v1 = vpop.f32.mrf.mxu0  ;;  %4702 = vmatpush2.bf16.msra.mxu1 %v9211_v45  ;;  %v3337_v19 = vmul.f32 0.01, %v3105_v0  ;;  %v9088_v57 = vld [vmem:[#allocation6 + $0xc8] ss:$16 sps:$4 sm:$0xff]  }
 0x2a5   : > { %v3057_v51 = vpop.f32.mrf.mxu1  ;;  %4703 = vmatprep.subr.bf16.mxu1 %v9219_v8  ;;  %v9108_v8 = vld [vmem:[#allocation6 + $0xc] ss:$16 sps:$4 sm:$0xff]  }
 0x2a6   : > { %v3109_v5 = vadd.f32 %v3108_v58, %v3056_v13  ;;  %v3058_v15 = vadd.f32 %v3057_v51, %v3005_v62  ;;  %v3114_v36 = vpop.f32.mrf.mxu0  ;;  %v3338_v10 = vmul.f32 0.01, %v3107_v29  ;;  %v3361_v24 = vmax.f32 %v3105_v0, %v3337_v19  ;;  %v9093_v62 = vld [vmem:[#allocation6 + $0xac] ss:$16 sps:$4 sm:$0xff]   ;;  %v9091_v51 = vld [vmem:[#allocation6 + $0xa8] ss:$16 sps:$4 sm:$0xff]  }
 0x2a7   : > { %v3061_v3 = vpop.f32.mrf.mxu1  ;;  %v9115_v19 = vld [vmem:[#allocation6 + $0x1a8] ss:$16 sps:$4 sm:$0xff]  }
 0x2a8   : > { %v3343_v11 = vmul.f32 0.01, %v3109_v5  ;;  %v3111_v18 = vadd.f32 %v3110_v1, %v3058_v15  ;;  %v3062_v9 = vadd.f32 %v3061_v3, %v3009_v7  ;;  %v3116_v31 = vpop.f32.mrf.mxu0  ;;  %4704 = vmatpush2.bf16.msra.mxu1 %v9217_v55  ;;  %v3362_v50 = vmax.f32 %v3107_v29, %v3338_v10  ;;  %v9096_v7 = vld [vmem:[#allocation6 + $0x8c] ss:$16 sps:$4 sm:$0xff]   ;;  %v9097_v15 = vld [vmem:[#allocation6 + $0x68] ss:$16 sps:$4 sm:$0xff]  }
 0x2a9   : > { %v3063_v61 = vpop.f32.mrf.mxu1  ;;  %4705 = vmatprep.subr.bf16.mxu1 %v9225_v38  ;;  %v9105_v3 = vld [vmem:[#allocation6 + $0x2c] ss:$16 sps:$4 sm:$0xff]   ;;  %v9106_v10 = vld [vmem:[#allocation6 + $0x8] ss:$16 sps:$4 sm:$0xff]  }
 0x2aa   : > { %v3344_v27 = vmul.f32 0.01, %v3111_v18  ;;  %v3064_v22 = vadd.f32 %v3063_v61, %v3011_v26  ;;  %v3367_v28 = vmax.f32 %v3109_v5, %v3343_v11  ;;  %v3115_v35 = vadd.f32 %v3114_v36, %v3062_v9  ;;  %v3118_v2 = vpop.f32.mrf.mxu0  ;;  %v9099_v5 = vld [vmem:[#allocation6 + $0x6c] ss:$16 sps:$4 sm:$0xff]   ;;  %v9103_v36 = vld [vmem:[#allocation6 + $0x28] ss:$16 sps:$4 sm:$0xff]  }
 0x2ab   : > { %v3065_v30 = vpop.f32.mrf.mxu1  ;;  %v9102_v26 = vld [vmem:[#allocation6 + $0x4c] ss:$16 sps:$4 sm:$0xff]   ;;  %v9112_v9 = vld [vmem:[#allocation6 + $0x1c8] ss:$16 sps:$4 sm:$0xff]  }
 0x2ac   : > { %v3368_v14 = vmax.f32 %v3111_v18, %v3344_v27  ;;  %v3066_v37 = vadd.f32 %v3065_v30, %v3013_v34  ;;  %v3117_v32 = vadd.f32 %v3116_v31, %v3064_v22  ;;  %v3120_v16 = vpop.f32.mrf.mxu0  ;;  %4706 = vmatpush2.bf16.msra.mxu1 %v9223_v20  ;;  %v10713_v63 = vpack.c.bf16 %v3367_v28, %v3361_v24  ;;  %v9111_v11 = vld [vmem:[#allocation6 + $0x1ec] ss:$16 sps:$4 sm:$0xff]   ;;  %v9118_v31 = vld [vmem:[#allocation6 + $0x188] ss:$16 sps:$4 sm:$0xff]  }
 0x2ad   : > { %v3067_v47 = vpop.f32.mrf.mxu1  ;;  %v3349_v56 = vmul.f32 0.01, %v3115_v35  ;;  %4781 = vmatprep.subr.bf16.mxu1 %v9231_v17  ;;  %v9114_v18 = vld [vmem:[#allocation6 + $0x1cc] ss:$16 sps:$4 sm:$0xff]   ;;  %v9121_v27 = vld [vmem:[#allocation6 + $0x168] ss:$16 sps:$4 sm:$0xff]  }
 0x2ae   : > { %v3068_v42 = vadd.f32 %v3067_v47, %v3015_v40  ;;  %v3119_v41 = vadd.f32 %v3118_v2, %v3066_v37  ;;  %v10711_v49 = vpack.c.bf16 %v3368_v14, %v3362_v50  ;;  %v3350_v33 = vmul.f32 0.01, %v3117_v32  ;;  %v9117_v55 = vld [vmem:[#allocation6 + $0x1ac] ss:$16 sps:$4 sm:$0xff]   ;;  %v9124_v28 = vld [vmem:[#allocation6 + $0x148] ss:$16 sps:$4 sm:$0xff]  }
 0x2af   : > { %v3373_v45 = vmax.f32 %v3115_v35, %v3349_v56  ;;  %v9120_v61 = vld [vmem:[#allocation6 + $0x18c] ss:$16 sps:$4 sm:$0xff]   ;;  %v9127_v30 = vld [vmem:[#allocation6 + $0x128] ss:$16 sps:$4 sm:$0xff]  }
 0x2b0   : > { %v3355_v46 = vmul.f32 0.01, %v3119_v41  ;;  %v3121_v44 = vadd.f32 %v3120_v16, %v3068_v42  ;;  %4654 = vmatprep.mubr.bf16.mxu0 %v10711_v49  ;;  %v3374_v29 = vmax.f32 %v3117_v32, %v3350_v33  ;;  %v9123_v34 = vld [vmem:[#allocation6 + $0x16c] ss:$16 sps:$4 sm:$0xff]   ;;  %v9130_v38 = vld [vmem:[#allocation6 + $0x108] ss:$16 sps:$4 sm:$0xff]  }
 0x2b1   : > { %4655 = vmatmul.mubr.bf16.vlgmr.msra.gmra.mxu0 %v10713_v63  ;;  %v9126_v22 = vld [vmem:[#allocation6 + $0x14c] ss:$16 sps:$4 sm:$0xff]   ;;  %v9136_v50 = vld [vmem:[#allocation6 + $0x4e8] ss:$16 sps:$4 sm:$0xff]  }
 0x2b2   : > { %v3356_v58 = vmul.f32 0.01, %v3121_v44  ;;  %4729 = vmatpush1.bf16.msra.mxu0 %v9085_v53  ;;  %v3379_v59 = vmax.f32 %v3119_v41, %v3355_v46  ;;  %v9129_v35 = vld [vmem:[#allocation6 + $0x12c] ss:$16 sps:$4 sm:$0xff]   ;;  %v9142_v37 = vld [vmem:[#allocation6 + $0x4c8] ss:$16 sps:$4 sm:$0xff]  }
 0x2b3   : > { %4730 = vmatprep.subr.bf16.mxu0 %v9090_v43  ;;  %v9132_v2 = vld [vmem:[#allocation6 + $0x10c] ss:$16 sps:$4 sm:$0xff]   ;;  %v9148_v24 = vld [vmem:[#allocation6 + $0x4a8] ss:$16 sps:$4 sm:$0xff]  }
 0x2b4   : > { %v3380_v13 = vmax.f32 %v3121_v44, %v3356_v58  ;;  %v10719_v1 = vpack.c.bf16 %v3379_v59, %v3373_v45  ;;  %v9138_v40 = vld [vmem:[#allocation6 + $0x4ec] ss:$16 sps:$4 sm:$0xff]   ;;  %v9154_v16 = vld [vmem:[#allocation6 + $0x488] ss:$16 sps:$4 sm:$0xff]  }
 0x2b5   : > { %v9144_v14 = vld [vmem:[#allocation6 + $0x4cc] ss:$16 sps:$4 sm:$0xff]   ;;  %v9166_v41 = vld [vmem:[#allocation6 + $0x448] ss:$16 sps:$4 sm:$0xff]  }
 0x2b6   : > { %4731 = vmatpush1.bf16.msra.mxu0 %v9088_v57  ;;  %v10717_v0 = vpack.c.bf16 %v3380_v13, %v3374_v29  ;;  %v9150_v20 = vld [vmem:[#allocation6 + $0x4ac] ss:$16 sps:$4 sm:$0xff]   ;;  %v9172_v46 = vld [vmem:[#allocation6 + $0x428] ss:$16 sps:$4 sm:$0xff]  }
 0x2b7   : > { %4732 = vmatprep.subr.bf16.mxu0 %v9093_v62  ;;  %v9156_v47 = vld [vmem:[#allocation6 + $0x48c] ss:$16 sps:$4 sm:$0xff]   ;;  %v9178_v59 = vld [vmem:[#allocation6 + $0x408] ss:$16 sps:$4 sm:$0xff]  }
 0x2b8   : > { %4664 = vmatprep.mubr.bf16.mxu0 %v10717_v0  ;;  %v9168_v42 = vld [vmem:[#allocation6 + $0x44c] ss:$16 sps:$4 sm:$0xff]   ;;  %v9184_v45 = vld [vmem:[#allocation6 + $0x5e8] ss:$16 sps:$4 sm:$0xff]  }
 0x2b9   : > { %4665 = vmatmul.mubr.bf16.gmra.mxu0 %v10719_v1  ;;  %v9174_v33 = vld [vmem:[#allocation6 + $0x42c] ss:$16 sps:$4 sm:$0xff]  }
 0x2ba   : > { %4733 = vmatpush1.bf16.msra.mxu0 %v9091_v51  ;;  %4760 = vmatprep.mubr.bf16.mxu0 %v10668_v48  ;;  %v9109_v48 = vld [vmem:[#allocation6 + $0x1e8] ss:$16 sps:$4 sm:$0xff]   ;;  %v9180_v57 = vld [vmem:[#allocation6 + $0x40c] ss:$16 sps:$4 sm:$0xff]  }
 0x2bb   : > { %4734 = vmatprep.subr.bf16.mxu0 %v9096_v7  ;;  %v9186_v29 = vld [vmem:[#allocation6 + $0x5ec] ss:$16 sps:$4 sm:$0xff]  }
 0x2bc   : > { %v9192_v7 = vld [vmem:[#allocation6 + $0x5cc] ss:$16 sps:$4 sm:$0xff]  }
 0x2be   : > { %4735 = vmatpush1.bf16.msra.mxu0 %v9094_v4 }
 0x2bf   : > { %4736 = vmatprep.subr.bf16.mxu0 %v9099_v5 }
 0x2c2   : > { %4737 = vmatpush1.bf16.msra.mxu0 %v9097_v15  ;;  %v9190_v15 = vld [vmem:[#allocation6 + $0x5c8] ss:$16 sps:$4 sm:$0xff]  }
 0x2c3   : > { %4738 = vmatprep.subr.bf16.mxu0 %v9102_v26  ;;  %v1210_v26 = vsub.s32 4, %v10621_v12 }
 0x2c6   : > { %4739 = vmatpush1.bf16.msra.mxu0 %v9100_v6  ;;  %v9198_v6 = vld [vmem:[#allocation6 + $0x5ac] ss:$16 sps:$4 sm:$0xff]  }
 0x2c7   : > { %4740 = vmatprep.subr.bf16.mxu0 %v9105_v3  ;;  %v1214_v3 = vsub.s32 5, %v10621_v12 }
 0x2ca   : > { %4741 = vmatpush1.bf16.msra.mxu0 %v9103_v36 }
 0x2cb   : > { %4742 = vmatprep.subr.bf16.mxu0 %v9108_v8 }
 0x2ce   : > { %4743 = vmatpush1.bf16.msra.mxu0 %v9106_v10  ;;  %v9196_v10 = vld [vmem:[#allocation6 + $0x5a8] ss:$16 sps:$4 sm:$0xff]  }
 0x2cf   : > { %4744 = vmatprep.subr.bf16.mxu0 %v9111_v11  ;;  %v9613_v11 = vld [vmem:[#allocation4] sm:$0x3f] }
 0x2d2   : > { %4745 = vmatpush2.bf16.msra.mxu0 %v9109_v48  ;;  %v1211_v48 = vrot.slane %v9613_v11, %v1210_v26 }
 0x2d3   : > { %4746 = vmatprep.subr.bf16.mxu0 %v9114_v18  ;;  %v9204_v18 = vld [vmem:[#allocation6 + $0x58c] ss:$16 sps:$4 sm:$0xff]  }
 0x2d6   : > { %4747 = vmatpush2.bf16.msra.mxu0 %v9112_v9  ;;  %v1215_v9 = vrot.slane %v9613_v11, %v1214_v3 }
 0x2d7   : > { %4748 = vmatprep.subr.bf16.mxu0 %v9117_v55 }
 0x2da   : > { %4749 = vmatpush2.bf16.msra.mxu0 %v9115_v19 }
 0x2db   : > { %4750 = vmatprep.subr.bf16.mxu0 %v9120_v61  ;;  %v9202_v61 = vld [vmem:[#allocation6 + $0x588] ss:$16 sps:$4 sm:$0xff]  }
 0x2de   : > { %4751 = vmatpush2.bf16.msra.mxu0 %v9118_v31  ;;  %v3157_v56 = vpop.f32.mrf.mxu0 }
 0x2df   : > { %4752 = vmatprep.subr.bf16.mxu0 %v9123_v34  ;;  %v10726_v32 = vpop.f32.mrf.mxu1  ;;  %v3158_v31 = vadd.f32 %v3157_v56, %v1211_v48  ;;  %v9210_v34 = vld [vmem:[#allocation6 + $0x56c] ss:$16 sps:$4 sm:$0xff]  }
 0x2e0   : > { %v3159_v44 = vpop.f32.mrf.mxu0 }
 0x2e1   : > { %v10729_v53 = vpop.f32.mrf.mxu1 }
 0x2e2   : > { %4753 = vmatpush2.bf16.msra.mxu0 %v9121_v27  ;;  %v3161_v62 = vpop.f32.mrf.mxu0  ;;  %v3160_v27 = vadd.f32 %v3159_v44, %v1215_v9 }
 0x2e3   : > { %4754 = vmatprep.subr.bf16.mxu0 %v9126_v22  ;;  %v10731_v43 = vpop.f32.mrf.mxu1  ;;  %v3162_v12 = vadd.f32 %v3161_v62, %v1211_v48  ;;  %v9220_v62 = vld [vmem:[#allocation6 + $0x528] ss:$16 sps:$4 sm:$0xff]  }
 0x2e4   : > { %v3163_v51 = vpop.f32.mrf.mxu0 }
 0x2e5   : > { %v10733_v17 = vpop.f32.mrf.mxu1 }
 0x2e6   : > { %4755 = vmatpush2.bf16.msra.mxu0 %v9124_v28  ;;  %v3167_v4 = vpop.f32.mrf.mxu0 }
 0x2e7   : > { %4756 = vmatprep.subr.bf16.mxu0 %v9129_v35  ;;  %v9208_v35 = vld [vmem:[#allocation6 + $0x568] ss:$16 sps:$4 sm:$0xff]  }
 0x2e8   : > { %v3169_v36 = vpop.f32.mrf.mxu0 }
 0x2ea   : > { %4757 = vmatpush2.bf16.msra.mxu0 %v9127_v30  ;;  %v3171_v55 = vpop.f32.mrf.mxu0  ;;  %v3211_v30 = vadd.f32 %v10726_v32, %v3158_v31  ;;  %v9222_v32 = vld [vmem:[#allocation6 + $0x52c] ss:$16 sps:$4 sm:$0xff]  }
 0x2eb   : > { %4758 = vmatprep.subr.bf16.mxu0 %v9132_v2 }
 0x2ec   : > { %v3173_v22 = vpop.f32.mrf.mxu0 }
 0x2ee   : > { %4759 = vmatpush2.bf16.msra.mxu0 %v9130_v38  ;;  %v9216_v38 = vld [vmem:[#allocation6 + $0x54c] ss:$16 sps:$4 sm:$0xff]  }
 0x2ef   : > { %4834 = vmatprep.subr.bf16.mxu0 %v9138_v40  ;;  %v3213_v40 = vadd.f32 %v10729_v53, %v3160_v27 }
 0x2f1   : > { %4761 = vmatmul.mubr.bf16.vlgmr.msra.gmra.mxu0 %v10683_v60  ;;  %v9162_v60 = vld [vmem:[#allocation6 + $0x46c] ss:$16 sps:$4 sm:$0xff]  }
 0x2f2   : > { %4770 = vmatprep.mubr.bf16.mxu0 %v10685_v21  ;;  %4835 = vmatpush1.bf16.msra.mxu0 %v9136_v50  ;;  %v9160_v21 = vld [vmem:[#allocation6 + $0x468] ss:$16 sps:$4 sm:$0xff]   ;;  %v3164_v50 = vadd.f32 %v3163_v51, %v1215_v9 }
 0x2f3   : > { %4836 = vmatprep.subr.bf16.mxu0 %v9144_v14 }
 0x2f4   : > { %v3217_v56 = vadd.f32 %v10733_v17, %v3164_v50 }
 0x2f6   : > { %4837 = vmatpush1.bf16.msra.mxu0 %v9142_v37 }
 0x2f7   : > { %4838 = vmatprep.subr.bf16.mxu0 %v9150_v20 }
 0x2f9   : > { %4771 = vmatmul.mubr.bf16.gmra.mxu0 %v10689_v39  ;;  %v10735_v39 = vpop.f32.mrf.mxu1 }
 0x2fa   : > { %4839 = vmatpush1.bf16.msra.mxu0 %v9148_v24  ;;  %v3215_v24 = vadd.f32 %v10731_v43, %v3162_v12 }
 0x2fb   : > { %4840 = vmatprep.subr.bf16.mxu0 %v9156_v47  ;;  %v10737_v58 = vpop.f32.mrf.mxu1 }
 0x2fd   : > { %v10739_v13 = vpop.f32.mrf.mxu1 }
 0x2fe   : > { %4841 = vmatpush1.bf16.msra.mxu0 %v9154_v16  ;;  %v9214_v16 = vld [vmem:[#allocation6 + $0x548] ss:$16 sps:$4 sm:$0xff]  }
 0x2ff   : > { %4842 = vmatprep.subr.bf16.mxu0 %v9162_v60  ;;  %v10741_v5 = vpop.f32.mrf.mxu1  ;;  %v3168_v60 = vadd.f32 %v3167_v4, %v1211_v48  ;;  %v9228_v4 = vld [vmem:[#allocation6 + $0x50c] ss:$16 sps:$4 sm:$0xff]  }
 0x301   : > { %v3316_v8 = vpop.f32.mrf.mxu1  ;;  %v3221_v43 = vadd.f32 %v10735_v39, %v3168_v60 }
 0x302   : > { %4843 = vmatpush1.bf16.msra.mxu0 %v9160_v21  ;;  %v3170_v21 = vadd.f32 %v3169_v36, %v1215_v9 }
 0x303   : > { %4844 = vmatprep.subr.bf16.mxu0 %v9168_v42  ;;  %v3318_v19 = vpop.f32.mrf.mxu1 }
 0x305   : > { %v3320_v28 = vpop.f32.mrf.mxu1 }
 0x306   : > { %4845 = vmatpush1.bf16.msra.mxu0 %v9166_v41 }
 0x307   : > { %4846 = vmatprep.subr.bf16.mxu0 %v9174_v33  ;;  %v3322_v20 = vpop.f32.mrf.mxu1 }
 0x309   : > { %v3326_v41 = vpop.f32.mrf.mxu1 }
 0x30a   : > { %4847 = vmatpush1.bf16.msra.mxu0 %v9172_v46 }
 0x30b   : > { %4848 = vmatprep.subr.bf16.mxu0 %v9180_v57 }
 0x30e   : > { %4849 = vmatpush1.bf16.msra.mxu0 %v9178_v59 }
 0x30f   : > { %4850 = vmatprep.subr.bf16.mxu0 %v9186_v29  ;;  %v3172_v29 = vadd.f32 %v3171_v55, %v1211_v48 }
 0x311   : > { %v3225_v39 = vadd.f32 %v10739_v13, %v3172_v29  ;;  %v9252_v29 = vld [vmem:[#allocation6 + $0x20c] ss:$16 sps:$4 sm:$0xff]  }
 0x312   : > { %4851 = vmatpush2.bf16.msra.mxu0 %v9184_v45  ;;  %v3223_v45 = vadd.f32 %v10737_v58, %v3170_v21 }
 0x313   : > { %4852 = vmatprep.subr.bf16.mxu0 %v9192_v7  ;;  %v3328_v7 = vpop.f32.mrf.mxu1 }
 0x315   : > { %v3330_v55 = vpop.f32.mrf.mxu1 }
 0x316   : > { %4853 = vmatpush2.bf16.msra.mxu0 %v9190_v15  ;;  %v3174_v15 = vadd.f32 %v3173_v22, %v1215_v9 }
 0x317   : > { %4854 = vmatprep.subr.bf16.mxu0 %v9198_v6  ;;  %v3332_v13 = vpop.f32.mrf.mxu1 }
 0x31a   : > { %4855 = vmatpush2.bf16.msra.mxu0 %v9196_v10 }
 0x31b   : > { %4856 = vmatprep.subr.bf16.mxu0 %v9204_v18  ;;  %v9226_v18 = vld [vmem:[#allocation6 + $0x508] ss:$16 sps:$4 sm:$0xff]  }
 0x31e   : > { %4857 = vmatpush2.bf16.msra.mxu0 %v9202_v61  ;;  %v3263_v2 = vpop.f32.mrf.mxu0 }
 0x31f   : > { %4858 = vmatprep.subr.bf16.mxu0 %v9210_v34  ;;  %v3264_v14 = vadd.f32 %v3263_v2, %v3211_v30  ;;  %v9229_v30 = vld [vmem:[#allocation6 + $0x2e8] ss:$16 sps:$4 sm:$0xff]  }
 0x320   : > { %v3265_v37 = vpop.f32.mrf.mxu0 }
 0x321   : > { %v3266_v47 = vadd.f32 %v3265_v37, %v3213_v40  ;;  %v3317_v53 = vadd.f32 %v3316_v8, %v3264_v14  ;;  %v9234_v40 = vld [vmem:[#allocation6 + $0x2cc] ss:$16 sps:$4 sm:$0xff]  }
 0x322   : > { %4859 = vmatpush2.bf16.msra.mxu0 %v9208_v35  ;;  %v3267_v42 = vpop.f32.mrf.mxu0 }
 0x323   : > { %4860 = vmatprep.subr.bf16.mxu0 %v9216_v38  ;;  %v3319_v33 = vadd.f32 %v3318_v19, %v3266_v47  ;;  %v3268_v46 = vadd.f32 %v3267_v42, %v3215_v24  ;;  %v3339_v3 = vmul.f32 0.01, %v3317_v53  ;;  %v3227_v19 = vadd.f32 %v10741_v5, %v3174_v15  ;;  %v9232_v24 = vld [vmem:[#allocation6 + $0x2c8] ss:$16 sps:$4 sm:$0xff]   ;;  %v9261_v15 = vld [vmem:[#allocation6 + $0x3ac] ss:$16 sps:$4 sm:$0xff]  }
 0x324   : > { %v3269_v44 = vpop.f32.mrf.mxu0 }
 0x325   : > { %v3321_v57 = vadd.f32 %v3320_v28, %v3268_v46  ;;  %v3270_v59 = vadd.f32 %v3269_v44, %v3217_v56  ;;  %v3340_v26 = vmul.f32 0.01, %v3319_v33  ;;  %v3363_v34 = vmax.f32 %v3317_v53, %v3339_v3  ;;  %v9238_v46 = vld [vmem:[#allocation6 + $0x288] ss:$16 sps:$4 sm:$0xff]   ;;  %v9243_v53 = vld [vmem:[#allocation6 + $0x26c] ss:$16 sps:$4 sm:$0xff]  }
 0x326   : > { %4861 = vmatpush2.bf16.msra.mxu0 %v9214_v16  ;;  %v3273_v51 = vpop.f32.mrf.mxu0  ;;  %v9237_v16 = vld [vmem:[#allocation6 + $0x2ac] ss:$16 sps:$4 sm:$0xff]   ;;  %v9241_v44 = vld [vmem:[#allocation6 + $0x268] ss:$16 sps:$4 sm:$0xff]  }
 0x327   : > { %4862 = vmatprep.subr.bf16.mxu0 %v9222_v32  ;;  %v3345_v17 = vmul.f32 0.01, %v3321_v57  ;;  %v3323_v6 = vadd.f32 %v3322_v20, %v3270_v59  ;;  %v3274_v36 = vadd.f32 %v3273_v51, %v3221_v43  ;;  %v3364_v61 = vmax.f32 %v3319_v33, %v3340_v26  ;;  %v9235_v32 = vld [vmem:[#allocation6 + $0x2a8] ss:$16 sps:$4 sm:$0xff]   ;;  %v9240_v33 = vld [vmem:[#allocation6 + $0x28c] ss:$16 sps:$4 sm:$0xff]  }
 0x328   : > { %v3275_v8 = vpop.f32.mrf.mxu0  ;;  %v9244_v59 = vld [vmem:[#allocation6 + $0x248] ss:$16 sps:$4 sm:$0xff]   ;;  %v9255_v51 = vld [vmem:[#allocation6 + $0x3ec] ss:$16 sps:$4 sm:$0xff]  }
 0x329   : > { %v3346_v10 = vmul.f32 0.01, %v3323_v6  ;;  %v3276_v11 = vadd.f32 %v3275_v8, %v3223_v45  ;;  %v3369_v48 = vmax.f32 %v3321_v57, %v3345_v17  ;;  %v3327_v27 = vadd.f32 %v3326_v41, %v3274_v36  ;;  %v9246_v57 = vld [vmem:[#allocation6 + $0x24c] ss:$16 sps:$4 sm:$0xff]   ;;  %v9247_v43 = vld [vmem:[#allocation6 + $0x228] ss:$16 sps:$4 sm:$0xff]  }
 0x32a   : > { %4863 = vmatpush2.bf16.msra.mxu0 %v9220_v62  ;;  %v3277_v58 = vpop.f32.mrf.mxu0  ;;  %v9249_v62 = vld [vmem:[#allocation6 + $0x22c] ss:$16 sps:$4 sm:$0xff]   ;;  %v9250_v45 = vld [vmem:[#allocation6 + $0x208] ss:$16 sps:$4 sm:$0xff]  }
 0x32b   : > { %4864 = vmatprep.subr.bf16.mxu0 %v9228_v4  ;;  %v3370_v9 = vmax.f32 %v3323_v6, %v3346_v10  ;;  %v3329_v31 = vadd.f32 %v3328_v7, %v3276_v11  ;;  %v3278_v22 = vadd.f32 %v3277_v58, %v3225_v39  ;;  %v3387_v2 = vpack.c.bf16 %v3369_v48, %v3363_v34  ;;  %v9258_v7 = vld [vmem:[#allocation6 + $0x3cc] ss:$16 sps:$4 sm:$0xff]   ;;  %v9256_v4 = vld [vmem:[#allocation6 + $0x3c8] ss:$16 sps:$4 sm:$0xff]   ;;  %v9277_v58 = vld [vmem:[#allocation9 + $0xe0] ss:$16 sps:$4 sm:$0xff]  }
 0x32c   : > { %v3279_v28 = vpop.f32.mrf.mxu0  ;;  %v3351_v5 = vmul.f32 0.01, %v3327_v27  ;;  %v9259_v26 = vld [vmem:[#allocation6 + $0x3a8] ss:$16 sps:$4 sm:$0xff]   ;;  %v9264_v17 = vld [vmem:[#allocation6 + $0x38c] ss:$16 sps:$4 sm:$0xff]  }
 0x32d   : > { %v3280_v12 = vadd.f32 %v3279_v28, %v3227_v19  ;;  %v3388_v35 = vpack.c.bf16 %v3370_v9, %v3364_v61  ;;  %v3331_v38 = vadd.f32 %v3330_v55, %v3278_v22  ;;  %v3352_v50 = vmul.f32 0.01, %v3329_v31  ;;  %v9262_v6 = vld [vmem:[#allocation6 + $0x388] ss:$16 sps:$4 sm:$0xff]   ;;  %v9267_v3 = vld [vmem:[#allocation6 + $0x36c] ss:$16 sps:$4 sm:$0xff]  }
 0x32e   : > { %4865 = vmatpush2.bf16.msra.mxu0 %v9226_v18  ;;  %v3375_v42 = vmax.f32 %v3327_v27, %v3351_v5  ;;  %v9265_v36 = vld [vmem:[#allocation6 + $0x368] ss:$16 sps:$4 sm:$0xff]   ;;  %v9270_v8 = vld [vmem:[#allocation6 + $0x34c] ss:$16 sps:$4 sm:$0xff]   ;;  %v9280_v61 = vld [vmem:[#allocation9 + $0xc0] ss:$16 sps:$4 sm:$0xff]  }
 0x32f   : > { %v3333_v14 = vadd.f32 %v3332_v13, %v3280_v12  ;;  %4707 = vmatprep.mubr.bf16.mxu1 %v3388_v35  ;;  %4866 = vmatprep.mubr.bf16.mxu0 %v3388_v35  ;;  %v3357_v37 = vmul.f32 0.01, %v3331_v38  ;;  %v3376_v60 = vmax.f32 %v3329_v31, %v3352_v50  ;;  %v9268_v10 = vld [vmem:[#allocation6 + $0x348] ss:$16 sps:$4 sm:$0xff]   ;;  %v9273_v11 = vld [vmem:[#allocation6 + $0x32c] ss:$16 sps:$4 sm:$0xff]  }
 0x330   : > { %4708 = vmatmul.mubr.bf16.vlgmr.msra.gmra.mxu1 %v3387_v2  ;;  %v9271_v18 = vld [vmem:[#allocation6 + $0x328] ss:$16 sps:$4 sm:$0xff]   ;;  %v9276_v39 = vld [vmem:[#allocation6 + $0x30c] ss:$16 sps:$4 sm:$0xff]   ;;  %v9283_v31 = vld [vmem:[#allocation9 + $0xa0] ss:$16 sps:$4 sm:$0xff]  }
 0x331   : > { %4867 = vmatmul.mubr.bf16.vlgmr.msra.gmra.mxu0 %v3387_v2  ;;  %v3358_v20 = vmul.f32 0.01, %v3333_v14  ;;  %4782 = vmatpush1.bf16.msra.mxu1 %v9229_v30  ;;  %v3381_v47 = vmax.f32 %v3331_v38, %v3357_v37  ;;  %v9274_v48 = vld [vmem:[#allocation6 + $0x308] ss:$16 sps:$4 sm:$0xff]   ;;  %v9286_v27 = vld [vmem:[#allocation9 + $0x80] ss:$16 sps:$4 sm:$0xff]  }
 0x332   : > { %4783 = vmatprep.subr.bf16.mxu1 %v9234_v40  ;;  %v9279_v55 = vld [vmem:[#allocation9 + $0xe4] ss:$16 sps:$4 sm:$0xff]   ;;  %v9289_v28 = vld [vmem:[#allocation9 + $0x60] ss:$16 sps:$4 sm:$0xff]  }
 0x333   : > { %v3382_v21 = vmax.f32 %v3333_v14, %v3358_v20  ;;  %v3393_v56 = vpack.c.bf16 %v3381_v47, %v3375_v42  ;;  %v9282_v19 = vld [vmem:[#allocation9 + $0xc4] ss:$16 sps:$4 sm:$0xff]   ;;  %v9292_v35 = vld [vmem:[#allocation9 + $0x40] ss:$16 sps:$4 sm:$0xff]  }
 0x334   : > { %v9285_v9 = vld [vmem:[#allocation9 + $0xa4] ss:$16 sps:$4 sm:$0xff]   ;;  %v9334_v2 = vld [vmem:[#allocation9 + $0x2c0] ss:$16 sps:$4 sm:$0xff]  }
 0x335   : > { %4784 = vmatpush1.bf16.msra.mxu1 %v9232_v24  ;;  %v3394_v41 = vpack.c.bf16 %v3382_v21, %v3376_v60  ;;  %v9288_v34 = vld [vmem:[#allocation9 + $0x84] ss:$16 sps:$4 sm:$0xff]   ;;  %v9340_v50 = vld [vmem:[#allocation9 + $0x2a0] ss:$16 sps:$4 sm:$0xff]  }
 0x336   : > { %4785 = vmatprep.subr.bf16.mxu1 %v9237_v16  ;;  %v9291_v22 = vld [vmem:[#allocation9 + $0x64] ss:$16 sps:$4 sm:$0xff]   ;;  %v9298_v14 = vld [vmem:[#allocation9] ss:$16 sps:$4 sm:$0xff]  }
 0x337   : > { %4717 = vmatprep.mubr.bf16.mxu1 %v3394_v41  ;;  %4876 = vmatprep.mubr.bf16.mxu0 %v3394_v41  ;;  %v9330_v12 = vld [vmem:[#allocation9 + $0x2e4] ss:$16 sps:$4 sm:$0xff]   ;;  %v9346_v37 = vld [vmem:[#allocation9 + $0x280] ss:$16 sps:$4 sm:$0xff]  }
 0x338   : > { %4718 = vmatmul.mubr.bf16.gmra.mxu1 %v3393_v56  ;;  %5770 = vmatprep.subr.bf16.mxu0 %v9330_v12  ;;  %v9297_v30 = vld [vmem:[#allocation9 + $0x24] ss:$16 sps:$4 sm:$0xff]   ;;  %v9301_v24 = vld [vmem:[#allocation9 + $0x1e0] ss:$16 sps:$4 sm:$0xff]  }
 0x339   : > { %4877 = vmatmul.mubr.bf16.gmra.mxu0 %v3393_v56  ;;  %4786 = vmatpush1.bf16.msra.mxu1 %v9235_v32  ;;  %v9336_v38 = vld [vmem:[#allocation9 + $0x2c4] ss:$16 sps:$4 sm:$0xff]   ;;  %v9352_v16 = vld [vmem:[#allocation9 + $0x260] ss:$16 sps:$4 sm:$0xff]  }
 0x33a   : > { %4813 = vmatprep.mubr.bf16.mxu1 %v10711_v49  ;;  %4787 = vmatprep.subr.bf16.mxu1 %v9240_v33  ;;  %v9253_v49 = vld [vmem:[#allocation6 + $0x3e8] ss:$16 sps:$4 sm:$0xff]   ;;  %v9304_v21 = vld [vmem:[#allocation9 + $0x1c0] ss:$16 sps:$4 sm:$0xff]  }
 0x33b   : > { %v9300_v13 = vld [vmem:[#allocation9 + $0x4] ss:$16 sps:$4 sm:$0xff]   ;;  %v9358_v41 = vld [vmem:[#allocation9 + $0x240] ss:$16 sps:$4 sm:$0xff]  }
 0x33c   : > { %v9342_v40 = vld [vmem:[#allocation9 + $0x2a4] ss:$16 sps:$4 sm:$0xff]   ;;  %v9307_v56 = vld [vmem:[#allocation9 + $0x1a0] ss:$16 sps:$4 sm:$0xff]  }
 0x33d   : > { %4788 = vmatpush1.bf16.msra.mxu1 %v9238_v46  ;;  %v9303_v5 = vld [vmem:[#allocation9 + $0x1e4] ss:$16 sps:$4 sm:$0xff]   ;;  %v9364_v46 = vld [vmem:[#allocation9 + $0x220] ss:$16 sps:$4 sm:$0xff]  }
 0x33e   : > { %4789 = vmatprep.subr.bf16.mxu1 %v9243_v53  ;;  %v9348_v20 = vld [vmem:[#allocation9 + $0x284] ss:$16 sps:$4 sm:$0xff]  }
 0x33f   : > { %v9306_v47 = vld [vmem:[#allocation9 + $0x1c4] ss:$16 sps:$4 sm:$0xff]  }
 0x340   : > { %v9354_v60 = vld [vmem:[#allocation9 + $0x264] ss:$16 sps:$4 sm:$0xff]  }
 0x341   : > { %4790 = vmatpush1.bf16.msra.mxu1 %v9241_v44  ;;  %v9309_v42 = vld [vmem:[#allocation9 + $0x1a4] ss:$16 sps:$4 sm:$0xff]   ;;  %v9310_v44 = vld [vmem:[#allocation9 + $0x180] ss:$16 sps:$4 sm:$0xff]  }
 0x342   : > { %4791 = vmatprep.subr.bf16.mxu1 %v9246_v57  ;;  %v9360_v32 = vld [vmem:[#allocation9 + $0x244] ss:$16 sps:$4 sm:$0xff]  }
 0x343   : > { %v9312_v33 = vld [vmem:[#allocation9 + $0x184] ss:$16 sps:$4 sm:$0xff]  }
 0x344   : > { %v9366_v53 = vld [vmem:[#allocation9 + $0x224] ss:$16 sps:$4 sm:$0xff]  }
 0x345   : > { %4792 = vmatpush1.bf16.msra.mxu1 %v9244_v59  ;;  %v9315_v57 = vld [vmem:[#allocation9 + $0x164] ss:$16 sps:$4 sm:$0xff]   ;;  %v9370_v59 = vld [vmem:[#allocation9 + $0x200] ss:$16 sps:$4 sm:$0xff]  }
 0x346   : > { %4793 = vmatprep.subr.bf16.mxu1 %v9249_v62  ;;  %v9372_v62 = vld [vmem:[#allocation9 + $0x204] ss:$16 sps:$4 sm:$0xff]  }
 0x349   : > { %4794 = vmatpush1.bf16.msra.mxu1 %v9247_v43  ;;  %v9313_v43 = vld [vmem:[#allocation9 + $0x160] ss:$16 sps:$4 sm:$0xff]  }
 0x34a   : > { %4795 = vmatprep.subr.bf16.mxu1 %v9252_v29  ;;  %v9318_v29 = vld [vmem:[#allocation9 + $0x144] ss:$16 sps:$4 sm:$0xff]  }
 0x34d   : > { %4796 = vmatpush1.bf16.msra.mxu1 %v9250_v45  ;;  %v9376_v45 = vld [vmem:[#allocation9 + $0x3e0] ss:$16 sps:$4 sm:$0xff]  }
 0x34e   : > { %4797 = vmatprep.subr.bf16.mxu1 %v9255_v51  ;;  %v9378_v51 = vld [vmem:[#allocation9 + $0x3e4] ss:$16 sps:$4 sm:$0xff]  }
 0x351   : > { %4798 = vmatpush2.bf16.msra.mxu1 %v9253_v49  ;;  %v9316_v49 = vld [vmem:[#allocation9 + $0x140] ss:$16 sps:$4 sm:$0xff]  }
 0x352   : > { %4799 = vmatprep.subr.bf16.mxu1 %v9258_v7  ;;  %v9321_v7 = vld [vmem:[#allocation9 + $0x124] ss:$16 sps:$4 sm:$0xff]  }
 0x355   : > { %4800 = vmatpush2.bf16.msra.mxu1 %v9256_v4  ;;  %v9382_v4 = vld [vmem:[#allocation9 + $0x3c0] ss:$16 sps:$4 sm:$0xff]  }
 0x356   : > { %4801 = vmatprep.subr.bf16.mxu1 %v9261_v15  ;;  %v9384_v15 = vld [vmem:[#allocation9 + $0x3c4] ss:$16 sps:$4 sm:$0xff]  }
 0x359   : > { %4802 = vmatpush2.bf16.msra.mxu1 %v9259_v26  ;;  %v9319_v26 = vld [vmem:[#allocation9 + $0x120] ss:$16 sps:$4 sm:$0xff]  }
 0x35a   : > { %4803 = vmatprep.subr.bf16.mxu1 %v9264_v17  ;;  %v9324_v17 = vld [vmem:[#allocation9 + $0x104] ss:$16 sps:$4 sm:$0xff]  }
 0x35d   : > { %4804 = vmatpush2.bf16.msra.mxu1 %v9262_v6  ;;  %v9388_v6 = vld [vmem:[#allocation9 + $0x3a0] ss:$16 sps:$4 sm:$0xff]  }
 0x35e   : > { %4805 = vmatprep.subr.bf16.mxu1 %v9267_v3  ;;  %v9390_v3 = vld [vmem:[#allocation9 + $0x3a4] ss:$16 sps:$4 sm:$0xff]  }
 0x361   : > { %4806 = vmatpush2.bf16.msra.mxu1 %v9265_v36  ;;  %v9322_v36 = vld [vmem:[#allocation9 + $0x100] ss:$16 sps:$4 sm:$0xff]  }
 0x362   : > { %4807 = vmatprep.subr.bf16.mxu1 %v9270_v8  ;;  %v9327_v8 = vld [vmem:[#allocation9 + $0xec] ss:$16 sps:$4 sm:$0xff]  }
 0x365   : > { %4808 = vmatpush2.bf16.msra.mxu1 %v9268_v10  ;;  %v9394_v10 = vld [vmem:[#allocation9 + $0x380] ss:$16 sps:$4 sm:$0xff]  }
 0x366   : > { %4809 = vmatprep.subr.bf16.mxu1 %v9273_v11  ;;  %v9396_v11 = vld [vmem:[#allocation9 + $0x384] ss:$16 sps:$4 sm:$0xff]  }
 0x369   : > { %4810 = vmatpush2.bf16.msra.mxu1 %v9271_v18  ;;  %v9402_v18 = vld [vmem:[#allocation9 + $0x364] ss:$16 sps:$4 sm:$0xff]  }
 0x36a   : > { %4811 = vmatprep.subr.bf16.mxu1 %v9276_v39  ;;  %v9400_v39 = vld [vmem:[#allocation9 + $0x360] ss:$16 sps:$4 sm:$0xff]  }
 0x36d   : > { %4812 = vmatpush2.bf16.msra.mxu1 %v9274_v48  ;;  %v9408_v48 = vld [vmem:[#allocation9 + $0x344] ss:$16 sps:$4 sm:$0xff]  }
 0x36e   : > { %5717 = vmatprep.subr.bf16.mxu1 %v9279_v55  ;;  %v9406_v55 = vld [vmem:[#allocation9 + $0x340] ss:$16 sps:$4 sm:$0xff]  }
 0x370   : > { %4814 = vmatmul.mubr.bf16.vlgmr.msra.gmra.mxu1 %v10713_v63  ;;  %v9294_v63 = vld [vmem:[#allocation9 + $0x44] ss:$16 sps:$4 sm:$0xff]  }
 0x371   : > { %4823 = vmatprep.mubr.bf16.mxu1 %v10717_v0  ;;  %5718 = vmatpush1.bf16.msra.mxu1 %v9277_v58  ;;  %v9328_v0 = vld [vmem:[#allocation9 + $0x2e0] ss:$16 sps:$4 sm:$0xff]   ;;  %v9414_v58 = vld [vmem:[#allocation9 + $0x324] ss:$16 sps:$4 sm:$0xff]  }
 0x372   : > { %5719 = vmatprep.subr.bf16.mxu1 %v9282_v19  ;;  %5771 = vmatpush1.bf16.msra.mxu0 %v9328_v0  ;;  %v9412_v19 = vld [vmem:[#allocation9 + $0x320] ss:$16 sps:$4 sm:$0xff]  }
 0x373   : > { %5772 = vmatprep.subr.bf16.mxu0 %v9336_v38 }
 0x375   : > { %5720 = vmatpush1.bf16.msra.mxu1 %v9280_v61  ;;  %v9420_v61 = vld [vmem:[#allocation9 + $0x304] ss:$16 sps:$4 sm:$0xff]  }
 0x376   : > { %5721 = vmatprep.subr.bf16.mxu1 %v9285_v9  ;;  %5773 = vmatpush1.bf16.msra.mxu0 %v9334_v2  ;;  %v9418_v9 = vld [vmem:[#allocation9 + $0x300] ss:$16 sps:$4 sm:$0xff]   ;;  %v10757_v2 = vld [vmem:[#allocation7] sm:$0xf] }
 0x377   : > { %5774 = vmatprep.subr.bf16.mxu0 %v9342_v40  ;;  %v3592_v40 = vrot.slane %v10757_v2, %v10650_v54 }
 0x378   : > { %4824 = vmatmul.mubr.bf16.gmra.mxu1 %v10719_v1  ;;  %v9295_v1 = vld [vmem:[#allocation9 + $0x20] ss:$16 sps:$4 sm:$0xff]  }
 0x379   : > { %5722 = vmatpush1.bf16.msra.mxu1 %v9283_v31  ;;  %v9423_v31 = vld [vmem:[#allocation9 + $0x2ec] ss:$16 sps:$4 sm:$0xff]  }
 0x37a   : > { %5723 = vmatprep.subr.bf16.mxu1 %v9288_v34  ;;  %5775 = vmatpush1.bf16.msra.mxu0 %v9340_v50  ;;  %v4603_v34 = vpop.f32.mrf.mxu1 }
 0x37b   : > { %5776 = vmatprep.subr.bf16.mxu0 %v9348_v20 }
 0x37d   : > { %5724 = vmatpush1.bf16.msra.mxu1 %v9286_v27  ;;  %v4605_v27 = vpop.f32.mrf.mxu1 }
 0x37e   : > { %5725 = vmatprep.subr.bf16.mxu1 %v9291_v22  ;;  %5777 = vmatpush1.bf16.msra.mxu0 %v9346_v37  ;;  %v4604_v37 = vadd.f32 %v4603_v34, %v3592_v40 }
 0x37f   : > { %5778 = vmatprep.subr.bf16.mxu0 %v9354_v60  ;;  %v4607_v22 = vpop.f32.mrf.mxu1 }
 0x381   : > { %5726 = vmatpush1.bf16.msra.mxu1 %v9289_v28  ;;  %v4609_v28 = vpop.f32.mrf.mxu1 }
 0x382   : > { %5727 = vmatprep.subr.bf16.mxu1 %v9294_v63  ;;  %5779 = vmatpush1.bf16.msra.mxu0 %v9352_v16  ;;  %v4656_v63 = vpop.f32.mrf.mxu0 }
 0x383   : > { %5780 = vmatprep.subr.bf16.mxu0 %v9360_v32  ;;  %v4613_v12 = vpop.f32.mrf.mxu1  ;;  %v4657_v16 = vadd.f32 %v4656_v63, %v4604_v37 }
 0x384   : > { %v4658_v0 = vpop.f32.mrf.mxu0 }
 0x385   : > { %5728 = vmatpush1.bf16.msra.mxu1 %v9292_v35  ;;  %v4615_v35 = vpop.f32.mrf.mxu1 }
 0x386   : > { %5729 = vmatprep.subr.bf16.mxu1 %v9297_v30  ;;  %5781 = vmatpush1.bf16.msra.mxu0 %v9358_v41  ;;  %v4660_v30 = vpop.f32.mrf.mxu0 }
 0x387   : > { %5782 = vmatprep.subr.bf16.mxu0 %v9366_v53  ;;  %v4617_v38 = vpop.f32.mrf.mxu1 }
 0x389   : > { %5730 = vmatpush1.bf16.msra.mxu1 %v9295_v1  ;;  %v4662_v1 = vpop.f32.mrf.mxu0  ;;  %v4619_v50 = vpop.f32.mrf.mxu1 }
 0x38a   : > { %5731 = vmatprep.subr.bf16.mxu1 %v9300_v13  ;;  %5783 = vmatpush1.bf16.msra.mxu0 %v9364_v46  ;;  %v3596_v13 = vrot.slane %v10757_v2, %v10630_v23 }
 0x38b   : > { %5784 = vmatprep.subr.bf16.mxu0 %v9372_v62 }
 0x38d   : > { %5732 = vmatpush1.bf16.msra.mxu1 %v9298_v14  ;;  %v4666_v14 = vpop.f32.mrf.mxu0 }
 0x38e   : > { %5733 = vmatprep.subr.bf16.mxu1 %v9303_v5  ;;  %5785 = vmatpush1.bf16.msra.mxu0 %v9370_v59  ;;  %v4606_v5 = vadd.f32 %v4605_v27, %v3596_v13  ;;  %v4616_v59 = vadd.f32 %v4615_v35, %v3596_v13  ;;  %v9333_v27 = vld [vmem:[#allocation9 + $0xcc] ss:$16 sps:$4 sm:$0xff]   ;;  %v9331_v35 = vld [vmem:[#allocation9 + $0xc8] ss:$16 sps:$4 sm:$0xff]  }
 0x38f   : > { %5786 = vmatprep.subr.bf16.mxu0 %v9378_v51  ;;  %v4668_v60 = vpop.f32.mrf.mxu0 }
 0x391   : > { %5734 = vmatpush2.bf16.msra.mxu1 %v9301_v24  ;;  %v4608_v24 = vadd.f32 %v4607_v22, %v3592_v40 }
 0x392   : > { %5735 = vmatprep.subr.bf16.mxu1 %v9306_v47  ;;  %5787 = vmatpush2.bf16.msra.mxu0 %v9376_v45  ;;  %v4659_v47 = vadd.f32 %v4658_v0, %v4606_v5  ;;  %v4614_v45 = vadd.f32 %v4613_v12, %v3592_v40 }
 0x393   : > { %5788 = vmatprep.subr.bf16.mxu0 %v9384_v15  ;;  %v4661_v41 = vadd.f32 %v4660_v30, %v4608_v24  ;;  %v9343_v24 = vld [vmem:[#allocation9 + $0x88] ss:$16 sps:$4 sm:$0xff]  }
 0x395   : > { %5736 = vmatpush2.bf16.msra.mxu1 %v9304_v21 }
 0x396   : > { %5737 = vmatprep.subr.bf16.mxu1 %v9309_v42  ;;  %5789 = vmatpush2.bf16.msra.mxu0 %v9382_v4  ;;  %v4610_v42 = vadd.f32 %v4609_v28, %v3596_v13  ;;  %v4669_v4 = vadd.f32 %v4668_v60, %v4616_v59  ;;  %v9349_v60 = vld [vmem:[#allocation9 + $0x68] ss:$16 sps:$4 sm:$0xff]   ;;  %v9375_v59 = vld [vmem:[#allocation9 + $0x1ec] ss:$16 sps:$4 sm:$0xff]  }
 0x397   : > { %5790 = vmatprep.subr.bf16.mxu0 %v9390_v3 }
 0x398   : > { %v4663_v46 = vadd.f32 %v4662_v1, %v4610_v42  ;;  %v9357_v42 = vld [vmem:[#allocation9 + $0x4c] ss:$16 sps:$4 sm:$0xff]  }
 0x399   : > { %5738 = vmatpush2.bf16.msra.mxu1 %v9307_v56 }
 0x39a   : > { %5739 = vmatprep.subr.bf16.mxu1 %v9312_v33  ;;  %5791 = vmatpush2.bf16.msra.mxu0 %v9388_v6 }
 0x39b   : > { %5792 = vmatprep.subr.bf16.mxu0 %v9396_v11 }
 0x39d   : > { %5740 = vmatpush2.bf16.msra.mxu1 %v9310_v44  ;;  %v4670_v44 = vpop.f32.mrf.mxu0 }
 0x39e   : > { %5741 = vmatprep.subr.bf16.mxu1 %v9315_v57  ;;  %5793 = vmatpush2.bf16.msra.mxu0 %v9394_v10 }
 0x39f   : > { %5794 = vmatprep.subr.bf16.mxu0 %v9402_v18  ;;  %v4672_v6 = vpop.f32.mrf.mxu0 }
 0x3a1   : > { %5742 = vmatpush2.bf16.msra.mxu1 %v9313_v43 }
 0x3a2   : > { %5743 = vmatprep.subr.bf16.mxu1 %v9318_v29  ;;  %5795 = vmatpush2.bf16.msra.mxu0 %v9400_v39 }
 0x3a3   : > { %5796 = vmatprep.subr.bf16.mxu0 %v9408_v48 }
 0x3a5   : > { %5744 = vmatpush2.bf16.msra.mxu1 %v9316_v49 }
 0x3a6   : > { %5745 = vmatprep.subr.bf16.mxu1 %v9321_v7  ;;  %5797 = vmatpush2.bf16.msra.mxu0 %v9406_v55  ;;  %v4618_v7 = vadd.f32 %v4617_v38, %v3592_v40  ;;  %v9339_v38 = vld [vmem:[#allocation9 + $0xac] ss:$16 sps:$4 sm:$0xff]  }
 0x3a7   : > { %5798 = vmatprep.subr.bf16.mxu0 %v9414_v58 }
 0x3a9   : > { %5746 = vmatpush2.bf16.msra.mxu1 %v9319_v26  ;;  %v4620_v26 = vadd.f32 %v4619_v50, %v3596_v13 }
 0x3aa   : > { %5747 = vmatprep.subr.bf16.mxu1 %v9324_v17  ;;  %5799 = vmatpush2.bf16.msra.mxu0 %v9412_v19  ;;  %v4667_v17 = vadd.f32 %v4666_v14, %v4614_v45  ;;  %v9337_v14 = vld [vmem:[#allocation9 + $0xa8] ss:$16 sps:$4 sm:$0xff]  }
 0x3ab   : > { %5800 = vmatprep.subr.bf16.mxu0 %v9420_v61  ;;  %v4673_v58 = vadd.f32 %v4672_v6, %v4620_v26  ;;  %v9379_v45 = vld [vmem:[#allocation9 + $0x1c8] ss:$16 sps:$4 sm:$0xff]   ;;  %v9399_v6 = vld [vmem:[#allocation9 + $0x16c] ss:$16 sps:$4 sm:$0xff]  }
 0x3ad   : > { %5748 = vmatpush2.bf16.msra.mxu1 %v9322_v36 }
 0x3ae   : > { %5823 = vmatprep.subr.bf16.mxu1 %v9327_v8  ;;  %5801 = vmatpush2.bf16.msra.mxu0 %v9418_v9  ;;  %v4671_v8 = vadd.f32 %v4670_v44, %v4618_v7  ;;  %v9325_v9 = vld [vmem:[#allocation9 + $0xe8] ss:$16 sps:$4 sm:$0xff]  }
 0x3af   : > { %5876 = vmatprep.subr.bf16.mxu0 %v9423_v31  ;;  %v9367_v44 = vld [vmem:[#allocation9 + $0x8] ss:$16 sps:$4 sm:$0xff]  }
 0x3b1   : > { %v4762_v5 = vpop.f32.mrf.mxu0 }
 0x3f0   : > { %v4709_v20 = vpop.f32.mrf.mxu1 }
 0x3f1   : > { %v4710_v56 = vadd.f32 %v4709_v20, %v4657_v16  ;;  %v9345_v20 = vld [vmem:[#allocation9 + $0x8c] ss:$16 sps:$4 sm:$0xff]  }
 0x3f2   : > { %v4711_v21 = vpop.f32.mrf.mxu1  ;;  %v9351_v16 = vld [vmem:[#allocation9 + $0x6c] ss:$16 sps:$4 sm:$0xff]  }
 0x3f3   : > { %v4712_v32 = vadd.f32 %v4711_v21, %v4659_v47  ;;  %v4887_v51 = vmul.f32 0.01, %v4710_v56  ;;  %v4764_v47 = vpop.f32.mrf.mxu0 }
 0x3f4   : > { %v4713_v33 = vpop.f32.mrf.mxu1 }
 0x3f5   : > { %v4714_v53 = vadd.f32 %v4713_v33, %v4661_v41  ;;  %v4888_v62 = vmul.f32 0.01, %v4712_v32  ;;  %v4903_v39 = vmax.f32 %v4710_v56, %v4887_v51  ;;  %v4766_v21 = vpop.f32.mrf.mxu0  ;;  %v9355_v41 = vld [vmem:[#allocation9 + $0x48] ss:$16 sps:$4 sm:$0xff]   ;;  %v9363_v56 = vld [vmem:[#allocation9 + $0x2c] ss:$16 sps:$4 sm:$0xff]  }
 0x3f6   : > { %v4715_v57 = vpop.f32.mrf.mxu1  ;;  %v9361_v33 = vld [vmem:[#allocation9 + $0x28] ss:$16 sps:$4 sm:$0xff]  }
 0x3f7   : > { %v4891_v43 = vmul.f32 0.01, %v4714_v53  ;;  %v4716_v29 = vadd.f32 %v4715_v57, %v4663_v46  ;;  %v4904_v10 = vmax.f32 %v4712_v32, %v4888_v62  ;;  %v4768_v32 = vpop.f32.mrf.mxu0  ;;  %v9373_v62 = vld [vmem:[#allocation9 + $0x1e8] ss:$16 sps:$4 sm:$0xff]  }
 0x3f8   : > { %v4719_v49 = vpop.f32.mrf.mxu1 }
 0x3f9   : > { %v4892_v15 = vmul.f32 0.01, %v4716_v29  ;;  %v4907_v3 = vmax.f32 %v4714_v53, %v4891_v43  ;;  %v4720_v48 = vadd.f32 %v4719_v49, %v4667_v17  ;;  %v4772_v46 = vpop.f32.mrf.mxu0  ;;  %v9369_v53 = vld [vmem:[#allocation9 + $0xc] ss:$16 sps:$4 sm:$0xff]   ;;  %v9391_v17 = vld [vmem:[#allocation9 + $0x188] ss:$16 sps:$4 sm:$0xff]  }
 0x3fa   : > { %v4721_v36 = vpop.f32.mrf.mxu1  ;;  %v9387_v49 = vld [vmem:[#allocation9 + $0x1ac] ss:$16 sps:$4 sm:$0xff]  }
 0x3fb   : > { %v4908_v11 = vmax.f32 %v4716_v29, %v4892_v15  ;;  %v4722_v18 = vadd.f32 %v4721_v36, %v4669_v4  ;;  %v10763_v31 = vpack.c.bf16 %v4907_v3, %v4903_v39  ;;  %v4895_v12 = vmul.f32 0.01, %v4720_v48  ;;  %v4774_v57 = vpop.f32.mrf.mxu0  ;;  %v9381_v29 = vld [vmem:[#allocation9 + $0x1cc] ss:$16 sps:$4 sm:$0xff]   ;;  %v9385_v4 = vld [vmem:[#allocation9 + $0x1a8] ss:$16 sps:$4 sm:$0xff]  }
 0x3fc   : > { %v4723_v55 = vpop.f32.mrf.mxu1  ;;  %v9393_v15 = vld [vmem:[#allocation9 + $0x18c] ss:$16 sps:$4 sm:$0xff]   ;;  %v3600_v3 = vrot.slane %v10757_v2, %v10693_v25 }
 0x3fd   : > { %v4724_v19 = vadd.f32 %v4723_v55, %v4671_v8  ;;  %v4920_v61 = vpack.c.bf16 %v4908_v11, %v4904_v10  ;;  %v4896_v22 = vmul.f32 0.01, %v4722_v18  ;;  %v4911_v40 = vmax.f32 %v4720_v48, %v4895_v12  ;;  %v10772_v43 = vpop.f32.mrf.mxu0  ;;  %v9397_v10 = vld [vmem:[#allocation9 + $0x168] ss:$16 sps:$4 sm:$0xff]   ;;  %v9405_v11 = vld [vmem:[#allocation9 + $0x14c] ss:$16 sps:$4 sm:$0xff]  }
 0x3fe   : > { %v4725_v34 = vpop.f32.mrf.mxu1  ;;  %v3604_v8 = vrot.slane %v10757_v2, %v10698_v52 }
 0x3ff   : > { %v4899_v28 = vmul.f32 0.01, %v4724_v19  ;;  %v4726_v63 = vadd.f32 %v4725_v34, %v4673_v58  ;;  %5749 = vmatprep.mubr.bf16.mxu1 %v4920_v61  ;;  %v4912_v1 = vmax.f32 %v4722_v18, %v4896_v22  ;;  %v10774_v51 = vpop.f32.mrf.mxu0  ;;  %v4763_v18 = vadd.f32 %v4762_v5, %v3600_v3  ;;  %v9403_v58 = vld [vmem:[#allocation9 + $0x148] ss:$16 sps:$4 sm:$0xff]  }
 0x400   : > { %5750 = vmatmul.mubr.bf16.vlgmr.msra.gmra.mxu1 %v10763_v31  ;;  %v4765_v55 = vadd.f32 %v4764_v47, %v3604_v8  ;;  %v4767_v34 = vadd.f32 %v4766_v21, %v3600_v3 }
 0x401   : > { %v4900_v0 = vmul.f32 0.01, %v4726_v63  ;;  %5824 = vmatpush1.bf16.msra.mxu1 %v9325_v9  ;;  %v4915_v30 = vmax.f32 %v4724_v19, %v4899_v28  ;;  %v4868_v7 = vpop.f32.mrf.mxu0  ;;  %v9411_v9 = vld [vmem:[#allocation9 + $0x12c] ss:$16 sps:$4 sm:$0xff]  }
 0x402   : > { %5825 = vmatprep.subr.bf16.mxu1 %v9333_v27 }
 0x403   : > { %v4916_v13 = vmax.f32 %v4726_v63, %v4900_v0  ;;  %v10768_v37 = vpack.c.bf16 %v4915_v30, %v4911_v40  ;;  %v4870_v26 = vpop.f32.mrf.mxu0  ;;  %v4769_v63 = vadd.f32 %v4768_v32, %v3604_v8  ;;  %v9409_v0 = vld [vmem:[#allocation9 + $0x128] ss:$16 sps:$4 sm:$0xff]   ;;  %v4773_v40 = vadd.f32 %v4772_v46, %v3600_v3 }
 0x404   : > { %v4779_v46 = vadd.f32 %v10774_v51, %v3604_v8 }
 0x405   : > { %5826 = vmatpush1.bf16.msra.mxu1 %v9331_v35  ;;  %v10766_v50 = vpack.c.bf16 %v4916_v13, %v4912_v1  ;;  %v4872_v36 = vpop.f32.mrf.mxu0 }
 0x406   : > { %5827 = vmatprep.subr.bf16.mxu1 %v9339_v38  ;;  %v9417_v38 = vld [vmem:[#allocation9 + $0x10c] ss:$16 sps:$4 sm:$0xff]  }
 0x407   : > { %5759 = vmatprep.mubr.bf16.mxu1 %v10766_v50  ;;  %v4874_v39 = vpop.f32.mrf.mxu0 }
 0x408   : > { %5760 = vmatmul.mubr.bf16.gmra.mxu1 %v10768_v37 }
 0x409   : > { %5828 = vmatpush1.bf16.msra.mxu1 %v9337_v14  ;;  %5855 = vmatprep.mubr.bf16.mxu1 %v4920_v61  ;;  %v4878_v22 = vpop.f32.mrf.mxu0 }
 0x40a   : > { %5829 = vmatprep.subr.bf16.mxu1 %v9345_v20  ;;  %v4775_v20 = vadd.f32 %v4774_v57, %v3604_v8 }
 0x40b   : > { %v4880_v14 = vpop.f32.mrf.mxu0 }
 0x40d   : > { %5830 = vmatpush1.bf16.msra.mxu1 %v9343_v24 }
 0x40e   : > { %5831 = vmatprep.subr.bf16.mxu1 %v9351_v16 }
 0x411   : > { %5832 = vmatpush1.bf16.msra.mxu1 %v9349_v60  ;;  %v9415_v60 = vld [vmem:[#allocation9 + $0x108] ss:$16 sps:$4 sm:$0xff]  }
 0x412   : > { %5833 = vmatprep.subr.bf16.mxu1 %v9357_v42 }
 0x415   : > { %5834 = vmatpush1.bf16.msra.mxu1 %v9355_v41 }
 0x416   : > { %5835 = vmatprep.subr.bf16.mxu1 %v9363_v56 }
 0x419   : > { %5836 = vmatpush1.bf16.msra.mxu1 %v9361_v33  ;;  %v4777_v33 = vadd.f32 %v10772_v43, %v3600_v3  ;;  %v9426_v3 = vld [vmem:[#allocation9 + $0x2cc] ss:$16 sps:$4 sm:$0xff]  }
 0x41a   : > { %5837 = vmatprep.subr.bf16.mxu1 %v9369_v53  ;;  %v4882_v53 = vpop.f32.mrf.mxu0 }
 0x41d   : > { %5838 = vmatpush1.bf16.msra.mxu1 %v9367_v44 }
 0x41e   : > { %5839 = vmatprep.subr.bf16.mxu1 %v9375_v59 }
 0x421   : > { %5840 = vmatpush2.bf16.msra.mxu1 %v9373_v62 }
 0x422   : > { %5841 = vmatprep.subr.bf16.mxu1 %v9381_v29 }
 0x425   : > { %5842 = vmatpush2.bf16.msra.mxu1 %v9379_v45 }
 0x426   : > { %5843 = vmatprep.subr.bf16.mxu1 %v9387_v49 }
 0x429   : > { %5844 = vmatpush2.bf16.msra.mxu1 %v9385_v4 }
 0x42a   : > { %5845 = vmatprep.subr.bf16.mxu1 %v9393_v15 }
 0x42d   : > { %5846 = vmatpush2.bf16.msra.mxu1 %v9391_v17  ;;  %v9421_v17 = vld [vmem:[#allocation9 + $0x2e8] ss:$16 sps:$4 sm:$0xff]  }
 0x42e   : > { %5847 = vmatprep.subr.bf16.mxu1 %v9399_v6  ;;  %v4884_v6 = vpop.f32.mrf.mxu0 }
 0x430   : > { %v4815_v48 = vpop.f32.mrf.mxu1 }
 0x431   : > { %5848 = vmatpush2.bf16.msra.mxu1 %v9397_v10  ;;  %v4816_v19 = vadd.f32 %v4815_v48, %v4763_v18 }
 0x432   : > { %v4817_v61 = vpop.f32.mrf.mxu1  ;;  %5849 = vmatprep.subr.bf16.mxu1 %v9405_v11 }
 0x433   : > { %v4818_v27 = vadd.f32 %v4817_v61, %v4765_v55  ;;  %v4869_v35 = vadd.f32 %v4868_v7, %v4816_v19  ;;  %v9429_v55 = vld [vmem:[#allocation9 + $0x2ac] ss:$16 sps:$4 sm:$0xff]  }
 0x434   : > { %v4819_v28 = vpop.f32.mrf.mxu1 }
 0x435   : > { %v4871_v2 = vadd.f32 %v4870_v26, %v4818_v27  ;;  %v4820_v12 = vadd.f32 %v4819_v28, %v4767_v34  ;;  %5850 = vmatpush2.bf16.msra.mxu1 %v9403_v58  ;;  %v4889_v21 = vmul.f32 0.01, %v4869_v35  ;;  %v9432_v34 = vld [vmem:[#allocation9 + $0x28c] ss:$16 sps:$4 sm:$0xff]   ;;  %v9430_v27 = vld [vmem:[#allocation9 + $0x288] ss:$16 sps:$4 sm:$0xff]  }
 0x436   : > { %v4821_v30 = vpop.f32.mrf.mxu1  ;;  %5851 = vmatprep.subr.bf16.mxu1 %v9411_v9  ;;  %v9427_v9 = vld [vmem:[#allocation9 + $0x2a8] ss:$16 sps:$4 sm:$0xff]  }
 0x437   : > { %v4873_v1 = vadd.f32 %v4872_v36, %v4820_v12  ;;  %v4822_v13 = vadd.f32 %v4821_v30, %v4769_v63  ;;  %v4890_v24 = vmul.f32 0.01, %v4871_v2  ;;  %v4905_v45 = vmax.f32 %v4869_v35, %v4889_v21  ;;  %v9433_v28 = vld [vmem:[#allocation9 + $0x268] ss:$16 sps:$4 sm:$0xff]   ;;  %v9469_v63 = vld [vmem:[#allocation12 + $0x70] ss:$8 sps:$4 sm:$0xff]  }
 0x438   : > { %v4825_v5 = vpop.f32.mrf.mxu1  ;;  %v9438_v12 = vld [vmem:[#allocation9 + $0x24c] ss:$16 sps:$4 sm:$0xff]   ;;  %v9436_v35 = vld [vmem:[#allocation9 + $0x248] ss:$16 sps:$4 sm:$0xff]  }
 0x439   : > { %v4893_v47 = vmul.f32 0.01, %v4873_v1  ;;  %v4875_v16 = vadd.f32 %v4874_v39, %v4822_v13  ;;  %5852 = vmatpush2.bf16.msra.mxu1 %v9409_v0  ;;  %v4826_v42 = vadd.f32 %v4825_v5, %v4773_v40  ;;  %v4906_v62 = vmax.f32 %v4871_v2, %v4890_v24  ;;  %v9424_v39 = vld [vmem:[#allocation9 + $0x2c8] ss:$16 sps:$4 sm:$0xff]   ;;  %v9472_v0 = vld [vmem:[#allocation12 + $0x60] ss:$8 sps:$4 sm:$0xff]  }
 0x43a   : > { %v4827_v41 = vpop.f32.mrf.mxu1  ;;  %5853 = vmatprep.subr.bf16.mxu1 %v9417_v38  ;;  %v9471_v2 = vld [vmem:[#allocation12 + $0x74] ss:$8 sps:$4 sm:$0xff]   ;;  %v9441_v38 = vld [vmem:[#allocation9 + $0x22c] ss:$16 sps:$4 sm:$0xff]   ;;  %v9480_v40 = vld [vmem:[#allocation12 + $0x44] ss:$8 sps:$4 sm:$0xff]  }
 0x43b   : > { %v4894_v32 = vmul.f32 0.01, %v4875_v16  ;;  %v4828_v56 = vadd.f32 %v4827_v41, %v4775_v20  ;;  %v4909_v44 = vmax.f32 %v4873_v1, %v4893_v47  ;;  %v4879_v49 = vadd.f32 %v4878_v22, %v4826_v42  ;;  %v9435_v22 = vld [vmem:[#allocation9 + $0x26c] ss:$16 sps:$4 sm:$0xff]   ;;  %v9477_v30 = vld [vmem:[#allocation12 + $0x54] ss:$8 sps:$4 sm:$0xff]  }
 0x43c   : > { %v4829_v59 = vpop.f32.mrf.mxu1  ;;  %v9475_v1 = vld [vmem:[#allocation12 + $0x50] ss:$8 sps:$4 sm:$0xff]   ;;  %v9439_v13 = vld [vmem:[#allocation9 + $0x228] ss:$16 sps:$4 sm:$0xff]   ;;  %v9478_v5 = vld [vmem:[#allocation12 + $0x40] ss:$8 sps:$4 sm:$0xff]  }
 0x43d   : > { %v4910_v57 = vmax.f32 %v4875_v16, %v4894_v32  ;;  %v4881_v29 = vadd.f32 %v4880_v14, %v4828_v56  ;;  %5854 = vmatpush2.bf16.msra.mxu1 %v9415_v60  ;;  %v4830_v7 = vadd.f32 %v4829_v59, %v4777_v33  ;;  %v10782_v36 = vpack.c.bf16 %v4909_v44, %v4905_v45  ;;  %v9444_v14 = vld [vmem:[#allocation9 + $0x20c] ss:$16 sps:$4 sm:$0xff]   ;;  %v9442_v20 = vld [vmem:[#allocation9 + $0x208] ss:$16 sps:$4 sm:$0xff]  }
 0x43e   : > { %v4831_v4 = vpop.f32.mrf.mxu1  ;;  %v4897_v8 = vmul.f32 0.01, %v4879_v49  ;;  %6365 = vmatprep.subr.bf16.mxu1 %v9471_v2  ;;  %v9483_v24 = vld [vmem:[#allocation12 + $0x34] ss:$8 sps:$4 sm:$0xff]   ;;  %v9447_v47 = vld [vmem:[#allocation9 + $0x3ec] ss:$16 sps:$4 sm:$0xff]  }
 0x43f   : > { %v4832_v15 = vadd.f32 %v4831_v4, %v4779_v46  ;;  %v4922_v26 = vpack.c.bf16 %v4910_v57, %v4906_v62  ;;  %v4883_v43 = vadd.f32 %v4882_v53, %v4830_v7  ;;  %v4898_v10 = vmul.f32 0.01, %v4881_v29  ;;  %v9481_v16 = vld [vmem:[#allocation12 + $0x30] ss:$8 sps:$4 sm:$0xff]   ;;  %v9445_v60 = vld [vmem:[#allocation9 + $0x3e8] ss:$16 sps:$4 sm:$0xff]  }
 0x440   : > { %5856 = vmatmul.mubr.bf16.vlgmr.msra.gmra.mxu1 %v10763_v31  ;;  %v4913_v61 = vmax.f32 %v4879_v49, %v4897_v8  ;;  %v9486_v21 = vld [vmem:[#allocation12 + $0x24] ss:$8 sps:$4 sm:$0xff]   ;;  %v9450_v42 = vld [vmem:[#allocation9 + $0x3cc] ss:$16 sps:$4 sm:$0xff]   ;;  %v9489_v56 = vld [vmem:[#allocation12 + $0x14] ss:$8 sps:$4 sm:$0xff]  }
 0x441   : > { %v4885_v51 = vadd.f32 %v4884_v6, %v4832_v15  ;;  %5802 = vmatprep.mubr.bf16.mxu0 %v4922_v26  ;;  %5865 = vmatprep.mubr.bf16.mxu1 %v10766_v50  ;;  %v4901_v11 = vmul.f32 0.01, %v4883_v43  ;;  %v4914_v58 = vmax.f32 %v4881_v29, %v4898_v10  ;;  %v9484_v41 = vld [vmem:[#allocation12 + $0x20] ss:$8 sps:$4 sm:$0xff]   ;;  %v9448_v32 = vld [vmem:[#allocation9 + $0x3c8] ss:$16 sps:$4 sm:$0xff]  }
 0x442   : > { %5803 = vmatmul.mubr.bf16.vlgmr.msra.gmra.mxu0 %v10782_v36  ;;  %6366 = vmatpush1.bf16.msra.mxu1 %v9469_v63  ;;  %v9453_v33 = vld [vmem:[#allocation9 + $0x3ac] ss:$16 sps:$4 sm:$0xff]   ;;  %v9451_v44 = vld [vmem:[#allocation9 + $0x3a8] ss:$16 sps:$4 sm:$0xff]  }
 0x443   : > { %v4902_v18 = vmul.f32 0.01, %v4885_v51  ;;  %5877 = vmatpush1.bf16.msra.mxu0 %v9421_v17  ;;  %v4917_v48 = vmax.f32 %v4883_v43, %v4901_v11  ;;  %v9487_v53 = vld [vmem:[#allocation12 + $0x10] ss:$8 sps:$4 sm:$0xff]   ;;  %v9492_v59 = vld [vmem:[#allocation12 + $0x4] ss:$8 sps:$4 sm:$0xff]  }
 0x444   : > { %5878 = vmatprep.subr.bf16.mxu0 %v9426_v3  ;;  %v9456_v46 = vld [vmem:[#allocation9 + $0x38c] ss:$16 sps:$4 sm:$0xff]   ;;  %v9454_v57 = vld [vmem:[#allocation9 + $0x388] ss:$16 sps:$4 sm:$0xff]  }
 0x445   : > { %v4918_v19 = vmax.f32 %v4885_v51, %v4902_v18  ;;  %v10790_v50 = vpack.c.bf16 %v4917_v48, %v4913_v61  ;;  %v9490_v62 = vld [vmem:[#allocation12] ss:$8 sps:$4 sm:$0xff]   ;;  %v9495_v29 = vld [vmem:[#allocation12 + $0xf4] ss:$8 sps:$4 sm:$0xff]   ;;  %v9493_v49 = vld [vmem:[#allocation12 + $0xf0] ss:$8 sps:$4 sm:$0xff]  }
 0x446   : > { %v9459_v45 = vld [vmem:[#allocation9 + $0x36c] ss:$16 sps:$4 sm:$0xff]   ;;  %v9457_v7 = vld [vmem:[#allocation9 + $0x368] ss:$16 sps:$4 sm:$0xff]  }
 0x447   : > { %5879 = vmatpush1.bf16.msra.mxu0 %v9424_v39  ;;  %v10787_v31 = vpack.c.bf16 %v4918_v19, %v4914_v58  ;;  %v9498_v4 = vld [vmem:[#allocation12 + $0xe4] ss:$8 sps:$4 sm:$0xff]   ;;  %v9462_v15 = vld [vmem:[#allocation9 + $0x34c] ss:$16 sps:$4 sm:$0xff]   ;;  %v9501_v6 = vld [vmem:[#allocation12 + $0xd4] ss:$8 sps:$4 sm:$0xff]  }
 0x448   : > { %5866 = vmatmul.mubr.bf16.gmra.mxu1 %v10768_v37  ;;  %5880 = vmatprep.subr.bf16.mxu0 %v9429_v55  ;;  %v9474_v37 = vld [vmem:[#allocation12 + $0x64] ss:$8 sps:$4 sm:$0xff]   ;;  %v9465_v43 = vld [vmem:[#allocation9 + $0x32c] ss:$16 sps:$4 sm:$0xff]   ;;  %v9507_v39 = vld [vmem:[#allocation12 + $0xb4] ss:$8 sps:$4 sm:$0xff]  }
 0x449   : > { %5812 = vmatprep.mubr.bf16.mxu0 %v10787_v31  ;;  %6367 = vmatprep.subr.bf16.mxu1 %v9474_v37  ;;  %v9460_v17 = vld [vmem:[#allocation9 + $0x348] ss:$16 sps:$4 sm:$0xff]   ;;  %v9499_v3 = vld [vmem:[#allocation12 + $0xd0] ss:$8 sps:$4 sm:$0xff]   ;;  %v9502_v11 = vld [vmem:[#allocation12 + $0xc0] ss:$8 sps:$4 sm:$0xff]  }
 0x44a   : > { %5813 = vmatmul.mubr.bf16.gmra.mxu0 %v10790_v50  ;;  %6368 = vmatpush1.bf16.msra.mxu1 %v9472_v0  ;;  %v9463_v10 = vld [vmem:[#allocation9 + $0x328] ss:$16 sps:$4 sm:$0xff]   ;;  %v9468_v8 = vld [vmem:[#allocation9 + $0x30c] ss:$16 sps:$4 sm:$0xff]  }
 0x44b   : > { %5881 = vmatpush1.bf16.msra.mxu0 %v9427_v9  ;;  %5908 = vmatprep.mubr.bf16.mxu0 %v4922_v26  ;;  %v9496_v26 = vld [vmem:[#allocation12 + $0xe0] ss:$8 sps:$4 sm:$0xff]   ;;  %v9504_v51 = vld [vmem:[#allocation12 + $0xc4] ss:$8 sps:$4 sm:$0xff]   ;;  %v9505_v48 = vld [vmem:[#allocation12 + $0xb0] ss:$8 sps:$4 sm:$0xff]  }
 0x44c   : > { %5882 = vmatprep.subr.bf16.mxu0 %v9432_v34  ;;  %6369 = vmatprep.subr.bf16.mxu1 %v9477_v30  ;;  %v9466_v18 = vld [vmem:[#allocation9 + $0x308] ss:$16 sps:$4 sm:$0xff]   ;;  %v9508_v58 = vld [vmem:[#allocation12 + $0xa0] ss:$8 sps:$4 sm:$0xff]   ;;  %v9511_v61 = vld [vmem:[#allocation12 + $0x90] ss:$8 sps:$4 sm:$0xff]  }
 0x44d   : > { %v9510_v55 = vld [vmem:[#allocation12 + $0xa4] ss:$8 sps:$4 sm:$0xff]   ;;  %v9513_v19 = vld [vmem:[#allocation12 + $0x94] ss:$8 sps:$4 sm:$0xff]   ;;  %v9514_v34 = vld [vmem:[#allocation12 + $0x80] ss:$8 sps:$4 sm:$0xff]  }
 0x44e   : > { %6370 = vmatpush1.bf16.msra.mxu1 %v9475_v1  ;;  %v9516_v9 = vld [vmem:[#allocation12 + $0x84] ss:$8 sps:$4 sm:$0xff]   ;;  %v9523_v63 = vld [vmem:[#allocation12 + $0x150] ss:$8 sps:$4 sm:$0xff]   ;;  %v9537_v30 = vld [vmem:[#allocation12 + $0x114] ss:$8 sps:$4 sm:$0xff]  }
 0x44f   : > { %5883 = vmatpush1.bf16.msra.mxu0 %v9430_v27  ;;  %6371 = vmatprep.subr.bf16.mxu1 %v9480_v40  ;;  %v9517_v27 = vld [vmem:[#allocation12 + $0x170] ss:$8 sps:$4 sm:$0xff]   ;;  %v9528_v2 = vld [vmem:[#allocation12 + $0x144] ss:$8 sps:$4 sm:$0xff]   ;;  %v9543_v40 = vld [vmem:[#allocation12 + $0x1f4] ss:$8 sps:$4 sm:$0xff]  }
 0x450   : > { %5884 = vmatprep.subr.bf16.mxu0 %v9435_v22  ;;  %v9520_v22 = vld [vmem:[#allocation12 + $0x160] ss:$8 sps:$4 sm:$0xff]   ;;  %v9529_v37 = vld [vmem:[#allocation12 + $0x130] ss:$8 sps:$4 sm:$0xff]   ;;  %v9534_v0 = vld [vmem:[#allocation12 + $0x124] ss:$8 sps:$4 sm:$0xff]  }
 0x451   : > { %v9540_v1 = vld [vmem:[#allocation12 + $0x104] ss:$8 sps:$4 sm:$0xff]  }
 0x452   : > { %6372 = vmatpush1.bf16.msra.mxu1 %v9478_v5  ;;  %v9546_v5 = vld [vmem:[#allocation12 + $0x1e4] ss:$8 sps:$4 sm:$0xff]  }
 0x453   : > { %5885 = vmatpush1.bf16.msra.mxu0 %v9433_v28  ;;  %6373 = vmatprep.subr.bf16.mxu1 %v9483_v24  ;;  %v9525_v28 = vld [vmem:[#allocation12 + $0x154] ss:$8 sps:$4 sm:$0xff]  }
 0x454   : > { %5886 = vmatprep.subr.bf16.mxu0 %v9438_v12  ;;  %v9531_v12 = vld [vmem:[#allocation12 + $0x134] ss:$8 sps:$4 sm:$0xff]  }
 0x455   : > { %v9549_v24 = vld [vmem:[#allocation12 + $0x1d4] ss:$8 sps:$4 sm:$0xff]  }
 0x456   : > { %6374 = vmatpush1.bf16.msra.mxu1 %v9481_v16  ;;  %v9552_v16 = vld [vmem:[#allocation12 + $0x1c4] ss:$8 sps:$4 sm:$0xff]  }
 0x457   : > { %5887 = vmatpush1.bf16.msra.mxu0 %v9436_v35  ;;  %6375 = vmatprep.subr.bf16.mxu1 %v9486_v21  ;;  %v9532_v35 = vld [vmem:[#allocation12 + $0x120] ss:$8 sps:$4 sm:$0xff]   ;;  %v9555_v21 = vld [vmem:[#allocation12 + $0x1b4] ss:$8 sps:$4 sm:$0xff]  }
 0x458   : > { %5888 = vmatprep.subr.bf16.mxu0 %v9441_v38  ;;  %v9535_v38 = vld [vmem:[#allocation12 + $0x110] ss:$8 sps:$4 sm:$0xff]  }
 0x45a   : > { %6376 = vmatpush1.bf16.msra.mxu1 %v9484_v41  ;;  %v9558_v41 = vld [vmem:[#allocation12 + $0x1a4] ss:$8 sps:$4 sm:$0xff]  }
 0x45b   : > { %5889 = vmatpush1.bf16.msra.mxu0 %v9439_v13  ;;  %6377 = vmatprep.subr.bf16.mxu1 %v9489_v56  ;;  %v9538_v13 = vld [vmem:[#allocation12 + $0x100] ss:$8 sps:$4 sm:$0xff]   ;;  %v9561_v56 = vld [vmem:[#allocation12 + $0x194] ss:$8 sps:$4 sm:$0xff]  }
 0x45c   : > { %5890 = vmatprep.subr.bf16.mxu0 %v9444_v14  ;;  %v9541_v14 = vld [vmem:[#allocation12 + $0x1f0] ss:$8 sps:$4 sm:$0xff]  }
 0x45e   : > { %6378 = vmatpush1.bf16.msra.mxu1 %v9487_v53  ;;  %v9564_v53 = vld [vmem:[#allocation12 + $0x184] ss:$8 sps:$4 sm:$0xff]  }
 0x45f   : > { %5891 = vmatpush1.bf16.msra.mxu0 %v9442_v20  ;;  %6379 = vmatprep.subr.bf16.mxu1 %v9492_v59  ;;  %v9544_v20 = vld [vmem:[#allocation12 + $0x1e0] ss:$8 sps:$4 sm:$0xff]  }
 0x460   : > { %5892 = vmatprep.subr.bf16.mxu0 %v9447_v47  ;;  %v9547_v47 = vld [vmem:[#allocation12 + $0x1d0] ss:$8 sps:$4 sm:$0xff]  }
 0x462   : > { %6380 = vmatpush1.bf16.msra.mxu1 %v9490_v62 }
 0x463   : > { %5893 = vmatpush2.bf16.msra.mxu0 %v9445_v60  ;;  %6381 = vmatprep.subr.bf16.mxu1 %v9495_v29  ;;  %v9550_v60 = vld [vmem:[#allocation12 + $0x1c0] ss:$8 sps:$4 sm:$0xff]   ;;  %v5055_v29 = vld [vmem:[#allocation10] sm:$0xf] }
 0x464   : > { %5894 = vmatprep.subr.bf16.mxu0 %v9450_v42  ;;  %v9553_v42 = vld [vmem:[#allocation12 + $0x1b0] ss:$8 sps:$4 sm:$0xff]  }
 0x466   : > { %6382 = vmatpush2.bf16.msra.mxu1 %v9493_v49 }
 0x467   : > { %5895 = vmatpush2.bf16.msra.mxu0 %v9448_v32  ;;  %6383 = vmatprep.subr.bf16.mxu1 %v9498_v4  ;;  %v9556_v32 = vld [vmem:[#allocation12 + $0x1a0] ss:$8 sps:$4 sm:$0xff]  }
 0x468   : > { %5896 = vmatprep.subr.bf16.mxu0 %v9453_v33  ;;  %v9559_v33 = vld [vmem:[#allocation12 + $0x190] ss:$8 sps:$4 sm:$0xff]  }
 0x46a   : > { %6384 = vmatpush2.bf16.msra.mxu1 %v9496_v26 }
 0x46b   : > { %5897 = vmatpush2.bf16.msra.mxu0 %v9451_v44  ;;  %6385 = vmatprep.subr.bf16.mxu1 %v9501_v6  ;;  %v9562_v44 = vld [vmem:[#allocation12 + $0x180] ss:$8 sps:$4 sm:$0xff]  }
 0x46c   : > { %5898 = vmatprep.subr.bf16.mxu0 %v9456_v46 }
 0x46e   : > { %6386 = vmatpush2.bf16.msra.mxu1 %v9499_v3 }
 0x46f   : > { %5899 = vmatpush2.bf16.msra.mxu0 %v9454_v57  ;;  %6387 = vmatprep.subr.bf16.mxu1 %v9504_v51 }
 0x470   : > { %5900 = vmatprep.subr.bf16.mxu0 %v9459_v45  ;;  %v5064_v45 = vrot.slane %v5055_v29, %v10630_v23 }
 0x472   : > { %6388 = vmatpush2.bf16.msra.mxu1 %v9502_v11 }
 0x473   : > { %5901 = vmatpush2.bf16.msra.mxu0 %v9457_v7  ;;  %6389 = vmatprep.subr.bf16.mxu1 %v9507_v39  ;;  %v5060_v7 = vrot.slane %v5055_v29, %v10650_v54 }
 0x474   : > { %5902 = vmatprep.subr.bf16.mxu0 %v9462_v15 }
 0x476   : > { %6390 = vmatpush2.bf16.msra.mxu1 %v9505_v48 }
 0x477   : > { %5903 = vmatpush2.bf16.msra.mxu0 %v9460_v17  ;;  %6391 = vmatprep.subr.bf16.mxu1 %v9510_v55 }
 0x478   : > { %5904 = vmatprep.subr.bf16.mxu0 %v9465_v43 }
 0x47a   : > { %6392 = vmatpush2.bf16.msra.mxu1 %v9508_v58 }
 0x47b   : > { %5905 = vmatpush2.bf16.msra.mxu0 %v9463_v10  ;;  %6393 = vmatprep.subr.bf16.mxu1 %v9513_v19 }
 0x47c   : > { %5906 = vmatprep.subr.bf16.mxu0 %v9468_v8 }
 0x47e   : > { %6394 = vmatpush2.bf16.msra.mxu1 %v9511_v61 }
 0x47f   : > { %5907 = vmatpush2.bf16.msra.mxu0 %v9466_v18  ;;  %6395 = vmatprep.subr.bf16.mxu1 %v9516_v9 }
 0x482   : > { %5909 = vmatmul.mubr.bf16.vlgmr.msra.gmra.mxu0 %v10782_v36  ;;  %6396 = vmatpush2.bf16.msra.mxu1 %v9514_v34  ;;  %v9519_v36 = vld [vmem:[#allocation12 + $0x174] ss:$8 sps:$4 sm:$0xff]  }
 0x483   : > { %5918 = vmatprep.mubr.bf16.mxu0 %v10787_v31  ;;  %6418 = vmatprep.subr.bf16.mxu0 %v9519_v36  ;;  %v9522_v31 = vld [vmem:[#allocation12 + $0x164] ss:$8 sps:$4 sm:$0xff]  }
 0x484   : > { %6419 = vmatpush1.bf16.msra.mxu0 %v9517_v27 }
 0x485   : > { %6420 = vmatprep.subr.bf16.mxu0 %v9522_v31 }
 0x488   : > { %6421 = vmatpush1.bf16.msra.mxu0 %v9520_v22 }
 0x489   : > { %6422 = vmatprep.subr.bf16.mxu0 %v9525_v28 }
 0x48a   : > { %5919 = vmatmul.mubr.bf16.gmra.mxu0 %v10790_v50  ;;  %v9526_v50 = vld [vmem:[#allocation12 + $0x140] ss:$8 sps:$4 sm:$0xff]  }
 0x48c   : > { %6423 = vmatpush1.bf16.msra.mxu0 %v9523_v63 }
 0x48d   : > { %6424 = vmatprep.subr.bf16.mxu0 %v9528_v2 }
 0x490   : > { %6425 = vmatpush1.bf16.msra.mxu0 %v9526_v50 }
 0x491   : > { %6426 = vmatprep.subr.bf16.mxu0 %v9531_v12 }
 0x494   : > { %6427 = vmatpush1.bf16.msra.mxu0 %v9529_v37 }
 0x495   : > { %6428 = vmatprep.subr.bf16.mxu0 %v9534_v0 }
 0x498   : > { %6429 = vmatpush1.bf16.msra.mxu0 %v9532_v35 }
 0x499   : > { %6430 = vmatprep.subr.bf16.mxu0 %v9537_v30 }
 0x49c   : > { %6431 = vmatpush1.bf16.msra.mxu0 %v9535_v38 }
 0x49d   : > { %6432 = vmatprep.subr.bf16.mxu0 %v9540_v1 }
 0x4a0   : > { %6433 = vmatpush1.bf16.msra.mxu0 %v9538_v13 }
 0x4a1   : > { %6434 = vmatprep.subr.bf16.mxu0 %v9543_v40 }
 0x4a4   : > { %6435 = vmatpush2.bf16.msra.mxu0 %v9541_v14 }
 0x4a5   : > { %6436 = vmatprep.subr.bf16.mxu0 %v9546_v5 }
 0x4a8   : > { %6437 = vmatpush2.bf16.msra.mxu0 %v9544_v20 }
 0x4a9   : > { %6438 = vmatprep.subr.bf16.mxu0 %v9549_v24 }
 0x4ac   : > { %6439 = vmatpush2.bf16.msra.mxu0 %v9547_v47 }
 0x4ad   : > { %6440 = vmatprep.subr.bf16.mxu0 %v9552_v16 }
 0x4b0   : > { %6441 = vmatpush2.bf16.msra.mxu0 %v9550_v60 }
 0x4b1   : > { %6442 = vmatprep.subr.bf16.mxu0 %v9555_v21 }
 0x4b4   : > { %6443 = vmatpush2.bf16.msra.mxu0 %v9553_v42 }
 0x4b5   : > { %6444 = vmatprep.subr.bf16.mxu0 %v9558_v41 }
 0x4b8   : > { %6445 = vmatpush2.bf16.msra.mxu0 %v9556_v32 }
 0x4b9   : > { %6446 = vmatprep.subr.bf16.mxu0 %v9561_v56 }
 0x4bc   : > { %6447 = vmatpush2.bf16.msra.mxu0 %v9559_v33 }
 0x4bd   : > { %6448 = vmatprep.subr.bf16.mxu0 %v9564_v53 }
 0x4c0   : > { %6449 = vmatpush2.bf16.msra.mxu0 %v9562_v44  ;;  %v5751_v59 = vpop.f32.mrf.mxu1  ;;  %v5072_v44 = vrot.slane %v5055_v29, %v10698_v52 }
 0x4c1   : > { %v5752_v6 = vadd.f32 %v5751_v59, %v5060_v7  ;;  %v5068_v59 = vrot.slane %v5055_v29, %v10693_v25 }
 0x4c2   : > { %v5753_v46 = vpop.f32.mrf.mxu1 }
 0x4c3   : > { %v5754_v15 = vadd.f32 %v5753_v46, %v5064_v45 }
 0x4c4   : > { %v5755_v62 = vpop.f32.mrf.mxu1 }
 0x4c5   : > { %v5756_v43 = vadd.f32 %v5755_v62, %v5060_v7 }
 0x4c6   : > { %v5757_v57 = vpop.f32.mrf.mxu1 }
 0x4c7   : > { %v5758_v51 = vadd.f32 %v5757_v57, %v5064_v45 }
 0x4c8   : > { %v5761_v49 = vpop.f32.mrf.mxu1 }
 0x4c9   : > { %v5762_v36 = vadd.f32 %v5761_v49, %v5060_v7 }
 0x4ca   : > { %v5763_v26 = vpop.f32.mrf.mxu1 }
 0x4cb   : > { %v5764_v61 = vadd.f32 %v5763_v26, %v5064_v45 }
 0x4cc   : > { %v5765_v18 = vpop.f32.mrf.mxu1 }
 0x4cd   : > { %v5766_v22 = vadd.f32 %v5765_v18, %v5060_v7 }
 0x4ce   : > { %v5767_v27 = vpop.f32.mrf.mxu1 }
 0x4cf   : > { %v5768_v37 = vadd.f32 %v5767_v27, %v5064_v45 }
 0x500   : > { %v5857_v32 = vpop.f32.mrf.mxu1 }
 0x501   : > { %v5858_v45 = vadd.f32 %v5857_v32, %v5068_v59  ;;  %v9573_v32 = vld [vmem:[#allocation15 + $0x58] sm:$0xff]  }
 0x502   : > { %v5804_v4 = vpop.f32.mrf.mxu0  ;;  %v5859_v56 = vpop.f32.mrf.mxu1 }
 0x503   : > { %v5805_v8 = vadd.f32 %v5804_v4, %v5752_v6  ;;  %v5860_v57 = vadd.f32 %v5859_v56, %v5072_v44  ;;  %v9574_v56 = vld [vmem:[#allocation15 + $0x18] sm:$0xff]  }
 0x504   : > { %v5806_v17 = vpop.f32.mrf.mxu0  ;;  %v5861_v33 = vpop.f32.mrf.mxu1 }
 0x505   : > { %v5807_v3 = vadd.f32 %v5806_v17, %v5754_v15  ;;  %v5929_v9 = vmul.f32 0.01, %v5805_v8  ;;  %v5862_v4 = vadd.f32 %v5861_v33, %v5068_v59  ;;  %v9575_v33 = vld [vmem:[#allocation15 + $0x50] sm:$0xff]  }
 0x506   : > { %v5808_v10 = vpop.f32.mrf.mxu0  ;;  %v5863_v53 = vpop.f32.mrf.mxu1 }
 0x507   : > { %v5809_v11 = vadd.f32 %v5808_v10, %v5756_v43  ;;  %v5930_v58 = vmul.f32 0.01, %v5807_v3  ;;  %v5945_v0 = vmax.f32 %v5805_v8, %v5929_v9  ;;  %v5864_v6 = vadd.f32 %v5863_v53, %v5072_v44  ;;  %v9576_v53 = vld [vmem:[#allocation15 + $0x10] sm:$0xff]  }
 0x508   : > { %v5810_v39 = vpop.f32.mrf.mxu0  ;;  %v5867_v46 = vpop.f32.mrf.mxu1 }
 0x509   : > { %v5933_v48 = vmul.f32 0.01, %v5809_v11  ;;  %v5811_v55 = vadd.f32 %v5810_v39, %v5758_v51  ;;  %v5946_v2 = vmax.f32 %v5807_v3, %v5930_v58  ;;  %v5868_v39 = vadd.f32 %v5867_v46, %v5068_v59  ;;  %v9579_v46 = vld [vmem:[#allocation15 + $0x40] sm:$0xff]  }
 0x50a   : > { %v5814_v19 = vpop.f32.mrf.mxu0  ;;  %v5869_v49 = vpop.f32.mrf.mxu1 }
 0x50b   : > { %v5934_v34 = vmul.f32 0.01, %v5811_v55  ;;  %v5949_v28 = vmax.f32 %v5809_v11, %v5933_v48  ;;  %v5815_v35 = vadd.f32 %v5814_v19, %v5762_v36  ;;  %v5870_v25 = vadd.f32 %v5869_v49, %v5072_v44 }
 0x50c   : > { %v5816_v31 = vpop.f32.mrf.mxu0  ;;  %v5871_v3 = vpop.f32.mrf.mxu1 }
 0x50d   : > { %v5950_v63 = vmax.f32 %v5811_v55, %v5934_v34  ;;  %v5817_v50 = vadd.f32 %v5816_v31, %v5764_v61  ;;  %v5961_v13 = vpack.c.bf16 %v5949_v28, %v5945_v0  ;;  %v5937_v20 = vmul.f32 0.01, %v5815_v35 }
 0x50e   : > { %v5818_v12 = vpop.f32.mrf.mxu0  ;;  %v5873_v48 = vpop.f32.mrf.mxu1  ;;  %v5872_v19 = vadd.f32 %v5871_v3, %v5068_v59  ;;  %v9578_v59 = vld [vmem:[#allocation15 + $0x8] sm:$0xff]  }
 0x50f   : > { %v5819_v30 = vadd.f32 %v5818_v12, %v5766_v22  ;;  %v5962_v1 = vpack.c.bf16 %v5950_v63, %v5946_v2  ;;  %v5938_v40 = vmul.f32 0.01, %v5817_v50  ;;  %v5953_v21 = vmax.f32 %v5815_v35, %v5937_v20  ;;  %v9565_v20 = vld [vmem:[#allocation15 + $0x78] sm:$0xff]  }
 0x510   : > { %v5820_v38 = vpop.f32.mrf.mxu0  ;;  %v5874_v22 = vadd.f32 %v5873_v48, %v5072_v44  ;;  %8201 = vmatprep.subr.bf16.mxu1 %v9565_v20  ;;  %v9577_v44 = vld [vmem:[#allocation15 + $0x48] sm:$0xff]  }
 0x511   : > { %v5941_v14 = vmul.f32 0.01, %v5819_v30  ;;  %v5821_v5 = vadd.f32 %v5820_v38, %v5768_v37  ;;  %6397 = vmatprep.mubr.bf16.mxu1 %v5962_v1  ;;  %v5954_v47 = vmax.f32 %v5817_v50, %v5938_v40 }
 0x512   : > { %6398 = vmatmul.mubr.bf16.vlgmr.msra.gmra.mxu1 %v5961_v13 }
 0x513   : > { %v5942_v24 = vmul.f32 0.01, %v5821_v5  ;;  %v5957_v16 = vmax.f32 %v5819_v30, %v5941_v14 }
 0x515   : > { %v5958_v60 = vmax.f32 %v5821_v5, %v5942_v24  ;;  %v5965_v41 = vpack.c.bf16 %v5957_v16, %v5953_v21  ;;  %v9566_v24 = vld [vmem:[#allocation15 + $0x38] sm:$0xff]   ;;  %v9568_v16 = vld [vmem:[#allocation15 + $0x30] sm:$0xff]   ;;  %v9570_v21 = vld [vmem:[#allocation15 + $0x28] sm:$0xff]  }
 0x516   : > { %8202 = vmatpush3.bf16.msra.mxu1 %v9566_v24 }
 0x517   : > { %v5966_v42 = vpack.c.bf16 %v5958_v60, %v5954_v47  ;;  %v9567_v47 = vld [vmem:[#allocation15 + $0x70] sm:$0xff]   ;;  %v9569_v60 = vld [vmem:[#allocation15 + $0x68] sm:$0xff]  }
 0x518   : > { %8203 = vmatprep.subr.bf16.mxu1 %v9567_v47 }
 0x519   : > { %6407 = vmatprep.mubr.bf16.mxu1 %v5966_v42  ;;  %v9571_v42 = vld [vmem:[#allocation15 + $0x60] sm:$0xff]  }
 0x51a   : > { %6408 = vmatmul.mubr.bf16.gmra.mxu1 %v5965_v41  ;;  %v9572_v41 = vld [vmem:[#allocation15 + $0x20] sm:$0xff]  }
 0x51b   : > { %8204 = vmatpush3.bf16.msra.mxu1 %v9568_v16 }
 0x51c   : > { %8205 = vmatprep.subr.bf16.mxu1 %v9569_v60 }
 0x51f   : > { %8206 = vmatpush3.bf16.msra.mxu1 %v9570_v21 }
 0x520   : > { %8207 = vmatprep.subr.bf16.mxu1 %v9571_v42 }
 0x523   : > { %8208 = vmatpush3.bf16.msra.mxu1 %v9572_v41 }
 0x524   : > { %8209 = vmatprep.subr.bf16.mxu1 %v9573_v32 }
 0x527   : > { %8210 = vmatpush3.bf16.msra.mxu1 %v9574_v56  ;;  %v9583_v56 = vld [vmem:[#allocation18 + $0x28] sm:$0xff]  }
 0x528   : > { %8211 = vmatprep.subr.bf16.mxu1 %v9575_v33  ;;  %v9584_v33 = vld [vmem:[#allocation18 + $0x20] sm:$0xff]  }
 0x52b   : > { %8212 = vmatpush3.bf16.msra.mxu1 %v9576_v53  ;;  %v9585_v53 = vld [vmem:[#allocation18 + $0x18] sm:$0xff]  }
 0x52c   : > { %8213 = vmatprep.subr.bf16.mxu1 %v9577_v44  ;;  %v9586_v44 = vld [vmem:[#allocation18 + $0x10] sm:$0xff]  }
 0x52f   : > { %8214 = vmatpush3.bf16.msra.mxu1 %v9578_v59  ;;  %v9587_v59 = vld [vmem:[#allocation18 + $0x8] sm:$0xff]  }
 0x530   : > { %8215 = vmatprep.subr.bf16.mxu1 %v9579_v46  ;;  %v9588_v46 = vld [vmem:[#allocation18] sm:$0xff]  }
 0x542   : > { %v5910_v62 = vpop.f32.mrf.mxu0 }
 0x543   : > { %v5911_v26 = vadd.f32 %v5910_v62, %v5858_v45  ;;  %v9580_v62 = vld [vmem:[#allocation15] sm:$0xff]  }
 0x544   : > { %v5912_v7 = vpop.f32.mrf.mxu0  ;;  %8216 = vmatpush3.bf16.msra.mxu1 %v9580_v62  ;;  %v9589_v62 = vld [vmem:[#allocation21 + $0x38] sm:$0xff]  }
 0x545   : > { %v5913_v15 = vadd.f32 %v5912_v7, %v5860_v57  ;;  %v5931_v52 = vmul.f32 0.01, %v5911_v26  ;;  %v9581_v57 = vld [vmem:[#allocation18 + $0x38] sm:$0xff]   ;;  %8289 = vmatprep.subr.bf16.mxu0 %v9589_v62 }
 0x546   : > { %v5914_v17 = vpop.f32.mrf.mxu0  ;;  %8269 = vmatprep.subr.bf16.mxu1 %v9581_v57 }
 0x547   : > { %v5915_v43 = vadd.f32 %v5914_v17, %v5862_v4  ;;  %v5932_v51 = vmul.f32 0.01, %v5913_v15  ;;  %v5947_v36 = vmax.f32 %v5911_v26, %v5931_v52 }
 0x548   : > { %v5916_v10 = vpop.f32.mrf.mxu0 }
 0x549   : > { %v5935_v8 = vmul.f32 0.01, %v5915_v43  ;;  %v5917_v11 = vadd.f32 %v5916_v10, %v5864_v6  ;;  %v5948_v61 = vmax.f32 %v5913_v15, %v5932_v51  ;;  %v6033_v15 = vld [vmem:[#allocation13] sm:$0x3] }
 0x54a   : > { %v5920_v18 = vpop.f32.mrf.mxu0  ;;  %v6042_v26 = vrot.slane %v6033_v15, %v10630_v23  ;;  %v6038_v17 = vrot.slane %v6033_v15, %v10650_v54  ;;  %v8146_v15 = vld [vmem:[#allocation16] ss:$0 sm:$0xff] }
 0x54b   : > { %v5936_v29 = vmul.f32 0.01, %v5917_v11  ;;  %v5951_v55 = vmax.f32 %v5915_v43, %v5935_v8  ;;  %v5921_v27 = vadd.f32 %v5920_v18, %v5868_v39 }
 0x54c   : > { %v5922_v58 = vpop.f32.mrf.mxu0 }
 0x54d   : > { %v5952_v9 = vmax.f32 %v5917_v11, %v5936_v29  ;;  %v5923_v34 = vadd.f32 %v5922_v58, %v5870_v25  ;;  %v5963_v50 = vpack.c.bf16 %v5951_v55, %v5947_v36  ;;  %v5939_v35 = vmul.f32 0.01, %v5921_v27 }
 0x54e   : > { %v5924_v31 = vpop.f32.mrf.mxu0 }
 0x54f   : > { %v5925_v28 = vadd.f32 %v5924_v31, %v5872_v19  ;;  %v5964_v63 = vpack.c.bf16 %v5952_v9, %v5948_v61  ;;  %v5940_v12 = vmul.f32 0.01, %v5923_v34  ;;  %v5955_v40 = vmax.f32 %v5921_v27, %v5939_v35 }
 0x550   : > { %v5926_v2 = vpop.f32.mrf.mxu0 }
 0x551   : > { %v5943_v37 = vmul.f32 0.01, %v5925_v28  ;;  %v5927_v0 = vadd.f32 %v5926_v2, %v5874_v22  ;;  %6450 = vmatprep.mubr.bf16.mxu0 %v5964_v63  ;;  %v5956_v1 = vmax.f32 %v5923_v34, %v5940_v12 }
 0x552   : > { %6451 = vmatmul.mubr.bf16.vlgmr.msra.gmra.mxu0 %v5963_v50 }
 0x553   : > { %v5944_v30 = vmul.f32 0.01, %v5927_v0  ;;  %v5959_v38 = vmax.f32 %v5925_v28, %v5943_v37  ;;  %8290 = vmatpush3.bf16.msra.mxu0 %v9589_v62 }
 0x555   : > { %v5960_v13 = vmax.f32 %v5927_v0, %v5944_v30  ;;  %v5967_v5 = vpack.c.bf16 %v5959_v38, %v5955_v40  ;;  %v9582_v40 = vld [vmem:[#allocation18 + $0x30] sm:$0xff]  }
 0x557   : > { %v5968_v14 = vpack.c.bf16 %v5960_v13, %v5956_v1 }
 0x559   : > { %6460 = vmatprep.mubr.bf16.mxu0 %v5968_v14 }
 0x55a   : > { %6461 = vmatmul.mubr.bf16.gmra.mxu0 %v5967_v5 }
 0x5d2   : > { %v6399_v45 = vpop.f32.mrf.mxu1 }
 0x5d3   : > { %v6400_v10 = vadd.f32 %v6399_v45, %v6038_v17  ;;  %v9591_v45 = vld [vmem:[#allocation21 + $0x28] sm:$0xff]  }
 0x5d4   : > { %v6401_v49 = vpop.f32.mrf.mxu1 }
 0x5d5   : > { %v6402_v3 = vadd.f32 %v6401_v49, %v6042_v26  ;;  %v9592_v49 = vld [vmem:[#allocation21 + $0x20] sm:$0xff]  }
 0x5d6   : > { %v6403_v7 = vpop.f32.mrf.mxu1 }
 0x5d7   : > { %v6404_v11 = vadd.f32 %v6403_v7, %v6038_v17  ;;  %v9593_v7 = vld [vmem:[#allocation21 + $0x18] sm:$0xff]  }
 0x5d8   : > { %v6405_v4 = vpop.f32.mrf.mxu1 }
 0x5d9   : > { %v6406_v29 = vadd.f32 %v6405_v4, %v6042_v26 }
 0x5da   : > { %v6409_v6 = vpop.f32.mrf.mxu1 }
 0x5db   : > { %v6410_v36 = vadd.f32 %v6409_v6, %v6038_v17 }
 0x5dc   : > { %v6411_v51 = vpop.f32.mrf.mxu1 }
 0x5dd   : > { %v6412_v54 = vadd.f32 %v6411_v51, %v6042_v26 }
 0x5de   : > { %v6413_v48 = vpop.f32.mrf.mxu1 }
 0x5df   : > { %v6414_v28 = vadd.f32 %v6413_v48, %v6038_v17 }
 0x5e0   : > { %v6415_v27 = vpop.f32.mrf.mxu1 }
 0x5e1   : > { %v6416_v35 = vadd.f32 %v6415_v27, %v6042_v26 }
 0x612   : > { %v6452_v43 = vpop.f32.mrf.mxu0 }
 0x613   : > { %v6453_v18 = vadd.f32 %v6452_v43, %v6400_v10 }
 0x614   : > { %v6454_v8 = vpop.f32.mrf.mxu0 }
 0x615   : > { %v6455_v52 = vadd.f32 %v6454_v8, %v6402_v3  ;;  %v6471_v23 = vmul.f32 0.01, %v6453_v18 }
 0x616   : > { %v6456_v25 = vpop.f32.mrf.mxu0 }
 0x617   : > { %v6457_v39 = vadd.f32 %v6456_v25, %v6404_v11  ;;  %v6472_v58 = vmul.f32 0.01, %v6455_v52  ;;  %v6479_v12 = vmax.f32 %v6453_v18, %v6471_v23 }
 0x618   : > { %v6458_v55 = vpop.f32.mrf.mxu0 }
 0x619   : > { %v6473_v19 = vmul.f32 0.01, %v6457_v39  ;;  %v6459_v61 = vadd.f32 %v6458_v55, %v6406_v29  ;;  %v6480_v63 = vmax.f32 %v6455_v52, %v6472_v58 }
 0x61a   : > { %v6462_v9 = vpop.f32.mrf.mxu0 }
 0x61b   : > { %v6474_v34 = vmul.f32 0.01, %v6459_v61  ;;  %v6481_v31 = vmax.f32 %v6457_v39, %v6473_v19  ;;  %v6463_v37 = vadd.f32 %v6462_v9, %v6410_v36 }
 0x61c   : > { %v6464_v22 = vpop.f32.mrf.mxu0 }
 0x61d   : > { %v6482_v50 = vmax.f32 %v6459_v61, %v6474_v34  ;;  %v6465_v2 = vadd.f32 %v6464_v22, %v6412_v54  ;;  %v6487_v1 = vpack.c.bf16 %v6481_v31, %v6479_v12  ;;  %v6475_v24 = vmul.f32 0.01, %v6463_v37  ;;  %v9594_v31 = vld [vmem:[#allocation21 + $0x10] sm:$0xff]   ;;  %v9595_v22 = vld [vmem:[#allocation21 + $0x8] sm:$0xff]  }
 0x61e   : > { %v6466_v0 = vpop.f32.mrf.mxu0  ;;  %v9600_v12 = vld [vmem:[#allocation24 + $0x20] sm:$0xff]  }
 0x61f   : > { %v6467_v30 = vadd.f32 %v6466_v0, %v6414_v28  ;;  %v6488_v38 = vpack.c.bf16 %v6482_v50, %v6480_v63  ;;  %v6476_v14 = vmul.f32 0.01, %v6465_v2  ;;  %v6483_v42 = vmax.f32 %v6463_v37, %v6475_v24  ;;  %v9596_v28 = vld [vmem:[#allocation21] sm:$0xff]   ;;  %v9598_v50 = vld [vmem:[#allocation24 + $0x30] sm:$0xff]  }
 0x620   : > { %v6468_v13 = vpop.f32.mrf.mxu0  ;;  %v9597_v63 = vld [vmem:[#allocation24 + $0x38] sm:$0xff]  }
 0x621   : > { %v6477_v5 = vmul.f32 0.01, %v6467_v30  ;;  %v6469_v20 = vadd.f32 %v6468_v13, %v6416_v35  ;;  %6658 = vmatprep.mubr.bf16.mxu1 %v6488_v38  ;;  %v6484_v60 = vmax.f32 %v6465_v2, %v6476_v14  ;;  %v9599_v2 = vld [vmem:[#allocation24 + $0x28] sm:$0xff]   ;;  %v9601_v37 = vld [vmem:[#allocation24 + $0x18] sm:$0xff]  }
 0x622   : > { %6659 = vmatmul.mubr.bf16.vlgmr.msra.gmra.mxu1 %v6487_v1 }
 0x623   : > { %v6478_v47 = vmul.f32 0.01, %v6469_v20  ;;  %8270 = vmatpush3.bf16.msra.mxu1 %v9581_v57  ;;  %v6485_v16 = vmax.f32 %v6467_v30, %v6477_v5  ;;  %v9590_v57 = vld [vmem:[#allocation21 + $0x30] sm:$0xff]   ;;  %v8163_v30 = vld [vmem:[#allocation19] ss:$0 sm:$0xff] }
 0x624   : > { %8271 = vmatprep.subr.bf16.mxu1 %v9582_v40  ;;  %8291 = vmatprep.subr.bf16.mxu0 %v9590_v57 }
 0x625   : > { %v6486_v21 = vmax.f32 %v6469_v20, %v6478_v47  ;;  %v6489_v32 = vpack.c.bf16 %v6485_v16, %v6483_v42  ;;  %8292 = vmatpush3.bf16.msra.mxu0 %v9590_v57  ;;  %v9602_v42 = vld [vmem:[#allocation24 + $0x10] sm:$0xff]   ;;  %v8172_v57 = vld [vmem:[#allocation22] ss:$0 sm:$0xff] }
 0x626   : > { %8293 = vmatprep.subr.bf16.mxu0 %v9591_v45 }
 0x627   : > { %v6490_v41 = vpack.c.bf16 %v6486_v21, %v6484_v60  ;;  %8272 = vmatpush3.bf16.msra.mxu1 %v9582_v40 }
 0x628   : > { %8273 = vmatprep.subr.bf16.mxu1 %v9583_v56 }
 0x629   : > { %6666 = vmatprep.mubr.bf16.mxu1 %v6490_v41  ;;  %8294 = vmatpush3.bf16.msra.mxu0 %v9591_v45  ;;  %v9603_v41 = vld [vmem:[#allocation24 + $0x8] sm:$0xff]  }
 0x62a   : > { %6667 = vmatmul.mubr.bf16.gmra.mxu1 %v6489_v32  ;;  %8295 = vmatprep.subr.bf16.mxu0 %v9592_v49  ;;  %v9604_v32 = vld [vmem:[#allocation24] sm:$0xff]  }
 0x62b   : > { %8274 = vmatpush3.bf16.msra.mxu1 %v9583_v56  ;;  %v9605_v56 = vld [vmem:[#allocation27 + $0x38] sm:$0xff]  }
 0x62c   : > { %8275 = vmatprep.subr.bf16.mxu1 %v9584_v33 }
 0x62d   : > { %8296 = vmatpush3.bf16.msra.mxu0 %v9592_v49 }
 0x62e   : > { %8297 = vmatprep.subr.bf16.mxu0 %v9593_v7 }
 0x62f   : > { %8276 = vmatpush3.bf16.msra.mxu1 %v9584_v33  ;;  %v9606_v33 = vld [vmem:[#allocation27 + $0x30] sm:$0xff]  }
 0x630   : > { %8277 = vmatprep.subr.bf16.mxu1 %v9585_v53 }
 0x631   : > { %8298 = vmatpush3.bf16.msra.mxu0 %v9593_v7 }
 0x632   : > { %8299 = vmatprep.subr.bf16.mxu0 %v9594_v31 }
 0x633   : > { %8278 = vmatpush3.bf16.msra.mxu1 %v9585_v53  ;;  %v9607_v53 = vld [vmem:[#allocation27 + $0x28] sm:$0xff]  }
 0x634   : > { %8279 = vmatprep.subr.bf16.mxu1 %v9586_v44 }
 0x635   : > { %8300 = vmatpush3.bf16.msra.mxu0 %v9594_v31 }
 0x636   : > { %8301 = vmatprep.subr.bf16.mxu0 %v9595_v22 }
 0x637   : > { %8280 = vmatpush3.bf16.msra.mxu1 %v9586_v44  ;;  %v9608_v44 = vld [vmem:[#allocation27 + $0x20] sm:$0xff]  }
 0x638   : > { %8281 = vmatprep.subr.bf16.mxu1 %v9587_v59 }
 0x639   : > { %8302 = vmatpush3.bf16.msra.mxu0 %v9595_v22  ;;  %v8190_v22 = vld [vmem:[#allocation28] ss:$0 sm:$0xff] }
 0x63a   : > { %8303 = vmatprep.subr.bf16.mxu0 %v9596_v28 }
 0x63b   : > { %8282 = vmatpush3.bf16.msra.mxu1 %v9587_v59  ;;  %v9609_v59 = vld [vmem:[#allocation27 + $0x18] sm:$0xff]  }
 0x63c   : > { %8283 = vmatprep.subr.bf16.mxu1 %v9588_v46 }
 0x63d   : > { %8304 = vmatpush3.bf16.msra.mxu0 %v9596_v28 }
 0x63e   : > { %8329 = vmatprep.subr.bf16.mxu0 %v9605_v56 }
 0x63f   : > { %8284 = vmatpush3.bf16.msra.mxu1 %v9588_v46 }
 0x640   : > { %8309 = vmatprep.subr.bf16.mxu1 %v9597_v63 }
 0x6e2   : > { %v8217_v4 = vpop.f32.mrf.mxu1 }
 0x6e4   : > { %v8218_v26 = vpop.f32.mrf.mxu1 }
 0x6e5   : > { %v8219_v17 = vadd.f32 %v8218_v26, %v8217_v4 }
 0x6e6   : > { %v8220_v6 = vpop.f32.mrf.mxu1 }
 0x6e7   : > { %v6661_v43 = vadd.f32 %v8219_v17, %v8146_v15 }
 0x6e8   : > { %v8221_v3 = vpop.f32.mrf.mxu1 }
 0x6e9   : > { %v8222_v10 = vadd.f32 %v8221_v3, %v8220_v6  ;;  %v6675_v8 = vmul.f32 0.01, %v6661_v43 }
 0x6ea   : > { %v8223_v51 = vpop.f32.mrf.mxu1 }
 0x6eb   : > { %v6664_v11 = vadd.f32 %v8222_v10, %v8146_v15  ;;  %v6679_v39 = vmax.f32 %v6661_v43, %v6675_v8  ;;  %v9610_v8 = vld [vmem:[#allocation27 + $0x10] sm:$0xff]  }
 0x6ec   : > { %v8224_v52 = vpop.f32.mrf.mxu1 }
 0x6ed   : > { %v6676_v18 = vmul.f32 0.01, %v6664_v11  ;;  %v8225_v25 = vadd.f32 %v8224_v52, %v8223_v51  ;;  %v9612_v52 = vld [vmem:[#allocation27] sm:$0xff]  }
 0x6ee   : > { %v8226_v29 = vpop.f32.mrf.mxu1 }
 0x6ef   : > { %v6680_v48 = vmax.f32 %v6664_v11, %v6676_v18  ;;  %v6669_v55 = vadd.f32 %v8225_v25, %v8146_v15  ;;  %v9611_v11 = vld [vmem:[#allocation27 + $0x8] sm:$0xff]  }
 0x6f0   : > { %v8227_v58 = vpop.f32.mrf.mxu1 }
 0x6f1   : > { %v8228_v19 = vadd.f32 %v8227_v58, %v8226_v29  ;;  %v6683_v61 = vpack.c.bf16 %v6680_v48, %v6679_v39  ;;  %v6677_v23 = vmul.f32 0.01, %v6669_v55  ;;  %v8181_v29 = vld [vmem:[#allocation25] ss:$0 sm:$0xff] }
 0x6f3   : > { %v6672_v9 = vadd.f32 %v8228_v19, %v8146_v15  ;;  %8285 = vmatprep.mubr.bf16.mxu1 %v6683_v61  ;;  %v6681_v34 = vmax.f32 %v6669_v55, %v6677_v23 }
 0x6f5   : > { %v6678_v54 = vmul.f32 0.01, %v6672_v9 }
 0x6f7   : > { %v6682_v36 = vmax.f32 %v6672_v9, %v6678_v54 }
 0x6f9   : > { %v6684_v27 = vpack.c.bf16 %v6682_v36, %v6681_v34 }
 0x6fb   : > { %8286 = vmatmul.mubr.bf16.vlgmr.msra.gmra.mxu1 %v6684_v27 }
 0x6fc   : > { %8310 = vmatpush3.bf16.msra.mxu1 %v9597_v63 }
 0x6fd   : > { %8311 = vmatprep.subr.bf16.mxu1 %v9598_v50 }
 0x700   : > { %8312 = vmatpush3.bf16.msra.mxu1 %v9598_v50 }
 0x701   : > { %8313 = vmatprep.subr.bf16.mxu1 %v9599_v2 }
 0x704   : > { %8314 = vmatpush3.bf16.msra.mxu1 %v9599_v2 }
 0x705   : > { %8315 = vmatprep.subr.bf16.mxu1 %v9600_v12 }
 0x708   : > { %8316 = vmatpush3.bf16.msra.mxu1 %v9600_v12 }
 0x709   : > { %8317 = vmatprep.subr.bf16.mxu1 %v9601_v37 }
 0x70c   : > { %8318 = vmatpush3.bf16.msra.mxu1 %v9601_v37 }
 0x70d   : > { %8319 = vmatprep.subr.bf16.mxu1 %v9602_v42 }
 0x710   : > { %8320 = vmatpush3.bf16.msra.mxu1 %v9602_v42 }
 0x711   : > { %8321 = vmatprep.subr.bf16.mxu1 %v9603_v41 }
 0x714   : > { %8322 = vmatpush3.bf16.msra.mxu1 %v9603_v41 }
 0x715   : > { %8323 = vmatprep.subr.bf16.mxu1 %v9604_v32 }
 0x718   : > { %8324 = vmatpush3.bf16.msra.mxu1 %v9604_v32 }
 0x7bb   : > { %v8287_v0 = vpop.f32.mrf.mxu1 }
 0x7bc   : > { %v6799_v40 = vadd.f32 %v8287_v0, %v8163_v30 }
 0x7bd   : > { %v6790_v35 = vpop.f32.mrf.mxu1 }
 0x7be   : > { %v6791_v1 = vadd.f32 %v8163_v30, %v6790_v35  ;;  %v6807_v16 = vmax.f32 %v6799_v40, 0.0 }
 0x7bf   : > { %v8288_v38 = vpop.f32.mrf.mxu1 }
 0x7c0   : > { %v6802_v13 = vadd.f32 %v8288_v38, %v8163_v30  ;;  %v6805_v24 = vmax.f32 %v6791_v1, 0.0 }
 0x7c1   : > { %v6793_v14 = vpop.f32.mrf.mxu1 }
 0x7c2   : > { %v6794_v5 = vadd.f32 %v8163_v30, %v6793_v14  ;;  %v6808_v20 = vmax.f32 %v6802_v13, 0.0 }
 0x7c4   : > { %v6806_v47 = vmax.f32 %v6794_v5, 0.0  ;;  %v6810_v21 = vpack.c.bf16 %v6808_v20, %v6807_v16 }
 0x7c6   : > { %v6809_v60 = vpack.c.bf16 %v6806_v47, %v6805_v24 }
 0x7c8   : > { %8305 = vmatprep.mubr.bf16.mxu0 %v6809_v60 }
 0x7c9   : > { %8306 = vmatmul.mubr.bf16.vlgmr.msra.gmra.mxu0 %v6810_v21 }
 0x7ca   : > { %8330 = vmatpush3.bf16.msra.mxu0 %v9605_v56 }
 0x7cb   : > { %8331 = vmatprep.subr.bf16.mxu0 %v9606_v33 }
 0x7ce   : > { %8332 = vmatpush3.bf16.msra.mxu0 %v9606_v33 }
 0x7cf   : > { %8333 = vmatprep.subr.bf16.mxu0 %v9607_v53 }
 0x7d2   : > { %8334 = vmatpush3.bf16.msra.mxu0 %v9607_v53 }
 0x7d3   : > { %8335 = vmatprep.subr.bf16.mxu0 %v9608_v44 }
 0x7d6   : > { %8336 = vmatpush3.bf16.msra.mxu0 %v9608_v44 }
 0x7d7   : > { %8337 = vmatprep.subr.bf16.mxu0 %v9609_v59 }
 0x7da   : > { %8338 = vmatpush3.bf16.msra.mxu0 %v9609_v59 }
 0x7db   : > { %8339 = vmatprep.subr.bf16.mxu0 %v9610_v8 }
 0x7de   : > { %8340 = vmatpush3.bf16.msra.mxu0 %v9610_v8 }
 0x7df   : > { %8341 = vmatprep.subr.bf16.mxu0 %v9611_v11 }
 0x7e2   : > { %8342 = vmatpush3.bf16.msra.mxu0 %v9611_v11 }
 0x7e3   : > { %8343 = vmatprep.subr.bf16.mxu0 %v9612_v52 }
 0x7e6   : > { %8344 = vmatpush3.bf16.msra.mxu0 %v9612_v52 }
 0x889   : > { %v8307_v46 = vpop.f32.mrf.mxu0 }
 0x88a   : > { %v6925_v4 = vadd.f32 %v8307_v46, %v8172_v57 }
 0x88b   : > { %v6916_v62 = vpop.f32.mrf.mxu0 }
 0x88c   : > { %v6917_v49 = vadd.f32 %v8172_v57, %v6916_v62  ;;  %v6933_v3 = vmax.f32 %v6925_v4, 0.0 }
 0x88d   : > { %v8308_v45 = vpop.f32.mrf.mxu0 }
 0x88e   : > { %v6928_v7 = vadd.f32 %v8308_v45, %v8172_v57  ;;  %v6931_v6 = vmax.f32 %v6917_v49, 0.0 }
 0x88f   : > { %v6919_v15 = vpop.f32.mrf.mxu0 }
 0x890   : > { %v6920_v26 = vadd.f32 %v8172_v57, %v6919_v15  ;;  %v6934_v17 = vmax.f32 %v6928_v7, 0.0 }
 0x892   : > { %v6932_v43 = vmax.f32 %v6920_v26, 0.0  ;;  %v6936_v51 = vpack.c.bf16 %v6934_v17, %v6933_v3 }
 0x894   : > { %v6935_v10 = vpack.c.bf16 %v6932_v43, %v6931_v6 }
 0x896   : > { %8325 = vmatprep.mubr.bf16.mxu1 %v6935_v10 }
 0x897   : > { %8326 = vmatmul.mubr.bf16.vlgmr.msra.gmra.mxu1 %v6936_v51 }
 0x957   : > { %v8327_v18 = vpop.f32.mrf.mxu1 }
 0x958   : > { %v7051_v58 = vadd.f32 %v8327_v18, %v8181_v29 }
 0x959   : > { %v7042_v25 = vpop.f32.mrf.mxu1 }
 0x95a   : > { %v7043_v48 = vadd.f32 %v8181_v29, %v7042_v25  ;;  %v7059_v34 = vmax.f32 %v7051_v58, 0.0 }
 0x95b   : > { %v8328_v39 = vpop.f32.mrf.mxu1 }
 0x95c   : > { %v7054_v55 = vadd.f32 %v8328_v39, %v8181_v29  ;;  %v7057_v9 = vmax.f32 %v7043_v48, 0.0 }
 0x95d   : > { %v7045_v19 = vpop.f32.mrf.mxu1 }
 0x95e   : > { %v7046_v61 = vadd.f32 %v8181_v29, %v7045_v19  ;;  %v7060_v23 = vmax.f32 %v7054_v55, 0.0 }
 0x960   : > { %v7058_v54 = vmax.f32 %v7046_v61, 0.0  ;;  %v7062_v27 = vpack.c.bf16 %v7060_v23, %v7059_v34 }
 0x962   : > { %v7061_v36 = vpack.c.bf16 %v7058_v54, %v7057_v9 }
 0x964   : > { %8345 = vmatprep.mubr.bf16.mxu0 %v7061_v36 }
 0x965   : > { %8346 = vmatmul.mubr.bf16.vlgmr.msra.gmra.mxu0 %v7062_v27 }
 0xa25   : > { %v8347_v31 = vpop.f32.mrf.mxu0 }
 0xa26   : > { %v7177_v37 = vadd.f32 %v8347_v31, %v8190_v22 }
 0xa27   : > { %v7168_v28 = vpop.f32.mrf.mxu0 }
 0xa28   : > { %v7169_v63 = vadd.f32 %v8190_v22, %v7168_v28  ;;  %7185 = vst [vmem:[%s851_s30 + $0x10] sm:$0xff] %v7177_v37 }
 0xa29   : > { %v8348_v50 = vpop.f32.mrf.mxu0 }
 0xa2a   : > { %7183 = vst [vmem:[%s851_s30] sm:$0xff] %v7169_v63  ;;  %v7180_v0 = vadd.f32 %v8348_v50, %v8190_v22 }
 0xa2b   : > { %v7171_v2 = vpop.f32.mrf.mxu0 }
 0xa2c   : > { %v7172_v12 = vadd.f32 %v8190_v22, %v7171_v2  ;;  %7186 = vst [vmem:[%s851_s30 + $0x18] sm:$0xff] %v7180_v0 }
 0xa2e   : > { %7184 = vst [vmem:[%s851_s30 + $0x8] sm:$0xff] %v7172_v12 }
 0xa2f PF: > { %s39_s0 = sadd.s32 1, %s10128_s0  }
 0xa30   : > { %p36_p6 = scmp.ge.s32.totalorder %s39_s0, 4  }
 0xa32   :  { %38 = sbr.rel (!%p36_p6) target bundleno = 17 (0x11), region = 199 }
 0xa37   :  { %7209 = vsyncpa [#allocation3], 1 }
 0xa38   :  { %7211 = vsyncpa [#allocation3 + $0x1], 1 }
 0xa39   :  { %7212 = vsyncpa [#allocation5], 1 }
 0xa3a   :  { %7213 = vsyncpa [#allocation8], 1 }
 0xa3b   :  { %7214 = vsyncpa [#allocation11], 1 }
 0xa3c   :  { %7215 = vsyncpa [#allocation14], 1 }
 0xa3d   :  { %7216 = vsyncpa [#allocation17], 1 }
 0xa3e   :  { %7217 = vsyncpa [#allocation20], 1 }
 0xa3f   :  { %7218 = vsyncpa [#allocation23], 1 }
 0xa40   :  { %7219 = vsyncpa [#allocation26], 1 }
 0xa41   :  { %7220 = vsyncpa [#allocation29], 1 }

</bundles_post_ra>
